<compile_context>
chip_gen: v5e
topology: v5e:2x2
jax: 0.10.0
libtpu: 0.0.40
codegen_flags: <defaults>
</compile_context>

<pallas_src>
import functools
import math

import jax
import jax.numpy as jnp
from jax.experimental import pallas as pl
from jax.experimental.pallas import tpu as pltpu


def _elu(x):
    # safe ELU (exp only sees non-positive values)
    return jnp.where(x > 0, x, jnp.exp(jnp.minimum(x, 0.0)) - 1.0)


def _blob_layout(c_in, C, T, H, ncls):
    """Shared (prep <-> kernel) packing layout for the two parameter blobs."""
    def up(n, m):
        return ((n + m - 1) // m) * m
    woff, r = {}, 0
    for name, rows, cols in (('conv', C, 3 * c_in), ('gat', T, T), ('wi', C, 3 * H),
                             ('whh', H, 3 * H), ('fc1', H, H), ('fc2', H, ncls)):
        woff[name] = (r, rows, cols)
        r = up(r + rows, 16)                       # bf16 sublane-tile alignment
    brow = {'gat_a': C, 'b_i': C + 1, 'b_hn': C + 2, 'fc1_b': C + 3, 'fc2_b': C + 4}
    return woff, r, brow, up(C + 5, 8)


# ------------------------------- Pallas kernel --------------------------------
def _cnn_gat_gru_kernel(x_ref, w_ref, b_ref, out_ref, *, B, T, Cin, C, H, ncls,
                        woff, brow):
    f32, bf16 = jnp.float32, jnp.bfloat16
    H3 = 3 * H

    def wview(name):
        r0, rr, cc = woff[name]
        return w_ref[r0:r0 + rr, 0:cc]             # static slice of the weight blob

    # ---- parameter views (whole blobs arrive via 2 DMAs; loads hoisted once) ----
    wc = wview('conv')                             # (C, 3Cin) bf16, BN-folded conv taps
    gatw = wview('gat')                            # (T, T)    bf16
    wi = wview('wi')                               # (C, 3H)   bf16, fused [r|z|n] input proj
    whh = wview('whh')                             # (H, 3H)   bf16, fused [r|z|n] hidden proj
    fc1w = wview('fc1')                            # (H, H)    bf16
    fc2w = wview('fc2')                            # (H, ncls) bf16
    convb = b_ref[0:C, 0:1]                        # (C, 1)  f32, BN-folded conv bias (column)
    a3 = b_ref[brow['gat_a']:brow['gat_a'] + 1, 0:T][None]          # (1, 1, T)
    b_i = b_ref[brow['b_i']:brow['b_i'] + 1, 0:H3]                  # (1, 3H)
    bhn = jnp.broadcast_to(b_ref[brow['b_hn']:brow['b_hn'] + 1, 0:H], (B, H))  # hoisted
    fc1b = b_ref[brow['fc1_b']:brow['fc1_b'] + 1, 0:H]
    fc2b = b_ref[brow['fc2_b']:brow['fc2_b'] + 1, 0:ncls]

    # ---- Conv1d(k=3,pad=1)+BN+ReLU: ONE matmul over all B*T positions (channels-major)
    hb = jnp.dot(wc, x_ref[...], preferred_element_type=f32) + convb      # (C, B*T)
    hb = jnp.maximum(hb, 0.0)

    # ---- GAT projection for both batch rows in one (B*C, T)@(T, T) matmul -------
    hn_all = jnp.concatenate([hb[:, b * T:(b + 1) * T] for b in range(B)], axis=0)
    wh_all = jnp.dot(hn_all.astype(bf16), gatw, preferred_element_type=f32)  # (B*C, T)

    # ---- GAT attention per batch row (pairwise scores chunked: no (C,C,T) spill) -
    xr_rows = []
    chunk = 8 if C % 8 == 0 else C
    for b in range(B):
        wh = wh_all[b * C:(b + 1) * C]                         # (C, T)
        e_rows = []
        for i0 in range(0, C, chunk):
            m = wh[i0:i0 + chunk, None, :] + wh[None, :, :]    # (chunk, C, T)
            m = jnp.where(m > 0, m, 0.2 * m)                   # LeakyReLU(0.2)
            e_rows.append(jnp.sum(m * a3, axis=-1))            # (chunk, C)
        e = jnp.concatenate(e_rows, axis=0) if len(e_rows) > 1 else e_rows[0]
        e = e - jnp.max(e, axis=-1, keepdims=True)             # softmax over channels
        p = jnp.exp(e)
        alpha = p * pl.reciprocal(jnp.sum(p, axis=-1, keepdims=True), approx=True)
        g = jnp.dot(alpha.astype(bf16), wh.astype(bf16),
                    preferred_element_type=f32)                # (C, T)
        xr_rows.append(_elu(g).T)                              # (T, C) GRU input order
    xr_all = jnp.concatenate(xr_rows, axis=0)                  # (B*T, C), b-major rows

    # ---- fused GRU input projection, all steps & rows: one (B*T,C)@(C,3H) matmul -
    gates = jnp.dot(xr_all.astype(bf16), wi, preferred_element_type=f32) + b_i  # (B*T, 3H)

    # ---- GRU recurrence, FULLY UNROLLED (T static): only h -> matmul -> EUP is serial
    h = jnp.zeros((B, H), f32)                                 # state kept in f32
    for t in range(T):
        # static-index gate fetch; independent of h, so it hoists off the serial chain
        xg = jnp.concatenate([gates[b * T + t:b * T + t + 1, :] for b in range(B)],
                             axis=0)                           # (B, 3H)
        hg = jnp.dot(h.astype(bf16), whh, preferred_element_type=f32)        # (B, 3H)
        rz = jax.nn.sigmoid(xg[:, :2 * H] + hg[:, :2 * H])     # fused r|z: one EUP push
        r, z = rz[:, :H], rz[:, H:]
        n = jnp.tanh(xg[:, 2 * H:] + r * (hg[:, 2 * H:] + bhn))
        h = (1.0 - z) * n + z * h

    # ---- classifier: Linear(H,H) -> Linear(H, n_classes), no activation ---------
    h1 = jnp.dot(h.astype(bf16), fc1w, preferred_element_type=f32) + fc1b
    out = jnp.dot(h1.astype(bf16), fc2w, preferred_element_type=f32) + fc2b
    out_ref[...] = out.astype(out_ref.dtype)


# ---------------------------------- wrapper ------------------------------------
def build_forward(Cin, C, T, H, n_classes):
    woff, _, brow, _ = _blob_layout(Cin, C, T, H, n_classes)

    @jax.jit
    def forward(x, w_blob, b_blob):
        B = x.shape[0]
        # im2col-style shifted input for the k=3/pad=1 conv, channels-major, bf16
        xp = jnp.pad(x, ((0, 0), (1, 1), (0, 0)))                       # (B, T+2, Cin)
        taps = jnp.concatenate([xp[:, k:k + T, :] for k in range(3)], axis=-1)
        xsT = taps.reshape(B * T, 3 * Cin).T.astype(jnp.bfloat16)       # (3Cin, B*T)
        kern = functools.partial(_cnn_gat_gru_kernel, B=B, T=T, Cin=Cin, C=C, H=H,
                                 ncls=n_classes, woff=woff, brow=brow)
        vmem = pl.BlockSpec(memory_space=pltpu.MemorySpace.VMEM)
        # TODO(synk): on v7x (2 TensorCores) run the independent batch rows as a
        #             grid=(B,) with dimension_semantics=("parallel",); kept a
        #             single invocation here (v5e/v6e have one TensorCore).
        return pl.pallas_call(
            kern,
            out_shape=jax.ShapeDtypeStruct((B, n_classes), jnp.float32),
            in_specs=[vmem, vmem, vmem],
            out_specs=vmem,
        )(xsT, w_blob, b_blob)

    return forward


# ------------------------- parameter prep (done once) --------------------------
def prep_params(p, eps=1e-5):
    """Fold BN into the conv, fuse/pre-transpose GRU & FC weights, and pack the
    13 tiny tensors into one bf16 weight blob + one f32 bias blob (2 DMAs)."""
    C, Cin, K = p['conv_w'].shape
    H = p['gru_w_hh'].shape[1]
    T = p['gat_w'].shape[0]
    ncls = p['fc2_w'].shape[0]
    woff, wrows, brow, brows = _blob_layout(Cin, C, T, H, ncls)

    scale = p['bn_gamma'] / jnp.sqrt(p['bn_var'] + eps)                  # (C,)
    shift = p['bn_beta'] - p['bn_mean'] * scale
    wc = (p['conv_w'] * scale[:, None, None]).transpose(0, 2, 1).reshape(C, K * Cin)
    conv_b = p['conv_b'] * scale + shift                                 # (C,)
    b_ih, b_hh = p['gru_b_ih'], p['gru_b_hh']
    b_i = jnp.concatenate([b_ih[:2 * H] + b_hh[:2 * H], b_ih[2 * H:]])   # (3H,)

    w_blob = jnp.zeros((wrows, 128), jnp.float32)
    for name, mat in (('conv', wc), ('gat', p['gat_w']), ('wi', p['gru_w_ih'].T),
                      ('whh', p['gru_w_hh'].T), ('fc1', p['fc1_w'].T),
                      ('fc2', p['fc2_w'].T)):
        r0, rr, cc = woff[name]
        w_blob = w_blob.at[r0:r0 + rr, 0:cc].set(mat)
    w_blob = w_blob.astype(jnp.bfloat16)

    b_blob = jnp.zeros((brows, 128), jnp.float32)
    b_blob = b_blob.at[0:C, 0].set(conv_b)                     # conv bias as a column
    b_blob = b_blob.at[brow['gat_a'], 0:T].set(p['gat_a'])
    b_blob = b_blob.at[brow['b_i'], 0:3 * H].set(b_i)
    b_blob = b_blob.at[brow['b_hn'], 0:H].set(b_hh[2 * H:])
    b_blob = b_blob.at[brow['fc1_b'], 0:H].set(p['fc1_b'])
    b_blob = b_blob.at[brow['fc2_b'], 0:ncls].set(p['fc2_b'])
    return w_blob, b_blob


# -------------------- pure-JAX f32 reference (PyTorch math) --------------------
def ref_forward(x, p):
    B, T, _ = x.shape
    xp = jnp.pad(x, ((0, 0), (1, 1), (0, 0)))
    conv = sum(jnp.einsum('btc,oc->bto', xp[:, k:k + T, :], p['conv_w'][:, :, k])
               for k in range(3)) + p['conv_b']
    h = (conv - p['bn_mean']) / jnp.sqrt(p['bn_var'] + 1e-5) * p['bn_gamma'] + p['bn_beta']
    h = jnp.maximum(h, 0.0)                                  # (B, T, C)
    Hn = jnp.swapaxes(h, 1, 2)                               # (B, C, T)
    Wh = jnp.einsum('bct,tu->bcu', Hn, p['gat_w'])
    m = Wh[:, :, None, :] + Wh[:, None, :, :]
    m = jnp.where(m > 0, m, 0.2 * m)
    e = jnp.einsum('bijt,t->bij', m, p['gat_a'])
    alpha = jax.nn.softmax(e, axis=-1)
    g = jnp.einsum('bij,bjt->bit', alpha, Wh)
    g = jnp.where(g > 0, g, jnp.exp(jnp.minimum(g, 0.0)) - 1.0)
    xr = jnp.swapaxes(g, 1, 2)                               # (B, T, C)
    H_ = p['gru_w_hh'].shape[1]
    w_ir, w_iz, w_in = jnp.split(p['gru_w_ih'], 3, axis=0)
    w_hr, w_hz, w_hn = jnp.split(p['gru_w_hh'], 3, axis=0)
    b_ir, b_iz, b_in = jnp.split(p['gru_b_ih'], 3)
    b_hr, b_hz, b_hn = jnp.split(p['gru_b_hh'], 3)
    h_t = jnp.zeros((B, H_), jnp.float32)
    for t in range(T):
        xt = xr[:, t, :]
        r = jax.nn.sigmoid(xt @ w_ir.T + b_ir + h_t @ w_hr.T + b_hr)
        z = jax.nn.sigmoid(xt @ w_iz.T + b_iz + h_t @ w_hz.T + b_hz)
        n = jnp.tanh(xt @ w_in.T + b_in + r * (h_t @ w_hn.T + b_hn))
        h_t = (1.0 - z) * n + z * h_t
    h1 = h_t @ p['fc1_w'].T + p['fc1_b']
    return h1 @ p['fc2_w'].T + p['fc2_b']


# ----------------------- deterministic raw parameter init ----------------------
def init_raw_params(key, in_dim=5, adjust_dim=16, hidden_size=32, n_classes=4,
                    seq_length=19):
    ks = jax.random.split(key, 16)
    C, H, T = adjust_dim, hidden_size, seq_length

    def u(k, shape, s):
        return jax.random.uniform(k, shape, jnp.float32, -s, s)

    kc = 1.0 / math.sqrt(in_dim * 3)
    kg = 1.0 / math.sqrt(H)
    kt = 1.0 / math.sqrt(T)
    return dict(
        conv_w=u(ks[0], (C, in_dim, 3), kc),        # PyTorch Conv1d layout (out,in,k)
        conv_b=u(ks[1], (C,), kc),
        bn_gamma=jax.random.uniform(ks[2], (C,), jnp.float32, 0.5, 1.5),
        bn_beta=0.1 * jax.random.normal(ks[3], (C,), jnp.float32),
        bn_mean=0.1 * jax.random.normal(ks[4], (C,), jnp.float32),
        bn_var=jax.random.uniform(ks[5], (C,), jnp.float32, 0.5, 1.5),
        gat_w=u(ks[6], (T, T), kt),                 # assumed GATv2-style (see TODO)
        gat_a=u(ks[7], (T,), kt),
        gru_w_ih=u(ks[8], (3 * H, C), kg),          # rows [r|z|n], PyTorch GRU layout
        gru_w_hh=u(ks[9], (3 * H, H), kg),
        gru_b_ih=u(ks[10], (3 * H,), kg),
        gru_b_hh=u(ks[11], (3 * H,), kg),
        fc1_w=u(ks[12], (H, H), kg), fc1_b=u(ks[13], (H,), kg),
        fc2_w=u(ks[14], (n_classes, H), kg), fc2_b=u(ks[15], (n_classes,), kg),
    )


if __name__ == "__main__":
    key = jax.random.PRNGKey(0)
    kx, kp = jax.random.split(key)
    B, T, Cin = 2, 19, 5                              # (batch, seq_length, in_dim)
    C, H, NCLS = 16, 32, 4
    x = jax.random.normal(kx, (B, T, Cin), jnp.float32)
    raw = init_raw_params(kp, in_dim=Cin, adjust_dim=C, hidden_size=H,
                          n_classes=NCLS, seq_length=T)
    w_blob, b_blob = prep_params(raw)
    forward = build_forward(Cin, C, T, H, NCLS)

    out = jax.block_until_ready(forward(x, w_blob, b_blob))
    ref = ref_forward(x, raw)
    assert out.shape == (B, NCLS)
    err = jnp.max(jnp.abs(out - ref))
    assert jnp.allclose(out, ref, atol=2e-2, rtol=2e-2), f"max abs err {err}"
    print("KERNEL_OK")
</pallas_src>

<mosaic_0001>
module attributes {stable_mosaic.version = 11 : i64} {
  func.func @_cnn_gat_gru_kernel(%arg0: memref<15x38xbf16, #tpu.memory_space<vmem>>, %arg1: memref<160x128xbf16, #tpu.memory_space<vmem>>, %arg2: memref<24x128xf32, #tpu.memory_space<vmem>>, %arg3: memref<2x4xf32, #tpu.memory_space<vmem>>) attributes {dimension_semantics = [], scalar_prefetch = 0 : i64, scratch_operands = 0 : i64, tpu.core_type = #tpu.core_type<tc>} {
    %c0 = arith.constant 0 : index
    %c0_0 = arith.constant 0 : index
    %0 = vector.load %arg1[%c0, %c0_0] : memref<160x128xbf16, #tpu.memory_space<vmem>>, vector<16x15xbf16>
    %c16 = arith.constant 16 : index
    %c0_1 = arith.constant 0 : index
    %1 = vector.load %arg1[%c16, %c0_1] : memref<160x128xbf16, #tpu.memory_space<vmem>>, vector<19x19xbf16>
    %c48 = arith.constant 48 : index
    %c0_2 = arith.constant 0 : index
    %2 = vector.load %arg1[%c48, %c0_2] : memref<160x128xbf16, #tpu.memory_space<vmem>>, vector<16x96xbf16>
    %c64 = arith.constant 64 : index
    %c0_3 = arith.constant 0 : index
    %3 = vector.load %arg1[%c64, %c0_3] : memref<160x128xbf16, #tpu.memory_space<vmem>>, vector<32x96xbf16>
    %c96 = arith.constant 96 : index
    %c0_4 = arith.constant 0 : index
    %4 = vector.load %arg1[%c96, %c0_4] : memref<160x128xbf16, #tpu.memory_space<vmem>>, vector<32x32xbf16>
    %c128 = arith.constant 128 : index
    %c0_5 = arith.constant 0 : index
    %5 = vector.load %arg1[%c128, %c0_5] : memref<160x128xbf16, #tpu.memory_space<vmem>>, vector<32x4xbf16>
    %c0_6 = arith.constant 0 : index
    %c0_7 = arith.constant 0 : index
    %6 = vector.load %arg2[%c0_6, %c0_7] : memref<24x128xf32, #tpu.memory_space<vmem>>, vector<16x1xf32>
    %c16_8 = arith.constant 16 : index
    %c0_9 = arith.constant 0 : index
    %7 = vector.load %arg2[%c16_8, %c0_9] : memref<24x128xf32, #tpu.memory_space<vmem>>, vector<1x19xf32>
    %8 = vector.shape_cast %7 : vector<1x19xf32> to vector<1x1x19xf32>
    %c17 = arith.constant 17 : index
    %c0_10 = arith.constant 0 : index
    %9 = vector.load %arg2[%c17, %c0_10] : memref<24x128xf32, #tpu.memory_space<vmem>>, vector<1x96xf32>
    %c18 = arith.constant 18 : index
    %c0_11 = arith.constant 0 : index
    %10 = vector.load %arg2[%c18, %c0_11] : memref<24x128xf32, #tpu.memory_space<vmem>>, vector<1x32xf32>
    %11 = vector.shape_cast %10 : vector<1x32xf32> to vector<1x32xf32>
    %12 = vector.broadcast %11 : vector<1x32xf32> to vector<2x32xf32>
    %c19 = arith.constant 19 : index
    %c0_12 = arith.constant 0 : index
    %13 = vector.load %arg2[%c19, %c0_12] : memref<24x128xf32, #tpu.memory_space<vmem>>, vector<1x32xf32>
    %c20 = arith.constant 20 : index
    %c0_13 = arith.constant 0 : index
    %14 = vector.load %arg2[%c20, %c0_13] : memref<24x128xf32, #tpu.memory_space<vmem>>, vector<1x4xf32>
    %c0_14 = arith.constant 0 : index
    %c0_15 = arith.constant 0 : index
    %15 = vector.load %arg0[%c0_14, %c0_15] : memref<15x38xbf16, #tpu.memory_space<vmem>>, vector<15x38xbf16>
    %cst = arith.constant dense<0.000000e+00> : vector<16x38xf32>
    %16 = tpu.matmul %0, %15, %cst {dimension_numbers = #tpu.dot_dimension_numbers<[1], [0], [0], [1], [0, 0, 1, 1], [], []>} : vector<16x15xbf16>, vector<15x38xbf16>, vector<16x38xf32> -> vector<16x38xf32>
    %17 = vector.broadcast %6 : vector<16x1xf32> to vector<16x38xf32>
    %18 = arith.addf %16, %17 : vector<16x38xf32>
    %cst_16 = arith.constant 0.000000e+00 : f32
    %19 = vector.broadcast %cst_16 : f32 to vector<16x38xf32>
    %20 = arith.maximumf %18, %19 : vector<16x38xf32>
    %21 = vector.extract_strided_slice %20 {offsets = [0, 0], sizes = [16, 19], strides = [1, 1]} : vector<16x38xf32> to vector<16x19xf32>
    %22 = vector.extract_strided_slice %20 {offsets = [0, 19], sizes = [16, 19], strides = [1, 1]} : vector<16x38xf32> to vector<16x19xf32>
    %23 = tpu.concatenate %21, %22 in 0 : vector<16x19xf32>, vector<16x19xf32> -> vector<32x19xf32>
    %24 = arith.truncf %23 : vector<32x19xf32> to vector<32x19xbf16>
    %cst_17 = arith.constant dense<0.000000e+00> : vector<32x19xf32>
    %25 = tpu.matmul %24, %1, %cst_17 {dimension_numbers = #tpu.dot_dimension_numbers<[1], [0], [0], [1], [0, 0, 1, 1], [], []>} : vector<32x19xbf16>, vector<19x19xbf16>, vector<32x19xf32> -> vector<32x19xf32>
    %26 = vector.extract_strided_slice %25 {offsets = [0, 0], sizes = [16, 19], strides = [1, 1]} : vector<32x19xf32> to vector<16x19xf32>
    %27 = vector.extract_strided_slice %26 {offsets = [0, 0], sizes = [8, 19], strides = [1, 1]} : vector<16x19xf32> to vector<8x19xf32>
    %28 = vector.shape_cast %27 : vector<8x19xf32> to vector<8x1x19xf32>
    %29 = vector.shape_cast %26 : vector<16x19xf32> to vector<1x16x19xf32>
    %30 = vector.broadcast %28 : vector<8x1x19xf32> to vector<8x16x19xf32>
    %31 = vector.broadcast %29 : vector<1x16x19xf32> to vector<8x16x19xf32>
    %32 = arith.addf %30, %31 : vector<8x16x19xf32>
    %cst_18 = arith.constant 0.000000e+00 : f32
    %33 = vector.broadcast %cst_18 : f32 to vector<8x16x19xf32>
    %34 = arith.cmpf ogt, %32, %33 : vector<8x16x19xf32>
    %cst_19 = arith.constant 2.000000e-01 : f32
    %35 = vector.broadcast %cst_19 : f32 to vector<8x16x19xf32>
    %36 = arith.mulf %35, %32 : vector<8x16x19xf32>
    %37 = arith.select %34, %32, %36 : vector<8x16x19xi1>, vector<8x16x19xf32>
    %38 = vector.broadcast %8 : vector<1x1x19xf32> to vector<8x16x19xf32>
    %39 = arith.mulf %37, %38 : vector<8x16x19xf32>
    %cst_20 = arith.constant dense<0.000000e+00> : vector<8x16xf32>
    %40 = vector.multi_reduction <add>, %39, %cst_20 [2] : vector<8x16x19xf32> to vector<8x16xf32>
    %41 = vector.extract_strided_slice %26 {offsets = [8, 0], sizes = [8, 19], strides = [1, 1]} : vector<16x19xf32> to vector<8x19xf32>
    %42 = vector.shape_cast %41 : vector<8x19xf32> to vector<8x1x19xf32>
    %43 = vector.shape_cast %26 : vector<16x19xf32> to vector<1x16x19xf32>
    %44 = vector.broadcast %42 : vector<8x1x19xf32> to vector<8x16x19xf32>
    %45 = vector.broadcast %43 : vector<1x16x19xf32> to vector<8x16x19xf32>
    %46 = arith.addf %44, %45 : vector<8x16x19xf32>
    %cst_21 = arith.constant 0.000000e+00 : f32
    %47 = vector.broadcast %cst_21 : f32 to vector<8x16x19xf32>
    %48 = arith.cmpf ogt, %46, %47 : vector<8x16x19xf32>
    %cst_22 = arith.constant 2.000000e-01 : f32
    %49 = vector.broadcast %cst_22 : f32 to vector<8x16x19xf32>
    %50 = arith.mulf %49, %46 : vector<8x16x19xf32>
    %51 = arith.select %48, %46, %50 : vector<8x16x19xi1>, vector<8x16x19xf32>
    %52 = vector.broadcast %8 : vector<1x1x19xf32> to vector<8x16x19xf32>
    %53 = arith.mulf %51, %52 : vector<8x16x19xf32>
    %cst_23 = arith.constant dense<0.000000e+00> : vector<8x16xf32>
    %54 = vector.multi_reduction <add>, %53, %cst_23 [2] : vector<8x16x19xf32> to vector<8x16xf32>
    %55 = tpu.concatenate %40, %54 in 0 : vector<8x16xf32>, vector<8x16xf32> -> vector<16x16xf32>
    %cst_24 = arith.constant dense<0xFF800000> : vector<16xf32>
    %56 = vector.multi_reduction <maximumf>, %55, %cst_24 [1] : vector<16x16xf32> to vector<16xf32>
    %57 = vector.shape_cast %56 : vector<16xf32> to vector<16x1xf32>
    %58 = vector.broadcast %57 : vector<16x1xf32> to vector<16x16xf32>
    %59 = arith.subf %55, %58 : vector<16x16xf32>
    %60 = math.exp %59 : vector<16x16xf32>
    %cst_25 = arith.constant dense<0.000000e+00> : vector<16xf32>
    %61 = vector.multi_reduction <add>, %60, %cst_25 [1] : vector<16x16xf32> to vector<16xf32>
    %62 = vector.shape_cast %61 : vector<16xf32> to vector<16x1xf32>
    %63 = tpu.reciprocal %62 {approx = true} : vector<16x1xf32> -> vector<16x1xf32>
    %64 = vector.broadcast %63 : vector<16x1xf32> to vector<16x16xf32>
    %65 = arith.mulf %60, %64 : vector<16x16xf32>
    %66 = arith.truncf %65 : vector<16x16xf32> to vector<16x16xbf16>
    %67 = arith.truncf %26 : vector<16x19xf32> to vector<16x19xbf16>
    %cst_26 = arith.constant dense<0.000000e+00> : vector<16x19xf32>
    %68 = tpu.matmul %66, %67, %cst_26 {dimension_numbers = #tpu.dot_dimension_numbers<[1], [0], [0], [1], [0, 0, 1, 1], [], []>} : vector<16x16xbf16>, vector<16x19xbf16>, vector<16x19xf32> -> vector<16x19xf32>
    %cst_27 = arith.constant 0.000000e+00 : f32
    %69 = vector.broadcast %cst_27 : f32 to vector<16x19xf32>
    %70 = arith.cmpf ogt, %68, %69 : vector<16x19xf32>
    %cst_28 = arith.constant 0.000000e+00 : f32
    %71 = vector.broadcast %cst_28 : f32 to vector<16x19xf32>
    %72 = arith.minimumf %68, %71 : vector<16x19xf32>
    %73 = math.exp %72 : vector<16x19xf32>
    %cst_29 = arith.constant 1.000000e+00 : f32
    %74 = vector.broadcast %cst_29 : f32 to vector<16x19xf32>
    %75 = arith.subf %73, %74 : vector<16x19xf32>
    %76 = arith.select %70, %68, %75 : vector<16x19xi1>, vector<16x19xf32>
    %77 = tpu.transpose %76, [1, 0] : vector<16x19xf32> -> vector<19x16xf32>
    %78 = vector.extract_strided_slice %25 {offsets = [16, 0], sizes = [16, 19], strides = [1, 1]} : vector<32x19xf32> to vector<16x19xf32>
    %79 = vector.extract_strided_slice %78 {offsets = [0, 0], sizes = [8, 19], strides = [1, 1]} : vector<16x19xf32> to vector<8x19xf32>
    %80 = vector.shape_cast %79 : vector<8x19xf32> to vector<8x1x19xf32>
    %81 = vector.shape_cast %78 : vector<16x19xf32> to vector<1x16x19xf32>
    %82 = vector.broadcast %80 : vector<8x1x19xf32> to vector<8x16x19xf32>
    %83 = vector.broadcast %81 : vector<1x16x19xf32> to vector<8x16x19xf32>
    %84 = arith.addf %82, %83 : vector<8x16x19xf32>
    %cst_30 = arith.constant 0.000000e+00 : f32
    %85 = vector.broadcast %cst_30 : f32 to vector<8x16x19xf32>
    %86 = arith.cmpf ogt, %84, %85 : vector<8x16x19xf32>
    %cst_31 = arith.constant 2.000000e-01 : f32
    %87 = vector.broadcast %cst_31 : f32 to vector<8x16x19xf32>
    %88 = arith.mulf %87, %84 : vector<8x16x19xf32>
    %89 = arith.select %86, %84, %88 : vector<8x16x19xi1>, vector<8x16x19xf32>
    %90 = vector.broadcast %8 : vector<1x1x19xf32> to vector<8x16x19xf32>
    %91 = arith.mulf %89, %90 : vector<8x16x19xf32>
    %cst_32 = arith.constant dense<0.000000e+00> : vector<8x16xf32>
    %92 = vector.multi_reduction <add>, %91, %cst_32 [2] : vector<8x16x19xf32> to vector<8x16xf32>
    %93 = vector.extract_strided_slice %78 {offsets = [8, 0], sizes = [8, 19], strides = [1, 1]} : vector<16x19xf32> to vector<8x19xf32>
    %94 = vector.shape_cast %93 : vector<8x19xf32> to vector<8x1x19xf32>
    %95 = vector.shape_cast %78 : vector<16x19xf32> to vector<1x16x19xf32>
    %96 = vector.broadcast %94 : vector<8x1x19xf32> to vector<8x16x19xf32>
    %97 = vector.broadcast %95 : vector<1x16x19xf32> to vector<8x16x19xf32>
    %98 = arith.addf %96, %97 : vector<8x16x19xf32>
    %cst_33 = arith.constant 0.000000e+00 : f32
    %99 = vector.broadcast %cst_33 : f32 to vector<8x16x19xf32>
    %100 = arith.cmpf ogt, %98, %99 : vector<8x16x19xf32>
    %cst_34 = arith.constant 2.000000e-01 : f32
    %101 = vector.broadcast %cst_34 : f32 to vector<8x16x19xf32>
    %102 = arith.mulf %101, %98 : vector<8x16x19xf32>
    %103 = arith.select %100, %98, %102 : vector<8x16x19xi1>, vector<8x16x19xf32>
    %104 = vector.broadcast %8 : vector<1x1x19xf32> to vector<8x16x19xf32>
    %105 = arith.mulf %103, %104 : vector<8x16x19xf32>
    %cst_35 = arith.constant dense<0.000000e+00> : vector<8x16xf32>
    %106 = vector.multi_reduction <add>, %105, %cst_35 [2] : vector<8x16x19xf32> to vector<8x16xf32>
    %107 = tpu.concatenate %92, %106 in 0 : vector<8x16xf32>, vector<8x16xf32> -> vector<16x16xf32>
    %cst_36 = arith.constant dense<0xFF800000> : vector<16xf32>
    %108 = vector.multi_reduction <maximumf>, %107, %cst_36 [1] : vector<16x16xf32> to vector<16xf32>
    %109 = vector.shape_cast %108 : vector<16xf32> to vector<16x1xf32>
    %110 = vector.broadcast %109 : vector<16x1xf32> to vector<16x16xf32>
    %111 = arith.subf %107, %110 : vector<16x16xf32>
    %112 = math.exp %111 : vector<16x16xf32>
    %cst_37 = arith.constant dense<0.000000e+00> : vector<16xf32>
    %113 = vector.multi_reduction <add>, %112, %cst_37 [1] : vector<16x16xf32> to vector<16xf32>
    %114 = vector.shape_cast %113 : vector<16xf32> to vector<16x1xf32>
    %115 = tpu.reciprocal %114 {approx = true} : vector<16x1xf32> -> vector<16x1xf32>
    %116 = vector.broadcast %115 : vector<16x1xf32> to vector<16x16xf32>
    %117 = arith.mulf %112, %116 : vector<16x16xf32>
    %118 = arith.truncf %117 : vector<16x16xf32> to vector<16x16xbf16>
    %119 = arith.truncf %78 : vector<16x19xf32> to vector<16x19xbf16>
    %cst_38 = arith.constant dense<0.000000e+00> : vector<16x19xf32>
    %120 = tpu.matmul %118, %119, %cst_38 {dimension_numbers = #tpu.dot_dimension_numbers<[1], [0], [0], [1], [0, 0, 1, 1], [], []>} : vector<16x16xbf16>, vector<16x19xbf16>, vector<16x19xf32> -> vector<16x19xf32>
    %cst_39 = arith.constant 0.000000e+00 : f32
    %121 = vector.broadcast %cst_39 : f32 to vector<16x19xf32>
    %122 = arith.cmpf ogt, %120, %121 : vector<16x19xf32>
    %cst_40 = arith.constant 0.000000e+00 : f32
    %123 = vector.broadcast %cst_40 : f32 to vector<16x19xf32>
    %124 = arith.minimumf %120, %123 : vector<16x19xf32>
    %125 = math.exp %124 : vector<16x19xf32>
    %cst_41 = arith.constant 1.000000e+00 : f32
    %126 = vector.broadcast %cst_41 : f32 to vector<16x19xf32>
    %127 = arith.subf %125, %126 : vector<16x19xf32>
    %128 = arith.select %122, %120, %127 : vector<16x19xi1>, vector<16x19xf32>
    %129 = tpu.transpose %128, [1, 0] : vector<16x19xf32> -> vector<19x16xf32>
    %130 = tpu.concatenate %77, %129 in 0 : vector<19x16xf32>, vector<19x16xf32> -> vector<38x16xf32>
    %131 = arith.truncf %130 : vector<38x16xf32> to vector<38x16xbf16>
    %cst_42 = arith.constant dense<0.000000e+00> : vector<38x96xf32>
    %132 = tpu.matmul %131, %2, %cst_42 {dimension_numbers = #tpu.dot_dimension_numbers<[1], [0], [0], [1], [0, 0, 1, 1], [], []>} : vector<38x16xbf16>, vector<16x96xbf16>, vector<38x96xf32> -> vector<38x96xf32>
    %133 = vector.broadcast %9 : vector<1x96xf32> to vector<38x96xf32>
    %134 = arith.addf %132, %133 : vector<38x96xf32>
    %cst_43 = arith.constant 0.000000e+00 : f32
    %135 = vector.broadcast %cst_43 : f32 to vector<2x32xf32>
    %136 = vector.extract_strided_slice %134 {offsets = [0, 0], sizes = [1, 96], strides = [1, 1]} : vector<38x96xf32> to vector<1x96xf32>
    %137 = vector.extract_strided_slice %134 {offsets = [19, 0], sizes = [1, 96], strides = [1, 1]} : vector<38x96xf32> to vector<1x96xf32>
    %138 = tpu.concatenate %136, %137 in 0 : vector<1x96xf32>, vector<1x96xf32> -> vector<2x96xf32>
    %139 = arith.truncf %135 : vector<2x32xf32> to vector<2x32xbf16>
    %cst_44 = arith.constant dense<0.000000e+00> : vector<2x96xf32>
    %140 = tpu.matmul %139, %3, %cst_44 {dimension_numbers = #tpu.dot_dimension_numbers<[1], [0], [0], [1], [0, 0, 1, 1], [], []>} : vector<2x32xbf16>, vector<32x96xbf16>, vector<2x96xf32> -> vector<2x96xf32>
    %141 = vector.extract_strided_slice %138 {offsets = [0, 0], sizes = [2, 64], strides = [1, 1]} : vector<2x96xf32> to vector<2x64xf32>
    %142 = vector.extract_strided_slice %140 {offsets = [0, 0], sizes = [2, 64], strides = [1, 1]} : vector<2x96xf32> to vector<2x64xf32>
    %143 = arith.addf %141, %142 : vector<2x64xf32>
    %144 = arith.negf %143 : vector<2x64xf32>
    %145 = math.exp %144 : vector<2x64xf32>
    %cst_45 = arith.constant 1.000000e+00 : f32
    %146 = vector.broadcast %cst_45 : f32 to vector<2x64xf32>
    %147 = arith.addf %146, %145 : vector<2x64xf32>
    %148 = arith.divf %146, %147 : vector<2x64xf32>
    %149 = vector.extract_strided_slice %148 {offsets = [0, 0], sizes = [2, 32], strides = [1, 1]} : vector<2x64xf32> to vector<2x32xf32>
    %150 = vector.extract_strided_slice %148 {offsets = [0, 32], sizes = [2, 32], strides = [1, 1]} : vector<2x64xf32> to vector<2x32xf32>
    %151 = vector.extract_strided_slice %138 {offsets = [0, 64], sizes = [2, 32], strides = [1, 1]} : vector<2x96xf32> to vector<2x32xf32>
    %152 = vector.extract_strided_slice %140 {offsets = [0, 64], sizes = [2, 32], strides = [1, 1]} : vector<2x96xf32> to vector<2x32xf32>
    %153 = arith.addf %152, %12 : vector<2x32xf32>
    %154 = arith.mulf %149, %153 : vector<2x32xf32>
    %155 = arith.addf %151, %154 : vector<2x32xf32>
    %156 = math.tanh %155 : vector<2x32xf32>
    %cst_46 = arith.constant 1.000000e+00 : f32
    %157 = vector.broadcast %cst_46 : f32 to vector<2x32xf32>
    %158 = arith.subf %157, %150 : vector<2x32xf32>
    %159 = arith.mulf %158, %156 : vector<2x32xf32>
    %160 = arith.mulf %150, %135 : vector<2x32xf32>
    %161 = arith.addf %159, %160 : vector<2x32xf32>
    %162 = vector.extract_strided_slice %134 {offsets = [1, 0], sizes = [1, 96], strides = [1, 1]} : vector<38x96xf32> to vector<1x96xf32>
    %163 = vector.extract_strided_slice %134 {offsets = [20, 0], sizes = [1, 96], strides = [1, 1]} : vector<38x96xf32> to vector<1x96xf32>
    %164 = tpu.concatenate %162, %163 in 0 : vector<1x96xf32>, vector<1x96xf32> -> vector<2x96xf32>
    %165 = arith.truncf %161 : vector<2x32xf32> to vector<2x32xbf16>
    %cst_47 = arith.constant dense<0.000000e+00> : vector<2x96xf32>
    %166 = tpu.matmul %165, %3, %cst_47 {dimension_numbers = #tpu.dot_dimension_numbers<[1], [0], [0], [1], [0, 0, 1, 1], [], []>} : vector<2x32xbf16>, vector<32x96xbf16>, vector<2x96xf32> -> vector<2x96xf32>
    %167 = vector.extract_strided_slice %164 {offsets = [0, 0], sizes = [2, 64], strides = [1, 1]} : vector<2x96xf32> to vector<2x64xf32>
    %168 = vector.extract_strided_slice %166 {offsets = [0, 0], sizes = [2, 64], strides = [1, 1]} : vector<2x96xf32> to vector<2x64xf32>
    %169 = arith.addf %167, %168 : vector<2x64xf32>
    %170 = arith.negf %169 : vector<2x64xf32>
    %171 = math.exp %170 : vector<2x64xf32>
    %cst_48 = arith.constant 1.000000e+00 : f32
    %172 = vector.broadcast %cst_48 : f32 to vector<2x64xf32>
    %173 = arith.addf %172, %171 : vector<2x64xf32>
    %174 = arith.divf %172, %173 : vector<2x64xf32>
    %175 = vector.extract_strided_slice %174 {offsets = [0, 0], sizes = [2, 32], strides = [1, 1]} : vector<2x64xf32> to vector<2x32xf32>
    %176 = vector.extract_strided_slice %174 {offsets = [0, 32], sizes = [2, 32], strides = [1, 1]} : vector<2x64xf32> to vector<2x32xf32>
    %177 = vector.extract_strided_slice %164 {offsets = [0, 64], sizes = [2, 32], strides = [1, 1]} : vector<2x96xf32> to vector<2x32xf32>
    %178 = vector.extract_strided_slice %166 {offsets = [0, 64], sizes = [2, 32], strides = [1, 1]} : vector<2x96xf32> to vector<2x32xf32>
    %179 = arith.addf %178, %12 : vector<2x32xf32>
    %180 = arith.mulf %175, %179 : vector<2x32xf32>
    %181 = arith.addf %177, %180 : vector<2x32xf32>
    %182 = math.tanh %181 : vector<2x32xf32>
    %cst_49 = arith.constant 1.000000e+00 : f32
    %183 = vector.broadcast %cst_49 : f32 to vector<2x32xf32>
    %184 = arith.subf %183, %176 : vector<2x32xf32>
    %185 = arith.mulf %184, %182 : vector<2x32xf32>
    %186 = arith.mulf %176, %161 : vector<2x32xf32>
    %187 = arith.addf %185, %186 : vector<2x32xf32>
    %188 = vector.extract_strided_slice %134 {offsets = [2, 0], sizes = [1, 96], strides = [1, 1]} : vector<38x96xf32> to vector<1x96xf32>
    %189 = vector.extract_strided_slice %134 {offsets = [21, 0], sizes = [1, 96], strides = [1, 1]} : vector<38x96xf32> to vector<1x96xf32>
    %190 = tpu.concatenate %188, %189 in 0 : vector<1x96xf32>, vector<1x96xf32> -> vector<2x96xf32>
    %191 = arith.truncf %187 : vector<2x32xf32> to vector<2x32xbf16>
    %cst_50 = arith.constant dense<0.000000e+00> : vector<2x96xf32>
    %192 = tpu.matmul %191, %3, %cst_50 {dimension_numbers = #tpu.dot_dimension_numbers<[1], [0], [0], [1], [0, 0, 1, 1], [], []>} : vector<2x32xbf16>, vector<32x96xbf16>, vector<2x96xf32> -> vector<2x96xf32>
    %193 = vector.extract_strided_slice %190 {offsets = [0, 0], sizes = [2, 64], strides = [1, 1]} : vector<2x96xf32> to vector<2x64xf32>
    %194 = vector.extract_strided_slice %192 {offsets = [0, 0], sizes = [2, 64], strides = [1, 1]} : vector<2x96xf32> to vector<2x64xf32>
    %195 = arith.addf %193, %194 : vector<2x64xf32>
    %196 = arith.negf %195 : vector<2x64xf32>
    %197 = math.exp %196 : vector<2x64xf32>
    %cst_51 = arith.constant 1.000000e+00 : f32
    %198 = vector.broadcast %cst_51 : f32 to vector<2x64xf32>
    %199 = arith.addf %198, %197 : vector<2x64xf32>
    %200 = arith.divf %198, %199 : vector<2x64xf32>
    %201 = vector.extract_strided_slice %200 {offsets = [0, 0], sizes = [2, 32], strides = [1, 1]} : vector<2x64xf32> to vector<2x32xf32>
    %202 = vector.extract_strided_slice %200 {offsets = [0, 32], sizes = [2, 32], strides = [1, 1]} : vector<2x64xf32> to vector<2x32xf32>
    %203 = vector.extract_strided_slice %190 {offsets = [0, 64], sizes = [2, 32], strides = [1, 1]} : vector<2x96xf32> to vector<2x32xf32>
    %204 = vector.extract_strided_slice %192 {offsets = [0, 64], sizes = [2, 32], strides = [1, 1]} : vector<2x96xf32> to vector<2x32xf32>
    %205 = arith.addf %204, %12 : vector<2x32xf32>
    %206 = arith.mulf %201, %205 : vector<2x32xf32>
    %207 = arith.addf %203, %206 : vector<2x32xf32>
    %208 = math.tanh %207 : vector<2x32xf32>
    %cst_52 = arith.constant 1.000000e+00 : f32
    %209 = vector.broadcast %cst_52 : f32 to vector<2x32xf32>
    %210 = arith.subf %209, %202 : vector<2x32xf32>
    %211 = arith.mulf %210, %208 : vector<2x32xf32>
    %212 = arith.mulf %202, %187 : vector<2x32xf32>
    %213 = arith.addf %211, %212 : vector<2x32xf32>
    %214 = vector.extract_strided_slice %134 {offsets = [3, 0], sizes = [1, 96], strides = [1, 1]} : vector<38x96xf32> to vector<1x96xf32>
    %215 = vector.extract_strided_slice %134 {offsets = [22, 0], sizes = [1, 96], strides = [1, 1]} : vector<38x96xf32> to vector<1x96xf32>
    %216 = tpu.concatenate %214, %215 in 0 : vector<1x96xf32>, vector<1x96xf32> -> vector<2x96xf32>
    %217 = arith.truncf %213 : vector<2x32xf32> to vector<2x32xbf16>
    %cst_53 = arith.constant dense<0.000000e+00> : vector<2x96xf32>
    %218 = tpu.matmul %217, %3, %cst_53 {dimension_numbers = #tpu.dot_dimension_numbers<[1], [0], [0], [1], [0, 0, 1, 1], [], []>} : vector<2x32xbf16>, vector<32x96xbf16>, vector<2x96xf32> -> vector<2x96xf32>
    %219 = vector.extract_strided_slice %216 {offsets = [0, 0], sizes = [2, 64], strides = [1, 1]} : vector<2x96xf32> to vector<2x64xf32>
    %220 = vector.extract_strided_slice %218 {offsets = [0, 0], sizes = [2, 64], strides = [1, 1]} : vector<2x96xf32> to vector<2x64xf32>
    %221 = arith.addf %219, %220 : vector<2x64xf32>
    %222 = arith.negf %221 : vector<2x64xf32>
    %223 = math.exp %222 : vector<2x64xf32>
    %cst_54 = arith.constant 1.000000e+00 : f32
    %224 = vector.broadcast %cst_54 : f32 to vector<2x64xf32>
    %225 = arith.addf %224, %223 : vector<2x64xf32>
    %226 = arith.divf %224, %225 : vector<2x64xf32>
    %227 = vector.extract_strided_slice %226 {offsets = [0, 0], sizes = [2, 32], strides = [1, 1]} : vector<2x64xf32> to vector<2x32xf32>
    %228 = vector.extract_strided_slice %226 {offsets = [0, 32], sizes = [2, 32], strides = [1, 1]} : vector<2x64xf32> to vector<2x32xf32>
    %229 = vector.extract_strided_slice %216 {offsets = [0, 64], sizes = [2, 32], strides = [1, 1]} : vector<2x96xf32> to vector<2x32xf32>
    %230 = vector.extract_strided_slice %218 {offsets = [0, 64], sizes = [2, 32], strides = [1, 1]} : vector<2x96xf32> to vector<2x32xf32>
    %231 = arith.addf %230, %12 : vector<2x32xf32>
    %232 = arith.mulf %227, %231 : vector<2x32xf32>
    %233 = arith.addf %229, %232 : vector<2x32xf32>
    %234 = math.tanh %233 : vector<2x32xf32>
    %cst_55 = arith.constant 1.000000e+00 : f32
    %235 = vector.broadcast %cst_55 : f32 to vector<2x32xf32>
    %236 = arith.subf %235, %228 : vector<2x32xf32>
    %237 = arith.mulf %236, %234 : vector<2x32xf32>
    %238 = arith.mulf %228, %213 : vector<2x32xf32>
    %239 = arith.addf %237, %238 : vector<2x32xf32>
    %240 = vector.extract_strided_slice %134 {offsets = [4, 0], sizes = [1, 96], strides = [1, 1]} : vector<38x96xf32> to vector<1x96xf32>
    %241 = vector.extract_strided_slice %134 {offsets = [23, 0], sizes = [1, 96], strides = [1, 1]} : vector<38x96xf32> to vector<1x96xf32>
    %242 = tpu.concatenate %240, %241 in 0 : vector<1x96xf32>, vector<1x96xf32> -> vector<2x96xf32>
    %243 = arith.truncf %239 : vector<2x32xf32> to vector<2x32xbf16>
    %cst_56 = arith.constant dense<0.000000e+00> : vector<2x96xf32>
    %244 = tpu.matmul %243, %3, %cst_56 {dimension_numbers = #tpu.dot_dimension_numbers<[1], [0], [0], [1], [0, 0, 1, 1], [], []>} : vector<2x32xbf16>, vector<32x96xbf16>, vector<2x96xf32> -> vector<2x96xf32>
    %245 = vector.extract_strided_slice %242 {offsets = [0, 0], sizes = [2, 64], strides = [1, 1]} : vector<2x96xf32> to vector<2x64xf32>
    %246 = vector.extract_strided_slice %244 {offsets = [0, 0], sizes = [2, 64], strides = [1, 1]} : vector<2x96xf32> to vector<2x64xf32>
    %247 = arith.addf %245, %246 : vector<2x64xf32>
    %248 = arith.negf %247 : vector<2x64xf32>
    %249 = math.exp %248 : vector<2x64xf32>
    %cst_57 = arith.constant 1.000000e+00 : f32
    %250 = vector.broadcast %cst_57 : f32 to vector<2x64xf32>
    %251 = arith.addf %250, %249 : vector<2x64xf32>
    %252 = arith.divf %250, %251 : vector<2x64xf32>
    %253 = vector.extract_strided_slice %252 {offsets = [0, 0], sizes = [2, 32], strides = [1, 1]} : vector<2x64xf32> to vector<2x32xf32>
    %254 = vector.extract_strided_slice %252 {offsets = [0, 32], sizes = [2, 32], strides = [1, 1]} : vector<2x64xf32> to vector<2x32xf32>
    %255 = vector.extract_strided_slice %242 {offsets = [0, 64], sizes = [2, 32], strides = [1, 1]} : vector<2x96xf32> to vector<2x32xf32>
    %256 = vector.extract_strided_slice %244 {offsets = [0, 64], sizes = [2, 32], strides = [1, 1]} : vector<2x96xf32> to vector<2x32xf32>
    %257 = arith.addf %256, %12 : vector<2x32xf32>
    %258 = arith.mulf %253, %257 : vector<2x32xf32>
    %259 = arith.addf %255, %258 : vector<2x32xf32>
    %260 = math.tanh %259 : vector<2x32xf32>
    %cst_58 = arith.constant 1.000000e+00 : f32
    %261 = vector.broadcast %cst_58 : f32 to vector<2x32xf32>
    %262 = arith.subf %261, %254 : vector<2x32xf32>
    %263 = arith.mulf %262, %260 : vector<2x32xf32>
    %264 = arith.mulf %254, %239 : vector<2x32xf32>
    %265 = arith.addf %263, %264 : vector<2x32xf32>
    %266 = vector.extract_strided_slice %134 {offsets = [5, 0], sizes = [1, 96], strides = [1, 1]} : vector<38x96xf32> to vector<1x96xf32>
    %267 = vector.extract_strided_slice %134 {offsets = [24, 0], sizes = [1, 96], strides = [1, 1]} : vector<38x96xf32> to vector<1x96xf32>
    %268 = tpu.concatenate %266, %267 in 0 : vector<1x96xf32>, vector<1x96xf32> -> vector<2x96xf32>
    %269 = arith.truncf %265 : vector<2x32xf32> to vector<2x32xbf16>
    %cst_59 = arith.constant dense<0.000000e+00> : vector<2x96xf32>
    %270 = tpu.matmul %269, %3, %cst_59 {dimension_numbers = #tpu.dot_dimension_numbers<[1], [0], [0], [1], [0, 0, 1, 1], [], []>} : vector<2x32xbf16>, vector<32x96xbf16>, vector<2x96xf32> -> vector<2x96xf32>
    %271 = vector.extract_strided_slice %268 {offsets = [0, 0], sizes = [2, 64], strides = [1, 1]} : vector<2x96xf32> to vector<2x64xf32>
    %272 = vector.extract_strided_slice %270 {offsets = [0, 0], sizes = [2, 64], strides = [1, 1]} : vector<2x96xf32> to vector<2x64xf32>
    %273 = arith.addf %271, %272 : vector<2x64xf32>
    %274 = arith.negf %273 : vector<2x64xf32>
    %275 = math.exp %274 : vector<2x64xf32>
    %cst_60 = arith.constant 1.000000e+00 : f32
    %276 = vector.broadcast %cst_60 : f32 to vector<2x64xf32>
    %277 = arith.addf %276, %275 : vector<2x64xf32>
    %278 = arith.divf %276, %277 : vector<2x64xf32>
    %279 = vector.extract_strided_slice %278 {offsets = [0, 0], sizes = [2, 32], strides = [1, 1]} : vector<2x64xf32> to vector<2x32xf32>
    %280 = vector.extract_strided_slice %278 {offsets = [0, 32], sizes = [2, 32], strides = [1, 1]} : vector<2x64xf32> to vector<2x32xf32>
    %281 = vector.extract_strided_slice %268 {offsets = [0, 64], sizes = [2, 32], strides = [1, 1]} : vector<2x96xf32> to vector<2x32xf32>
    %282 = vector.extract_strided_slice %270 {offsets = [0, 64], sizes = [2, 32], strides = [1, 1]} : vector<2x96xf32> to vector<2x32xf32>
    %283 = arith.addf %282, %12 : vector<2x32xf32>
    %284 = arith.mulf %279, %283 : vector<2x32xf32>
    %285 = arith.addf %281, %284 : vector<2x32xf32>
    %286 = math.tanh %285 : vector<2x32xf32>
    %cst_61 = arith.constant 1.000000e+00 : f32
    %287 = vector.broadcast %cst_61 : f32 to vector<2x32xf32>
    %288 = arith.subf %287, %280 : vector<2x32xf32>
    %289 = arith.mulf %288, %286 : vector<2x32xf32>
    %290 = arith.mulf %280, %265 : vector<2x32xf32>
    %291 = arith.addf %289, %290 : vector<2x32xf32>
    %292 = vector.extract_strided_slice %134 {offsets = [6, 0], sizes = [1, 96], strides = [1, 1]} : vector<38x96xf32> to vector<1x96xf32>
    %293 = vector.extract_strided_slice %134 {offsets = [25, 0], sizes = [1, 96], strides = [1, 1]} : vector<38x96xf32> to vector<1x96xf32>
    %294 = tpu.concatenate %292, %293 in 0 : vector<1x96xf32>, vector<1x96xf32> -> vector<2x96xf32>
    %295 = arith.truncf %291 : vector<2x32xf32> to vector<2x32xbf16>
    %cst_62 = arith.constant dense<0.000000e+00> : vector<2x96xf32>
    %296 = tpu.matmul %295, %3, %cst_62 {dimension_numbers = #tpu.dot_dimension_numbers<[1], [0], [0], [1], [0, 0, 1, 1], [], []>} : vector<2x32xbf16>, vector<32x96xbf16>, vector<2x96xf32> -> vector<2x96xf32>
    %297 = vector.extract_strided_slice %294 {offsets = [0, 0], sizes = [2, 64], strides = [1, 1]} : vector<2x96xf32> to vector<2x64xf32>
    %298 = vector.extract_strided_slice %296 {offsets = [0, 0], sizes = [2, 64], strides = [1, 1]} : vector<2x96xf32> to vector<2x64xf32>
    %299 = arith.addf %297, %298 : vector<2x64xf32>
    %300 = arith.negf %299 : vector<2x64xf32>
    %301 = math.exp %300 : vector<2x64xf32>
    %cst_63 = arith.constant 1.000000e+00 : f32
    %302 = vector.broadcast %cst_63 : f32 to vector<2x64xf32>
    %303 = arith.addf %302, %301 : vector<2x64xf32>
    %304 = arith.divf %302, %303 : vector<2x64xf32>
    %305 = vector.extract_strided_slice %304 {offsets = [0, 0], sizes = [2, 32], strides = [1, 1]} : vector<2x64xf32> to vector<2x32xf32>
    %306 = vector.extract_strided_slice %304 {offsets = [0, 32], sizes = [2, 32], strides = [1, 1]} : vector<2x64xf32> to vector<2x32xf32>
    %307 = vector.extract_strided_slice %294 {offsets = [0, 64], sizes = [2, 32], strides = [1, 1]} : vector<2x96xf32> to vector<2x32xf32>
    %308 = vector.extract_strided_slice %296 {offsets = [0, 64], sizes = [2, 32], strides = [1, 1]} : vector<2x96xf32> to vector<2x32xf32>
    %309 = arith.addf %308, %12 : vector<2x32xf32>
    %310 = arith.mulf %305, %309 : vector<2x32xf32>
    %311 = arith.addf %307, %310 : vector<2x32xf32>
    %312 = math.tanh %311 : vector<2x32xf32>
    %cst_64 = arith.constant 1.000000e+00 : f32
    %313 = vector.broadcast %cst_64 : f32 to vector<2x32xf32>
    %314 = arith.subf %313, %306 : vector<2x32xf32>
    %315 = arith.mulf %314, %312 : vector<2x32xf32>
    %316 = arith.mulf %306, %291 : vector<2x32xf32>
    %317 = arith.addf %315, %316 : vector<2x32xf32>
    %318 = vector.extract_strided_slice %134 {offsets = [7, 0], sizes = [1, 96], strides = [1, 1]} : vector<38x96xf32> to vector<1x96xf32>
    %319 = vector.extract_strided_slice %134 {offsets = [26, 0], sizes = [1, 96], strides = [1, 1]} : vector<38x96xf32> to vector<1x96xf32>
    %320 = tpu.concatenate %318, %319 in 0 : vector<1x96xf32>, vector<1x96xf32> -> vector<2x96xf32>
    %321 = arith.truncf %317 : vector<2x32xf32> to vector<2x32xbf16>
    %cst_65 = arith.constant dense<0.000000e+00> : vector<2x96xf32>
    %322 = tpu.matmul %321, %3, %cst_65 {dimension_numbers = #tpu.dot_dimension_numbers<[1], [0], [0], [1], [0, 0, 1, 1], [], []>} : vector<2x32xbf16>, vector<32x96xbf16>, vector<2x96xf32> -> vector<2x96xf32>
    %323 = vector.extract_strided_slice %320 {offsets = [0, 0], sizes = [2, 64], strides = [1, 1]} : vector<2x96xf32> to vector<2x64xf32>
    %324 = vector.extract_strided_slice %322 {offsets = [0, 0], sizes = [2, 64], strides = [1, 1]} : vector<2x96xf32> to vector<2x64xf32>
    %325 = arith.addf %323, %324 : vector<2x64xf32>
    %326 = arith.negf %325 : vector<2x64xf32>
    %327 = math.exp %326 : vector<2x64xf32>
    %cst_66 = arith.constant 1.000000e+00 : f32
    %328 = vector.broadcast %cst_66 : f32 to vector<2x64xf32>
    %329 = arith.addf %328, %327 : vector<2x64xf32>
    %330 = arith.divf %328, %329 : vector<2x64xf32>
    %331 = vector.extract_strided_slice %330 {offsets = [0, 0], sizes = [2, 32], strides = [1, 1]} : vector<2x64xf32> to vector<2x32xf32>
    %332 = vector.extract_strided_slice %330 {offsets = [0, 32], sizes = [2, 32], strides = [1, 1]} : vector<2x64xf32> to vector<2x32xf32>
    %333 = vector.extract_strided_slice %320 {offsets = [0, 64], sizes = [2, 32], strides = [1, 1]} : vector<2x96xf32> to vector<2x32xf32>
    %334 = vector.extract_strided_slice %322 {offsets = [0, 64], sizes = [2, 32], strides = [1, 1]} : vector<2x96xf32> to vector<2x32xf32>
    %335 = arith.addf %334, %12 : vector<2x32xf32>
    %336 = arith.mulf %331, %335 : vector<2x32xf32>
    %337 = arith.addf %333, %336 : vector<2x32xf32>
    %338 = math.tanh %337 : vector<2x32xf32>
    %cst_67 = arith.constant 1.000000e+00 : f32
    %339 = vector.broadcast %cst_67 : f32 to vector<2x32xf32>
    %340 = arith.subf %339, %332 : vector<2x32xf32>
    %341 = arith.mulf %340, %338 : vector<2x32xf32>
    %342 = arith.mulf %332, %317 : vector<2x32xf32>
    %343 = arith.addf %341, %342 : vector<2x32xf32>
    %344 = vector.extract_strided_slice %134 {offsets = [8, 0], sizes = [1, 96], strides = [1, 1]} : vector<38x96xf32> to vector<1x96xf32>
    %345 = vector.extract_strided_slice %134 {offsets = [27, 0], sizes = [1, 96], strides = [1, 1]} : vector<38x96xf32> to vector<1x96xf32>
    %346 = tpu.concatenate %344, %345 in 0 : vector<1x96xf32>, vector<1x96xf32> -> vector<2x96xf32>
    %347 = arith.truncf %343 : vector<2x32xf32> to vector<2x32xbf16>
    %cst_68 = arith.constant dense<0.000000e+00> : vector<2x96xf32>
    %348 = tpu.matmul %347, %3, %cst_68 {dimension_numbers = #tpu.dot_dimension_numbers<[1], [0], [0], [1], [0, 0, 1, 1], [], []>} : vector<2x32xbf16>, vector<32x96xbf16>, vector<2x96xf32> -> vector<2x96xf32>
    %349 = vector.extract_strided_slice %346 {offsets = [0, 0], sizes = [2, 64], strides = [1, 1]} : vector<2x96xf32> to vector<2x64xf32>
    %350 = vector.extract_strided_slice %348 {offsets = [0, 0], sizes = [2, 64], strides = [1, 1]} : vector<2x96xf32> to vector<2x64xf32>
    %351 = arith.addf %349, %350 : vector<2x64xf32>
    %352 = arith.negf %351 : vector<2x64xf32>
    %353 = math.exp %352 : vector<2x64xf32>
    %cst_69 = arith.constant 1.000000e+00 : f32
    %354 = vector.broadcast %cst_69 : f32 to vector<2x64xf32>
    %355 = arith.addf %354, %353 : vector<2x64xf32>
    %356 = arith.divf %354, %355 : vector<2x64xf32>
    %357 = vector.extract_strided_slice %356 {offsets = [0, 0], sizes = [2, 32], strides = [1, 1]} : vector<2x64xf32> to vector<2x32xf32>
    %358 = vector.extract_strided_slice %356 {offsets = [0, 32], sizes = [2, 32], strides = [1, 1]} : vector<2x64xf32> to vector<2x32xf32>
    %359 = vector.extract_strided_slice %346 {offsets = [0, 64], sizes = [2, 32], strides = [1, 1]} : vector<2x96xf32> to vector<2x32xf32>
    %360 = vector.extract_strided_slice %348 {offsets = [0, 64], sizes = [2, 32], strides = [1, 1]} : vector<2x96xf32> to vector<2x32xf32>
    %361 = arith.addf %360, %12 : vector<2x32xf32>
    %362 = arith.mulf %357, %361 : vector<2x32xf32>
    %363 = arith.addf %359, %362 : vector<2x32xf32>
    %364 = math.tanh %363 : vector<2x32xf32>
    %cst_70 = arith.constant 1.000000e+00 : f32
    %365 = vector.broadcast %cst_70 : f32 to vector<2x32xf32>
    %366 = arith.subf %365, %358 : vector<2x32xf32>
    %367 = arith.mulf %366, %364 : vector<2x32xf32>
    %368 = arith.mulf %358, %343 : vector<2x32xf32>
    %369 = arith.addf %367, %368 : vector<2x32xf32>
    %370 = vector.extract_strided_slice %134 {offsets = [9, 0], sizes = [1, 96], strides = [1, 1]} : vector<38x96xf32> to vector<1x96xf32>
    %371 = vector.extract_strided_slice %134 {offsets = [28, 0], sizes = [1, 96], strides = [1, 1]} : vector<38x96xf32> to vector<1x96xf32>
    %372 = tpu.concatenate %370, %371 in 0 : vector<1x96xf32>, vector<1x96xf32> -> vector<2x96xf32>
    %373 = arith.truncf %369 : vector<2x32xf32> to vector<2x32xbf16>
    %cst_71 = arith.constant dense<0.000000e+00> : vector<2x96xf32>
    %374 = tpu.matmul %373, %3, %cst_71 {dimension_numbers = #tpu.dot_dimension_numbers<[1], [0], [0], [1], [0, 0, 1, 1], [], []>} : vector<2x32xbf16>, vector<32x96xbf16>, vector<2x96xf32> -> vector<2x96xf32>
    %375 = vector.extract_strided_slice %372 {offsets = [0, 0], sizes = [2, 64], strides = [1, 1]} : vector<2x96xf32> to vector<2x64xf32>
    %376 = vector.extract_strided_slice %374 {offsets = [0, 0], sizes = [2, 64], strides = [1, 1]} : vector<2x96xf32> to vector<2x64xf32>
    %377 = arith.addf %375, %376 : vector<2x64xf32>
    %378 = arith.negf %377 : vector<2x64xf32>
    %379 = math.exp %378 : vector<2x64xf32>
    %cst_72 = arith.constant 1.000000e+00 : f32
    %380 = vector.broadcast %cst_72 : f32 to vector<2x64xf32>
    %381 = arith.addf %380, %379 : vector<2x64xf32>
    %382 = arith.divf %380, %381 : vector<2x64xf32>
    %383 = vector.extract_strided_slice %382 {offsets = [0, 0], sizes = [2, 32], strides = [1, 1]} : vector<2x64xf32> to vector<2x32xf32>
    %384 = vector.extract_strided_slice %382 {offsets = [0, 32], sizes = [2, 32], strides = [1, 1]} : vector<2x64xf32> to vector<2x32xf32>
    %385 = vector.extract_strided_slice %372 {offsets = [0, 64], sizes = [2, 32], strides = [1, 1]} : vector<2x96xf32> to vector<2x32xf32>
    %386 = vector.extract_strided_slice %374 {offsets = [0, 64], sizes = [2, 32], strides = [1, 1]} : vector<2x96xf32> to vector<2x32xf32>
    %387 = arith.addf %386, %12 : vector<2x32xf32>
    %388 = arith.mulf %383, %387 : vector<2x32xf32>
    %389 = arith.addf %385, %388 : vector<2x32xf32>
    %390 = math.tanh %389 : vector<2x32xf32>
    %cst_73 = arith.constant 1.000000e+00 : f32
    %391 = vector.broadcast %cst_73 : f32 to vector<2x32xf32>
    %392 = arith.subf %391, %384 : vector<2x32xf32>
    %393 = arith.mulf %392, %390 : vector<2x32xf32>
    %394 = arith.mulf %384, %369 : vector<2x32xf32>
    %395 = arith.addf %393, %394 : vector<2x32xf32>
    %396 = vector.extract_strided_slice %134 {offsets = [10, 0], sizes = [1, 96], strides = [1, 1]} : vector<38x96xf32> to vector<1x96xf32>
    %397 = vector.extract_strided_slice %134 {offsets = [29, 0], sizes = [1, 96], strides = [1, 1]} : vector<38x96xf32> to vector<1x96xf32>
    %398 = tpu.concatenate %396, %397 in 0 : vector<1x96xf32>, vector<1x96xf32> -> vector<2x96xf32>
    %399 = arith.truncf %395 : vector<2x32xf32> to vector<2x32xbf16>
    %cst_74 = arith.constant dense<0.000000e+00> : vector<2x96xf32>
    %400 = tpu.matmul %399, %3, %cst_74 {dimension_numbers = #tpu.dot_dimension_numbers<[1], [0], [0], [1], [0, 0, 1, 1], [], []>} : vector<2x32xbf16>, vector<32x96xbf16>, vector<2x96xf32> -> vector<2x96xf32>
    %401 = vector.extract_strided_slice %398 {offsets = [0, 0], sizes = [2, 64], strides = [1, 1]} : vector<2x96xf32> to vector<2x64xf32>
    %402 = vector.extract_strided_slice %400 {offsets = [0, 0], sizes = [2, 64], strides = [1, 1]} : vector<2x96xf32> to vector<2x64xf32>
    %403 = arith.addf %401, %402 : vector<2x64xf32>
    %404 = arith.negf %403 : vector<2x64xf32>
    %405 = math.exp %404 : vector<2x64xf32>
    %cst_75 = arith.constant 1.000000e+00 : f32
    %406 = vector.broadcast %cst_75 : f32 to vector<2x64xf32>
    %407 = arith.addf %406, %405 : vector<2x64xf32>
    %408 = arith.divf %406, %407 : vector<2x64xf32>
    %409 = vector.extract_strided_slice %408 {offsets = [0, 0], sizes = [2, 32], strides = [1, 1]} : vector<2x64xf32> to vector<2x32xf32>
    %410 = vector.extract_strided_slice %408 {offsets = [0, 32], sizes = [2, 32], strides = [1, 1]} : vector<2x64xf32> to vector<2x32xf32>
    %411 = vector.extract_strided_slice %398 {offsets = [0, 64], sizes = [2, 32], strides = [1, 1]} : vector<2x96xf32> to vector<2x32xf32>
    %412 = vector.extract_strided_slice %400 {offsets = [0, 64], sizes = [2, 32], strides = [1, 1]} : vector<2x96xf32> to vector<2x32xf32>
    %413 = arith.addf %412, %12 : vector<2x32xf32>
    %414 = arith.mulf %409, %413 : vector<2x32xf32>
    %415 = arith.addf %411, %414 : vector<2x32xf32>
    %416 = math.tanh %415 : vector<2x32xf32>
    %cst_76 = arith.constant 1.000000e+00 : f32
    %417 = vector.broadcast %cst_76 : f32 to vector<2x32xf32>
    %418 = arith.subf %417, %410 : vector<2x32xf32>
    %419 = arith.mulf %418, %416 : vector<2x32xf32>
    %420 = arith.mulf %410, %395 : vector<2x32xf32>
    %421 = arith.addf %419, %420 : vector<2x32xf32>
    %422 = vector.extract_strided_slice %134 {offsets = [11, 0], sizes = [1, 96], strides = [1, 1]} : vector<38x96xf32> to vector<1x96xf32>
    %423 = vector.extract_strided_slice %134 {offsets = [30, 0], sizes = [1, 96], strides = [1, 1]} : vector<38x96xf32> to vector<1x96xf32>
    %424 = tpu.concatenate %422, %423 in 0 : vector<1x96xf32>, vector<1x96xf32> -> vector<2x96xf32>
    %425 = arith.truncf %421 : vector<2x32xf32> to vector<2x32xbf16>
    %cst_77 = arith.constant dense<0.000000e+00> : vector<2x96xf32>
    %426 = tpu.matmul %425, %3, %cst_77 {dimension_numbers = #tpu.dot_dimension_numbers<[1], [0], [0], [1], [0, 0, 1, 1], [], []>} : vector<2x32xbf16>, vector<32x96xbf16>, vector<2x96xf32> -> vector<2x96xf32>
    %427 = vector.extract_strided_slice %424 {offsets = [0, 0], sizes = [2, 64], strides = [1, 1]} : vector<2x96xf32> to vector<2x64xf32>
    %428 = vector.extract_strided_slice %426 {offsets = [0, 0], sizes = [2, 64], strides = [1, 1]} : vector<2x96xf32> to vector<2x64xf32>
    %429 = arith.addf %427, %428 : vector<2x64xf32>
    %430 = arith.negf %429 : vector<2x64xf32>
    %431 = math.exp %430 : vector<2x64xf32>
    %cst_78 = arith.constant 1.000000e+00 : f32
    %432 = vector.broadcast %cst_78 : f32 to vector<2x64xf32>
    %433 = arith.addf %432, %431 : vector<2x64xf32>
    %434 = arith.divf %432, %433 : vector<2x64xf32>
    %435 = vector.extract_strided_slice %434 {offsets = [0, 0], sizes = [2, 32], strides = [1, 1]} : vector<2x64xf32> to vector<2x32xf32>
    %436 = vector.extract_strided_slice %434 {offsets = [0, 32], sizes = [2, 32], strides = [1, 1]} : vector<2x64xf32> to vector<2x32xf32>
    %437 = vector.extract_strided_slice %424 {offsets = [0, 64], sizes = [2, 32], strides = [1, 1]} : vector<2x96xf32> to vector<2x32xf32>
    %438 = vector.extract_strided_slice %426 {offsets = [0, 64], sizes = [2, 32], strides = [1, 1]} : vector<2x96xf32> to vector<2x32xf32>
    %439 = arith.addf %438, %12 : vector<2x32xf32>
    %440 = arith.mulf %435, %439 : vector<2x32xf32>
    %441 = arith.addf %437, %440 : vector<2x32xf32>
    %442 = math.tanh %441 : vector<2x32xf32>
    %cst_79 = arith.constant 1.000000e+00 : f32
    %443 = vector.broadcast %cst_79 : f32 to vector<2x32xf32>
    %444 = arith.subf %443, %436 : vector<2x32xf32>
    %445 = arith.mulf %444, %442 : vector<2x32xf32>
    %446 = arith.mulf %436, %421 : vector<2x32xf32>
    %447 = arith.addf %445, %446 : vector<2x32xf32>
    %448 = vector.extract_strided_slice %134 {offsets = [12, 0], sizes = [1, 96], strides = [1, 1]} : vector<38x96xf32> to vector<1x96xf32>
    %449 = vector.extract_strided_slice %134 {offsets = [31, 0], sizes = [1, 96], strides = [1, 1]} : vector<38x96xf32> to vector<1x96xf32>
    %450 = tpu.concatenate %448, %449 in 0 : vector<1x96xf32>, vector<1x96xf32> -> vector<2x96xf32>
    %451 = arith.truncf %447 : vector<2x32xf32> to vector<2x32xbf16>
    %cst_80 = arith.constant dense<0.000000e+00> : vector<2x96xf32>
    %452 = tpu.matmul %451, %3, %cst_80 {dimension_numbers = #tpu.dot_dimension_numbers<[1], [0], [0], [1], [0, 0, 1, 1], [], []>} : vector<2x32xbf16>, vector<32x96xbf16>, vector<2x96xf32> -> vector<2x96xf32>
    %453 = vector.extract_strided_slice %450 {offsets = [0, 0], sizes = [2, 64], strides = [1, 1]} : vector<2x96xf32> to vector<2x64xf32>
    %454 = vector.extract_strided_slice %452 {offsets = [0, 0], sizes = [2, 64], strides = [1, 1]} : vector<2x96xf32> to vector<2x64xf32>
    %455 = arith.addf %453, %454 : vector<2x64xf32>
    %456 = arith.negf %455 : vector<2x64xf32>
    %457 = math.exp %456 : vector<2x64xf32>
    %cst_81 = arith.constant 1.000000e+00 : f32
    %458 = vector.broadcast %cst_81 : f32 to vector<2x64xf32>
    %459 = arith.addf %458, %457 : vector<2x64xf32>
    %460 = arith.divf %458, %459 : vector<2x64xf32>
    %461 = vector.extract_strided_slice %460 {offsets = [0, 0], sizes = [2, 32], strides = [1, 1]} : vector<2x64xf32> to vector<2x32xf32>
    %462 = vector.extract_strided_slice %460 {offsets = [0, 32], sizes = [2, 32], strides = [1, 1]} : vector<2x64xf32> to vector<2x32xf32>
    %463 = vector.extract_strided_slice %450 {offsets = [0, 64], sizes = [2, 32], strides = [1, 1]} : vector<2x96xf32> to vector<2x32xf32>
    %464 = vector.extract_strided_slice %452 {offsets = [0, 64], sizes = [2, 32], strides = [1, 1]} : vector<2x96xf32> to vector<2x32xf32>
    %465 = arith.addf %464, %12 : vector<2x32xf32>
    %466 = arith.mulf %461, %465 : vector<2x32xf32>
    %467 = arith.addf %463, %466 : vector<2x32xf32>
    %468 = math.tanh %467 : vector<2x32xf32>
    %cst_82 = arith.constant 1.000000e+00 : f32
    %469 = vector.broadcast %cst_82 : f32 to vector<2x32xf32>
    %470 = arith.subf %469, %462 : vector<2x32xf32>
    %471 = arith.mulf %470, %468 : vector<2x32xf32>
    %472 = arith.mulf %462, %447 : vector<2x32xf32>
    %473 = arith.addf %471, %472 : vector<2x32xf32>
    %474 = vector.extract_strided_slice %134 {offsets = [13, 0], sizes = [1, 96], strides = [1, 1]} : vector<38x96xf32> to vector<1x96xf32>
    %475 = vector.extract_strided_slice %134 {offsets = [32, 0], sizes = [1, 96], strides = [1, 1]} : vector<38x96xf32> to vector<1x96xf32>
    %476 = tpu.concatenate %474, %475 in 0 : vector<1x96xf32>, vector<1x96xf32> -> vector<2x96xf32>
    %477 = arith.truncf %473 : vector<2x32xf32> to vector<2x32xbf16>
    %cst_83 = arith.constant dense<0.000000e+00> : vector<2x96xf32>
    %478 = tpu.matmul %477, %3, %cst_83 {dimension_numbers = #tpu.dot_dimension_numbers<[1], [0], [0], [1], [0, 0, 1, 1], [], []>} : vector<2x32xbf16>, vector<32x96xbf16>, vector<2x96xf32> -> vector<2x96xf32>
    %479 = vector.extract_strided_slice %476 {offsets = [0, 0], sizes = [2, 64], strides = [1, 1]} : vector<2x96xf32> to vector<2x64xf32>
    %480 = vector.extract_strided_slice %478 {offsets = [0, 0], sizes = [2, 64], strides = [1, 1]} : vector<2x96xf32> to vector<2x64xf32>
    %481 = arith.addf %479, %480 : vector<2x64xf32>
    %482 = arith.negf %481 : vector<2x64xf32>
    %483 = math.exp %482 : vector<2x64xf32>
    %cst_84 = arith.constant 1.000000e+00 : f32
    %484 = vector.broadcast %cst_84 : f32 to vector<2x64xf32>
    %485 = arith.addf %484, %483 : vector<2x64xf32>
    %486 = arith.divf %484, %485 : vector<2x64xf32>
    %487 = vector.extract_strided_slice %486 {offsets = [0, 0], sizes = [2, 32], strides = [1, 1]} : vector<2x64xf32> to vector<2x32xf32>
    %488 = vector.extract_strided_slice %486 {offsets = [0, 32], sizes = [2, 32], strides = [1, 1]} : vector<2x64xf32> to vector<2x32xf32>
    %489 = vector.extract_strided_slice %476 {offsets = [0, 64], sizes = [2, 32], strides = [1, 1]} : vector<2x96xf32> to vector<2x32xf32>
    %490 = vector.extract_strided_slice %478 {offsets = [0, 64], sizes = [2, 32], strides = [1, 1]} : vector<2x96xf32> to vector<2x32xf32>
    %491 = arith.addf %490, %12 : vector<2x32xf32>
    %492 = arith.mulf %487, %491 : vector<2x32xf32>
    %493 = arith.addf %489, %492 : vector<2x32xf32>
    %494 = math.tanh %493 : vector<2x32xf32>
    %cst_85 = arith.constant 1.000000e+00 : f32
    %495 = vector.broadcast %cst_85 : f32 to vector<2x32xf32>
    %496 = arith.subf %495, %488 : vector<2x32xf32>
    %497 = arith.mulf %496, %494 : vector<2x32xf32>
    %498 = arith.mulf %488, %473 : vector<2x32xf32>
    %499 = arith.addf %497, %498 : vector<2x32xf32>
    %500 = vector.extract_strided_slice %134 {offsets = [14, 0], sizes = [1, 96], strides = [1, 1]} : vector<38x96xf32> to vector<1x96xf32>
    %501 = vector.extract_strided_slice %134 {offsets = [33, 0], sizes = [1, 96], strides = [1, 1]} : vector<38x96xf32> to vector<1x96xf32>
    %502 = tpu.concatenate %500, %501 in 0 : vector<1x96xf32>, vector<1x96xf32> -> vector<2x96xf32>
    %503 = arith.truncf %499 : vector<2x32xf32> to vector<2x32xbf16>
    %cst_86 = arith.constant dense<0.000000e+00> : vector<2x96xf32>
    %504 = tpu.matmul %503, %3, %cst_86 {dimension_numbers = #tpu.dot_dimension_numbers<[1], [0], [0], [1], [0, 0, 1, 1], [], []>} : vector<2x32xbf16>, vector<32x96xbf16>, vector<2x96xf32> -> vector<2x96xf32>
    %505 = vector.extract_strided_slice %502 {offsets = [0, 0], sizes = [2, 64], strides = [1, 1]} : vector<2x96xf32> to vector<2x64xf32>
    %506 = vector.extract_strided_slice %504 {offsets = [0, 0], sizes = [2, 64], strides = [1, 1]} : vector<2x96xf32> to vector<2x64xf32>
    %507 = arith.addf %505, %506 : vector<2x64xf32>
    %508 = arith.negf %507 : vector<2x64xf32>
    %509 = math.exp %508 : vector<2x64xf32>
    %cst_87 = arith.constant 1.000000e+00 : f32
    %510 = vector.broadcast %cst_87 : f32 to vector<2x64xf32>
    %511 = arith.addf %510, %509 : vector<2x64xf32>
    %512 = arith.divf %510, %511 : vector<2x64xf32>
    %513 = vector.extract_strided_slice %512 {offsets = [0, 0], sizes = [2, 32], strides = [1, 1]} : vector<2x64xf32> to vector<2x32xf32>
    %514 = vector.extract_strided_slice %512 {offsets = [0, 32], sizes = [2, 32], strides = [1, 1]} : vector<2x64xf32> to vector<2x32xf32>
    %515 = vector.extract_strided_slice %502 {offsets = [0, 64], sizes = [2, 32], strides = [1, 1]} : vector<2x96xf32> to vector<2x32xf32>
    %516 = vector.extract_strided_slice %504 {offsets = [0, 64], sizes = [2, 32], strides = [1, 1]} : vector<2x96xf32> to vector<2x32xf32>
    %517 = arith.addf %516, %12 : vector<2x32xf32>
    %518 = arith.mulf %513, %517 : vector<2x32xf32>
    %519 = arith.addf %515, %518 : vector<2x32xf32>
    %520 = math.tanh %519 : vector<2x32xf32>
    %cst_88 = arith.constant 1.000000e+00 : f32
    %521 = vector.broadcast %cst_88 : f32 to vector<2x32xf32>
    %522 = arith.subf %521, %514 : vector<2x32xf32>
    %523 = arith.mulf %522, %520 : vector<2x32xf32>
    %524 = arith.mulf %514, %499 : vector<2x32xf32>
    %525 = arith.addf %523, %524 : vector<2x32xf32>
    %526 = vector.extract_strided_slice %134 {offsets = [15, 0], sizes = [1, 96], strides = [1, 1]} : vector<38x96xf32> to vector<1x96xf32>
    %527 = vector.extract_strided_slice %134 {offsets = [34, 0], sizes = [1, 96], strides = [1, 1]} : vector<38x96xf32> to vector<1x96xf32>
    %528 = tpu.concatenate %526, %527 in 0 : vector<1x96xf32>, vector<1x96xf32> -> vector<2x96xf32>
    %529 = arith.truncf %525 : vector<2x32xf32> to vector<2x32xbf16>
    %cst_89 = arith.constant dense<0.000000e+00> : vector<2x96xf32>
    %530 = tpu.matmul %529, %3, %cst_89 {dimension_numbers = #tpu.dot_dimension_numbers<[1], [0], [0], [1], [0, 0, 1, 1], [], []>} : vector<2x32xbf16>, vector<32x96xbf16>, vector<2x96xf32> -> vector<2x96xf32>
    %531 = vector.extract_strided_slice %528 {offsets = [0, 0], sizes = [2, 64], strides = [1, 1]} : vector<2x96xf32> to vector<2x64xf32>
    %532 = vector.extract_strided_slice %530 {offsets = [0, 0], sizes = [2, 64], strides = [1, 1]} : vector<2x96xf32> to vector<2x64xf32>
    %533 = arith.addf %531, %532 : vector<2x64xf32>
    %534 = arith.negf %533 : vector<2x64xf32>
    %535 = math.exp %534 : vector<2x64xf32>
    %cst_90 = arith.constant 1.000000e+00 : f32
    %536 = vector.broadcast %cst_90 : f32 to vector<2x64xf32>
    %537 = arith.addf %536, %535 : vector<2x64xf32>
    %538 = arith.divf %536, %537 : vector<2x64xf32>
    %539 = vector.extract_strided_slice %538 {offsets = [0, 0], sizes = [2, 32], strides = [1, 1]} : vector<2x64xf32> to vector<2x32xf32>
    %540 = vector.extract_strided_slice %538 {offsets = [0, 32], sizes = [2, 32], strides = [1, 1]} : vector<2x64xf32> to vector<2x32xf32>
    %541 = vector.extract_strided_slice %528 {offsets = [0, 64], sizes = [2, 32], strides = [1, 1]} : vector<2x96xf32> to vector<2x32xf32>
    %542 = vector.extract_strided_slice %530 {offsets = [0, 64], sizes = [2, 32], strides = [1, 1]} : vector<2x96xf32> to vector<2x32xf32>
    %543 = arith.addf %542, %12 : vector<2x32xf32>
    %544 = arith.mulf %539, %543 : vector<2x32xf32>
    %545 = arith.addf %541, %544 : vector<2x32xf32>
    %546 = math.tanh %545 : vector<2x32xf32>
    %cst_91 = arith.constant 1.000000e+00 : f32
    %547 = vector.broadcast %cst_91 : f32 to vector<2x32xf32>
    %548 = arith.subf %547, %540 : vector<2x32xf32>
    %549 = arith.mulf %548, %546 : vector<2x32xf32>
    %550 = arith.mulf %540, %525 : vector<2x32xf32>
    %551 = arith.addf %549, %550 : vector<2x32xf32>
    %552 = vector.extract_strided_slice %134 {offsets = [16, 0], sizes = [1, 96], strides = [1, 1]} : vector<38x96xf32> to vector<1x96xf32>
    %553 = vector.extract_strided_slice %134 {offsets = [35, 0], sizes = [1, 96], strides = [1, 1]} : vector<38x96xf32> to vector<1x96xf32>
    %554 = tpu.concatenate %552, %553 in 0 : vector<1x96xf32>, vector<1x96xf32> -> vector<2x96xf32>
    %555 = arith.truncf %551 : vector<2x32xf32> to vector<2x32xbf16>
    %cst_92 = arith.constant dense<0.000000e+00> : vector<2x96xf32>
    %556 = tpu.matmul %555, %3, %cst_92 {dimension_numbers = #tpu.dot_dimension_numbers<[1], [0], [0], [1], [0, 0, 1, 1], [], []>} : vector<2x32xbf16>, vector<32x96xbf16>, vector<2x96xf32> -> vector<2x96xf32>
    %557 = vector.extract_strided_slice %554 {offsets = [0, 0], sizes = [2, 64], strides = [1, 1]} : vector<2x96xf32> to vector<2x64xf32>
    %558 = vector.extract_strided_slice %556 {offsets = [0, 0], sizes = [2, 64], strides = [1, 1]} : vector<2x96xf32> to vector<2x64xf32>
    %559 = arith.addf %557, %558 : vector<2x64xf32>
    %560 = arith.negf %559 : vector<2x64xf32>
    %561 = math.exp %560 : vector<2x64xf32>
    %cst_93 = arith.constant 1.000000e+00 : f32
    %562 = vector.broadcast %cst_93 : f32 to vector<2x64xf32>
    %563 = arith.addf %562, %561 : vector<2x64xf32>
    %564 = arith.divf %562, %563 : vector<2x64xf32>
    %565 = vector.extract_strided_slice %564 {offsets = [0, 0], sizes = [2, 32], strides = [1, 1]} : vector<2x64xf32> to vector<2x32xf32>
    %566 = vector.extract_strided_slice %564 {offsets = [0, 32], sizes = [2, 32], strides = [1, 1]} : vector<2x64xf32> to vector<2x32xf32>
    %567 = vector.extract_strided_slice %554 {offsets = [0, 64], sizes = [2, 32], strides = [1, 1]} : vector<2x96xf32> to vector<2x32xf32>
    %568 = vector.extract_strided_slice %556 {offsets = [0, 64], sizes = [2, 32], strides = [1, 1]} : vector<2x96xf32> to vector<2x32xf32>
    %569 = arith.addf %568, %12 : vector<2x32xf32>
    %570 = arith.mulf %565, %569 : vector<2x32xf32>
    %571 = arith.addf %567, %570 : vector<2x32xf32>
    %572 = math.tanh %571 : vector<2x32xf32>
    %cst_94 = arith.constant 1.000000e+00 : f32
    %573 = vector.broadcast %cst_94 : f32 to vector<2x32xf32>
    %574 = arith.subf %573, %566 : vector<2x32xf32>
    %575 = arith.mulf %574, %572 : vector<2x32xf32>
    %576 = arith.mulf %566, %551 : vector<2x32xf32>
    %577 = arith.addf %575, %576 : vector<2x32xf32>
    %578 = vector.extract_strided_slice %134 {offsets = [17, 0], sizes = [1, 96], strides = [1, 1]} : vector<38x96xf32> to vector<1x96xf32>
    %579 = vector.extract_strided_slice %134 {offsets = [36, 0], sizes = [1, 96], strides = [1, 1]} : vector<38x96xf32> to vector<1x96xf32>
    %580 = tpu.concatenate %578, %579 in 0 : vector<1x96xf32>, vector<1x96xf32> -> vector<2x96xf32>
    %581 = arith.truncf %577 : vector<2x32xf32> to vector<2x32xbf16>
    %cst_95 = arith.constant dense<0.000000e+00> : vector<2x96xf32>
    %582 = tpu.matmul %581, %3, %cst_95 {dimension_numbers = #tpu.dot_dimension_numbers<[1], [0], [0], [1], [0, 0, 1, 1], [], []>} : vector<2x32xbf16>, vector<32x96xbf16>, vector<2x96xf32> -> vector<2x96xf32>
    %583 = vector.extract_strided_slice %580 {offsets = [0, 0], sizes = [2, 64], strides = [1, 1]} : vector<2x96xf32> to vector<2x64xf32>
    %584 = vector.extract_strided_slice %582 {offsets = [0, 0], sizes = [2, 64], strides = [1, 1]} : vector<2x96xf32> to vector<2x64xf32>
    %585 = arith.addf %583, %584 : vector<2x64xf32>
    %586 = arith.negf %585 : vector<2x64xf32>
    %587 = math.exp %586 : vector<2x64xf32>
    %cst_96 = arith.constant 1.000000e+00 : f32
    %588 = vector.broadcast %cst_96 : f32 to vector<2x64xf32>
    %589 = arith.addf %588, %587 : vector<2x64xf32>
    %590 = arith.divf %588, %589 : vector<2x64xf32>
    %591 = vector.extract_strided_slice %590 {offsets = [0, 0], sizes = [2, 32], strides = [1, 1]} : vector<2x64xf32> to vector<2x32xf32>
    %592 = vector.extract_strided_slice %590 {offsets = [0, 32], sizes = [2, 32], strides = [1, 1]} : vector<2x64xf32> to vector<2x32xf32>
    %593 = vector.extract_strided_slice %580 {offsets = [0, 64], sizes = [2, 32], strides = [1, 1]} : vector<2x96xf32> to vector<2x32xf32>
    %594 = vector.extract_strided_slice %582 {offsets = [0, 64], sizes = [2, 32], strides = [1, 1]} : vector<2x96xf32> to vector<2x32xf32>
    %595 = arith.addf %594, %12 : vector<2x32xf32>
    %596 = arith.mulf %591, %595 : vector<2x32xf32>
    %597 = arith.addf %593, %596 : vector<2x32xf32>
    %598 = math.tanh %597 : vector<2x32xf32>
    %cst_97 = arith.constant 1.000000e+00 : f32
    %599 = vector.broadcast %cst_97 : f32 to vector<2x32xf32>
    %600 = arith.subf %599, %592 : vector<2x32xf32>
    %601 = arith.mulf %600, %598 : vector<2x32xf32>
    %602 = arith.mulf %592, %577 : vector<2x32xf32>
    %603 = arith.addf %601, %602 : vector<2x32xf32>
    %604 = vector.extract_strided_slice %134 {offsets = [18, 0], sizes = [1, 96], strides = [1, 1]} : vector<38x96xf32> to vector<1x96xf32>
    %605 = vector.extract_strided_slice %134 {offsets = [37, 0], sizes = [1, 96], strides = [1, 1]} : vector<38x96xf32> to vector<1x96xf32>
    %606 = tpu.concatenate %604, %605 in 0 : vector<1x96xf32>, vector<1x96xf32> -> vector<2x96xf32>
    %607 = arith.truncf %603 : vector<2x32xf32> to vector<2x32xbf16>
    %cst_98 = arith.constant dense<0.000000e+00> : vector<2x96xf32>
    %608 = tpu.matmul %607, %3, %cst_98 {dimension_numbers = #tpu.dot_dimension_numbers<[1], [0], [0], [1], [0, 0, 1, 1], [], []>} : vector<2x32xbf16>, vector<32x96xbf16>, vector<2x96xf32> -> vector<2x96xf32>
    %609 = vector.extract_strided_slice %606 {offsets = [0, 0], sizes = [2, 64], strides = [1, 1]} : vector<2x96xf32> to vector<2x64xf32>
    %610 = vector.extract_strided_slice %608 {offsets = [0, 0], sizes = [2, 64], strides = [1, 1]} : vector<2x96xf32> to vector<2x64xf32>
    %611 = arith.addf %609, %610 : vector<2x64xf32>
    %612 = arith.negf %611 : vector<2x64xf32>
    %613 = math.exp %612 : vector<2x64xf32>
    %cst_99 = arith.constant 1.000000e+00 : f32
    %614 = vector.broadcast %cst_99 : f32 to vector<2x64xf32>
    %615 = arith.addf %614, %613 : vector<2x64xf32>
    %616 = arith.divf %614, %615 : vector<2x64xf32>
    %617 = vector.extract_strided_slice %616 {offsets = [0, 0], sizes = [2, 32], strides = [1, 1]} : vector<2x64xf32> to vector<2x32xf32>
    %618 = vector.extract_strided_slice %616 {offsets = [0, 32], sizes = [2, 32], strides = [1, 1]} : vector<2x64xf32> to vector<2x32xf32>
    %619 = vector.extract_strided_slice %606 {offsets = [0, 64], sizes = [2, 32], strides = [1, 1]} : vector<2x96xf32> to vector<2x32xf32>
    %620 = vector.extract_strided_slice %608 {offsets = [0, 64], sizes = [2, 32], strides = [1, 1]} : vector<2x96xf32> to vector<2x32xf32>
    %621 = arith.addf %620, %12 : vector<2x32xf32>
    %622 = arith.mulf %617, %621 : vector<2x32xf32>
    %623 = arith.addf %619, %622 : vector<2x32xf32>
    %624 = math.tanh %623 : vector<2x32xf32>
    %cst_100 = arith.constant 1.000000e+00 : f32
    %625 = vector.broadcast %cst_100 : f32 to vector<2x32xf32>
    %626 = arith.subf %625, %618 : vector<2x32xf32>
    %627 = arith.mulf %626, %624 : vector<2x32xf32>
    %628 = arith.mulf %618, %603 : vector<2x32xf32>
    %629 = arith.addf %627, %628 : vector<2x32xf32>
    %630 = arith.truncf %629 : vector<2x32xf32> to vector<2x32xbf16>
    %cst_101 = arith.constant dense<0.000000e+00> : vector<2x32xf32>
    %631 = tpu.matmul %630, %4, %cst_101 {dimension_numbers = #tpu.dot_dimension_numbers<[1], [0], [0], [1], [0, 0, 1, 1], [], []>} : vector<2x32xbf16>, vector<32x32xbf16>, vector<2x32xf32> -> vector<2x32xf32>
    %632 = vector.broadcast %13 : vector<1x32xf32> to vector<2x32xf32>
    %633 = arith.addf %631, %632 : vector<2x32xf32>
    %634 = arith.truncf %633 : vector<2x32xf32> to vector<2x32xbf16>
    %cst_102 = arith.constant dense<0.000000e+00> : vector<2x4xf32>
    %635 = tpu.matmul %634, %5, %cst_102 {dimension_numbers = #tpu.dot_dimension_numbers<[1], [0], [0], [1], [0, 0, 1, 1], [], []>} : vector<2x32xbf16>, vector<32x4xbf16>, vector<2x4xf32> -> vector<2x4xf32>
    %636 = vector.broadcast %14 : vector<1x4xf32> to vector<2x4xf32>
    %637 = arith.addf %635, %636 : vector<2x4xf32>
    %c0_103 = arith.constant 0 : index
    %c0_104 = arith.constant 0 : index
    %638 = vector.load %arg3[%c0_103, %c0_104] : memref<2x4xf32, #tpu.memory_space<vmem>>, vector<2x4xf32>
    tpu.vector_store %arg3[%c0_103, %c0_104], %637 {strides = array<i32>} : memref<2x4xf32, #tpu.memory_space<vmem>>, vector<2x4xf32>,
    return
  }
}

</mosaic_0001>

<bundles_post_ra>
// kernel: forward.1
= control target key start
LH: loop header
LB: loop body
LE: loop exit
PB: predicated region body
PF: predicated region fallthrough
CT: control target
= control target key end

     0   :  { %8 = vsyncpa [#allocation3], 0  ;;  %s3695_s0 = inlined_call_operand.vmem [shape: bf16[15,38], index: 0, kind: input, shape index: {}]   ;;  %s3696_s1 = inlined_call_operand.vmem [shape: bf16[160,128], index: 1, kind: input, shape index: {}]   ;;  %s3697_s2 = inlined_call_operand.hbm [shape: f32[24,128], index: 2, kind: input, shape index: {}]   ;;  %s3698_s3 = inlined_call_operand.hbm [shape: f32[2,4], index: 3, kind: output, shape index: {}]  }
   0x1   :  { %9 = vsyncpa [#allocation4], 0  ;;  %s18_s14 = sshll.u32 %s3697_s2, 4  ;;  %s2836_s15 = smov [#allocation2]   ;;  %s19_s14 = int_to_ptr.hbm [resolvable:$true] %s18_s14 }
   0x2   :  { %s20_s16 = sshll.u32 %s2836_s15, 4  ;;  %s2837_s17 = smov 128   ;;  %s21_s16 = int_to_ptr.vmem [resolvable:$true] %s20_s16 }
   0x3   :  { %s2838_s18 = smov 8  }
   0x4   :  { %26 = dma.hbm_to_vmem [thread:$0]  %s19_s14, 384, %s21_s16, [#allocation3], %s2837_s17, %s2837_s17, %s2838_s18  }
   0x5   :  { %2832 = dma.done.wait [#allocation3], 384  }
   0x6   :  { %2833 = vsyncadd [#allocation3], 4294966912  ;;  %vm85_vm0 = vcmask 1046528   ;;  %v2839_v0 = vmov 0   ;;  %vm86_vm1 = vcmask 1047552   ;;  %v2840_v1 = vmov 65535  }
   0x7   :  { %2632 = vset.pattern.permute.xlu0 %v2839_v0  ;;  %v87_v2 = vsel %vm85_vm0, 4294967295, %v2840_v1  ;;  %v2621_v4 = vld [vmem:[%s3695_s0] sm:$0xff]  ;;  %vm81_vm2 = vcmask 121856   ;;  %v52_v8 = vld [vmem:[#allocation2 + $0x8] sm:$0xff]  ;;  %v36_v9 = vld [vmem:[%s3696_s1 + $0x10] sm:$0x3] }
   0x8   :  { %v88_v3 = vsel %vm86_vm1, %v87_v2, 0  ;;  %v51_v5 = vld [vmem:[#allocation2] sm:$0xff]  ;;  %v123_v10 = vunpack.c.l.b16 %v36_v9  ;;  %vm134_vm3 = vcmask 1040384   ;;  %vm135_vm4 = vcmask 1041408   ;;  %v2613_v15 = vld [vmem:[%s3696_s1 + $0x8] sm:$0xff]  ;;  %s2841_s25 = smov 109  }
   0x9   :  { %v90_v6 = vand.u32 %v2621_v4, %v88_v3  ;;  %63 = vperm.xlu0 %2632, %v51_v5   ;;  %v2612_v7 = vld [vmem:[%s3696_s1] sm:$0xff]  ;;  %v136_v12 = vsel %vm134_vm3, 4294967295, %v2840_v1  ;;  %vm127_vm5 = vcmask 154624   ;;  %v2899_v41 = vld [vmem:[#allocation2 + $0x10] ss:$0 sm:$0xff]  ;;  %s2842_s30 = smov 64  }
   0xa   :  { %v125_v11 = vpack.c.b16 %v123_v10, %v123_v10  ;;  %v137_v13 = vsel %vm135_vm4, %v136_v12, 0  ;;  %s2843_s6 = smov 96   ;;  %s2844_s19 = smov [#allocation5]  }
   0xb   :  { %99 = vmatpush.bf16.msra.mxu0 %v90_v6  ;;  %s2509_s20 = sshll.u32 %s2844_s19, 4  ;;  %s2511_s22 = sshll.u32 %s3698_s3, 4  ;;  %s2510_s20 = int_to_ptr.vmem [resolvable:$true] %s2509_s20  ;;  %s2512_s22 = int_to_ptr.hbm [resolvable:$true] %s2511_s22 }
   0xc   :  { %v139_v14 = vand.u32 %v137_v13, %v125_v11 }
   0xe   :  { %2529 = vmatmul.msk.bf16.vlgmr.msra.gmra.mxu0 %vm81_vm2, %v2612_v7  ;;  %147 = vmatpush.bf16.msra.mxu1 %v139_v14 }
  0x11   :  { %68 = vperm.xlu0 %2632, %v52_v8  }
  0x12   :  { %148 = vmatpush.bf16.msra.mxu1 %v2613_v15 }
  0x7b   :  { %v64_v16 = vpop.permute.xlu0 %63 }
  0x83   :  { %v69_v19 = vpop.permute.xlu0 %68 }
  0x8b   :  { %v101_v17 = vpop.f32.mrf.mxu0 }
  0x8c   :  { %v102_v18 = vadd.f32 %v101_v17, %v64_v16 }
  0x8e   :  { %v106_v22 = vmax.f32 %v102_v18, 0.0 }
  0x93   :  { %v103_v20 = vpop.f32.mrf.mxu0 }
  0x94   :  { %v104_v21 = vadd.f32 %v103_v20, %v69_v19 }
  0x96   :  { %v107_v23 = vmax.f32 %v104_v21, 0.0 }
  0x98   :  { %v116_v24 = vpack.c.bf16 %v107_v23, %v106_v22  ;;  %v2633_v25 = vpack.i.bf16 %v107_v23, %v106_v22 }
  0x9a   :  { %2634 = vrot.lane.b32.xlu1 %v2633_v25, %s2841_s25  ;;  %2534 = vmatmul.msk.bf16.vlgmr.msra.gmra.mxu1 %vm127_vm5, %v116_v24 }
 0x10c   :  { %v2635_v26 = vpop.permute.xlu1 %2634 }
 0x10d   :  { %v2637_v27 = vunpack.i.h.bf16 %v2635_v26  ;;  %v2636_v28 = vunpack.i.l.bf16 %v2635_v26 }
 0x10f   :  { %v117_v29 = vpack.c.bf16 %v2637_v27, %v2636_v28 }
 0x111   :  { %2535 = vmatmul.msk.bf16.gmra.mxu1 %vm127_vm5, %v117_v29 }
 0x117   :  { %v2884_v30 = vpop.f32.mrf.mxu1 }
 0x118   :  { %v168_v31 = vperm.slane %v2884_v30, 0  ;;  %v165_v32 = vrot.slane %v2884_v30, 5  ;;  %v161_v33 = vrot.slane %v2884_v30, 1  ;;  %v163_v34 = vrot.slane %v2884_v30, 3 }
 0x119   :  { %v162_v35 = vrot.slane %v2884_v30, 2  ;;  %v166_v36 = vrot.slane %v2884_v30, 6  ;;  %v164_v43 = vrot.slane %v2884_v30, 4  ;;  %v167_v7 = vrot.slane %v2884_v30, 7 }
 0x11a   :  { %v184_v37 = vadd.f32 %v168_v31, %v2884_v30  ;;  %v2895_v38 = vperm.slane %v165_v32, 0  ;;  %v169_v39 = vperm.slane %v161_v33, 0  ;;  %v2897_v40 = vperm.slane %v163_v34, 0 }
 0x11b   :  { %v170_v42 = vperm.slane %v162_v35, 0  ;;  %v2908_v49 = vperm.slane %v166_v36, 0  ;;  %v172_v58 = vperm.slane %v164_v43, 0  ;;  %v175_v19 = vperm.slane %v167_v7, 0 }
 0x11c   :  { %vm200_vm6 = vcmp.gt.f32.partialorder %v184_v37, 0.0  ;;  %v216_v44 = vmul.f32 0.2, %v184_v37  ;;  %v194_v45 = vadd.f32 %v2895_v38, %v2884_v30  ;;  %v186_v46 = vadd.f32 %v169_v39, %v2884_v30 }
 0x11d   :  { %v190_v47 = vadd.f32 %v2897_v40, %v2884_v30  ;;  %v188_v48 = vadd.f32 %v170_v42, %v2884_v30  ;;  %v196_v2 = vadd.f32 %v2908_v49, %v2884_v30  ;;  %v192_v6 = vadd.f32 %v172_v58, %v2884_v30 }
 0x11e   :  { %v232_v50 = vsel %vm200_vm6, %v184_v37, %v216_v44  ;;  %vm210_vm7 = vcmp.gt.f32.partialorder %v194_v45, 0.0  ;;  %v226_v51 = vmul.f32 0.2, %v194_v45  ;;  %vm202_vm8 = vcmp.gt.f32.partialorder %v186_v46, 0.0 }
 0x11f   :  { %v2910_v52 = vpop.f32.mrf.mxu1  ;;  %v249_v53 = vmul.f32 %v2899_v41, %v232_v50  ;;  %v218_v54 = vmul.f32 0.2, %v186_v46  ;;  %vm206_vm9 = vcmp.gt.f32.partialorder %v190_v47, 0.0  ;;  %v222_v55 = vmul.f32 0.2, %v190_v47 }
 0x120   :  { %v596_v56 = vpack.c.bf16 %v2910_v52, %v2884_v30  ;;  %v242_v57 = vsel %vm210_vm7, %v194_v45, %v226_v51  ;;  %v220_v62 = vmul.f32 0.2, %v188_v48  ;;  %vm204_vm10 = vcmp.gt.f32.partialorder %v188_v48, 0.0 }
 0x121   :  { %v265_v59 = vsel %vm127_vm5, %v249_v53, 0.0  ;;  %v259_v60 = vmul.f32 %v2899_v41, %v242_v57  ;;  %v234_v61 = vsel %vm202_vm8, %v186_v46, %v218_v54  ;;  %v238_v1 = vsel %vm206_vm9, %v190_v47, %v222_v55 }
 0x122   :  { %266 = vadd.xlane.f32.xlu1 %v265_v59  ;;  %607 = vmatpush.bf16.msra.mxu2 %v596_v56  ;;  %v251_v63 = vmul.f32 %v2899_v41, %v234_v61  ;;  %v187_v4 = vadd.f32 %v169_v39, %v2910_v52  ;;  %v255_v8 = vmul.f32 %v2899_v41, %v238_v1  ;;  %v228_v11 = vmul.f32 0.2, %v196_v2 }
 0x123   :  { %v295_v3 = vsel %vm127_vm5, %v259_v60, 0.0  ;;  %v236_v9 = vsel %vm204_vm10, %v188_v48, %v220_v62  ;;  %v193_v12 = vadd.f32 %v172_v58, %v2910_v52  ;;  %vm212_vm12 = vcmp.gt.f32.partialorder %v196_v2, 0.0 }
 0x124   :  { %296 = vadd.xlane.f32.xlu0 %v295_v3  ;;  %v271_v5 = vsel %vm127_vm5, %v251_v63, 0.0  ;;  %vm203_vm11 = vcmp.gt.f32.partialorder %v187_v4, 0.0  ;;  %v219_v10 = vmul.f32 0.2, %v187_v4  ;;  %v253_v14 = vmul.f32 %v2899_v41, %v236_v9 }
 0x125   :  { %272 = vadd.xlane.f32.xlu2 %v271_v5  ;;  %v225_v16 = vmul.f32 0.2, %v193_v12  ;;  %v283_v17 = vsel %vm127_vm5, %v255_v8, 0.0  ;;  %v224_v18 = vmul.f32 0.2, %v192_v6  ;;  %vm209_vm13 = vcmp.gt.f32.partialorder %v193_v12, 0.0 }
 0x126   :  { %v235_v13 = vsel %vm203_vm11, %v187_v4, %v219_v10  ;;  %v244_v20 = vsel %vm212_vm12, %v196_v2, %v228_v11  ;;  %vm208_vm14 = vcmp.gt.f32.partialorder %v192_v6, 0.0  ;;  %v189_v21 = vadd.f32 %v170_v42, %v2910_v52 }
 0x127   :  { %v252_v15 = vmul.f32 %v2899_v41, %v235_v13  ;;  %v277_v23 = vsel %vm127_vm5, %v253_v14, 0.0  ;;  %v241_v24 = vsel %vm209_vm13, %v193_v12, %v225_v16  ;;  %v199_v25 = vadd.f32 %v175_v19, %v2910_v52 }
 0x128   :  { %v315_v26 = vrot.slane %v2910_v52, 2  ;;  %v261_v27 = vmul.f32 %v2899_v41, %v244_v20  ;;  %v240_v28 = vsel %vm208_vm14, %v192_v6, %v224_v18  ;;  %v198_v29 = vadd.f32 %v175_v19, %v2884_v30 }
 0x129   :  { %v274_v22 = vsel %vm127_vm5, %v252_v15, 0.0  ;;  %v221_v32 = vmul.f32 0.2, %v189_v21  ;;  %v258_v33 = vmul.f32 %v2899_v41, %v241_v24  ;;  %vm205_vm15 = vcmp.gt.f32.partialorder %v189_v21, 0.0 }
 0x12a   :  { %284 = vadd.xlane.f32.xlu1 %v283_v17  ;;  %v257_v34 = vmul.f32 %v2899_v41, %v240_v28  ;;  %v231_v35 = vmul.f32 0.2, %v199_v25  ;;  %v2939_v36 = vperm.slane %v315_v26, 0  ;;  %v301_v37 = vsel %vm127_vm5, %v261_v27, 0.0 }
 0x12b   :  { %v230_v39 = vmul.f32 0.2, %v198_v29  ;;  %vm215_vm0 = vcmp.gt.f32.partialorder %v199_v25, 0.0  ;;  %v237_v42 = vsel %vm205_vm15, %v189_v21, %v221_v32  ;;  %vm214_vm1 = vcmp.gt.f32.partialorder %v198_v29, 0.0 }
 0x12c   :  { %275 = vadd.xlane.f32.xlu0 %v274_v22  ;;  %v195_v43 = vadd.f32 %v2895_v38, %v2910_v52  ;;  %v316_v44 = vrot.slane %v2910_v52, 3  ;;  %v292_v45 = vsel %vm127_vm5, %v258_v33, 0.0  ;;  %v289_v46 = vsel %vm127_vm5, %v257_v34, 0.0 }
 0x12d   :  { %278 = vadd.xlane.f32.xlu2 %v277_v23  ;;  %v247_v47 = vsel %vm215_vm0, %v199_v25, %v231_v35  ;;  %v342_v48 = vadd.f32 %v2939_v36, %v2910_v52  ;;  %v254_v50 = vmul.f32 %v2899_v41, %v237_v42  ;;  %v246_v51 = vsel %vm214_vm1, %v198_v29, %v230_v39 }
 0x12e   :  { %v185_v53 = vadd.f32 %v168_v31, %v2910_v52  ;;  %v227_v38 = vmul.f32 0.2, %v195_v43  ;;  %v324_v54 = vperm.slane %v316_v44, 0  ;;  %v264_v55 = vmul.f32 %v2899_v41, %v247_v47 }
 0x12f   :  { %vm211_vm2 = vcmp.gt.f32.partialorder %v195_v43, 0.0  ;;  %v263_v56 = vmul.f32 %v2899_v41, %v246_v51  ;;  %v374_v57 = vmul.f32 0.2, %v342_v48  ;;  %v280_v58 = vsel %vm127_vm5, %v254_v50, 0.0 }
 0x130   :  { %vm358_vm4 = vcmp.gt.f32.partialorder %v342_v48, 0.0  ;;  %v217_v59 = vmul.f32 0.2, %v185_v53  ;;  %v243_v60 = vsel %vm211_vm2, %v195_v43, %v227_v38  ;;  %vm201_vm6 = vcmp.gt.f32.partialorder %v185_v53, 0.0 }
 0x131   :  { %v344_v61 = vadd.f32 %v324_v54, %v2910_v52  ;;  %v317_v62 = vrot.slane %v2910_v52, 4  ;;  %v310_v31 = vsel %vm127_vm5, %v264_v55, 0.0  ;;  %v307_v63 = vsel %vm127_vm5, %v263_v56, 0.0 }
 0x132   :  { %302 = vadd.xlane.f32.xlu1 %v301_v37  ;;  %v390_v1 = vsel %vm358_vm4, %v342_v48, %v374_v57  ;;  %v343_v2 = vadd.f32 %v324_v54, %v2884_v30  ;;  %v318_v3 = vrot.slane %v2910_v52, 5  ;;  %v260_v4 = vmul.f32 %v2899_v41, %v243_v60 }
 0x133   :  { %v233_v5 = vsel %vm201_vm6, %v185_v53, %v217_v59  ;;  %v191_v6 = vadd.f32 %v2897_v40, %v2910_v52  ;;  %v376_v7 = vmul.f32 0.2, %v344_v61  ;;  %v2965_v8 = vperm.slane %v317_v62, 0 }
 0x134   :  { %293 = vadd.xlane.f32.xlu0 %v292_v45  ;;  %v406_v9 = vmul.f32 %v2899_v41, %v390_v1  ;;  %vm360_vm7 = vcmp.gt.f32.partialorder %v344_v61, 0.0  ;;  %v250_v10 = vmul.f32 %v2899_v41, %v233_v5  ;;  %v375_v11 = vmul.f32 0.2, %v343_v2 }
 0x135   :  { %290 = vadd.xlane.f32.xlu2 %v289_v46  ;;  %v2969_v12 = vperm.slane %v318_v3, 0  ;;  %v298_v13 = vsel %vm127_vm5, %v260_v4, 0.0  ;;  %vm359_vm8 = vcmp.gt.f32.partialorder %v343_v2, 0.0  ;;  %v223_v14 = vmul.f32 0.2, %v191_v6 }
 0x136   :  { %v392_v15 = vsel %vm360_vm7, %v344_v61, %v376_v7  ;;  %vm207_vm9 = vcmp.gt.f32.partialorder %v191_v6, 0.0  ;;  %v345_v40 = vadd.f32 %v2965_v8, %v2884_v30  ;;  %v319_v16 = vrot.slane %v2910_v52, 6 }
 0x137   :  { %v432_v17 = vsel %vm127_vm5, %v406_v9, 0.0  ;;  %v268_v18 = vsel %vm127_vm5, %v250_v10, 0.0  ;;  %v391_v19 = vsel %vm359_vm8, %v343_v2, %v375_v11  ;;  %v348_v20 = vadd.f32 %v2969_v12, %v2910_v52 }
 0x138   :  { %v408_v21 = vmul.f32 %v2899_v41, %v392_v15  ;;  %v239_v22 = vsel %vm207_vm9, %v191_v6, %v223_v14  ;;  %v197_v23 = vadd.f32 %v2908_v49, %v2910_v52  ;;  %v377_v24 = vmul.f32 0.2, %v345_v40 }
 0x139   :  { %v327_v25 = vperm.slane %v319_v16, 0  ;;  %v407_v26 = vmul.f32 %v2899_v41, %v391_v19  ;;  %vm361_vm10 = vcmp.gt.f32.partialorder %v345_v40, 0.0  ;;  %v256_v27 = vmul.f32 %v2899_v41, %v239_v22 }
 0x13a   :  { %281 = vadd.xlane.f32.xlu1 %v280_v58  ;;  %v380_v28 = vmul.f32 0.2, %v348_v20  ;;  %v438_v29 = vsel %vm127_vm5, %v408_v21, 0.0  ;;  %vm364_vm11 = vcmp.gt.f32.partialorder %v348_v20, 0.0  ;;  %v229_v32 = vmul.f32 0.2, %v197_v23 }
 0x13b   :  { %v321_v33 = vperm.slane %v2910_v52, 0  ;;  %v393_v34 = vsel %vm361_vm10, %v345_v40, %v377_v24  ;;  %vm213_vm12 = vcmp.gt.f32.partialorder %v197_v23, 0.0  ;;  %v350_v35 = vadd.f32 %v327_v25, %v2910_v52 }
 0x13c   :  { %311 = vadd.xlane.f32.xlu0 %v310_v31  ;;  %v320_v49 = vrot.slane %v2910_v52, 7  ;;  %v435_v37 = vsel %vm127_vm5, %v407_v26, 0.0  ;;  %v286_v39 = vsel %vm127_vm5, %v256_v27, 0.0  ;;  %v396_v42 = vsel %vm364_vm11, %v348_v20, %v380_v28 }
 0x13d   :  { %308 = vadd.xlane.f32.xlu2 %v307_v63  ;;  %v349_v43 = vadd.f32 %v327_v25, %v2884_v30  ;;  %v409_v44 = vmul.f32 %v2899_v41, %v393_v34  ;;  %v245_v45 = vsel %vm213_vm12, %v197_v23, %v229_v32  ;;  %v337_v46 = vadd.f32 %v321_v33, %v2884_v30 }
 0x13e   :  { %v382_v47 = vmul.f32 0.2, %v350_v35  ;;  %v2993_v48 = vperm.slane %v320_v49, 0  ;;  %v412_v50 = vmul.f32 %v2899_v41, %v396_v42  ;;  %vm366_vm13 = vcmp.gt.f32.partialorder %v350_v35, 0.0 }
 0x13f   :  { %v262_v51 = vmul.f32 %v2899_v41, %v245_v45  ;;  %v381_v53 = vmul.f32 0.2, %v349_v43  ;;  %v441_v38 = vsel %vm127_vm5, %v409_v44, 0.0  ;;  %vm365_vm14 = vcmp.gt.f32.partialorder %v349_v43, 0.0 }
 0x140   :  { %v369_v54 = vmul.f32 0.2, %v337_v46  ;;  %v398_v55 = vsel %vm366_vm13, %v350_v35, %v382_v47  ;;  %vm353_vm15 = vcmp.gt.f32.partialorder %v337_v46, 0.0  ;;  %v351_v56 = vadd.f32 %v2993_v48, %v2884_v30 }
 0x141   :  { %v450_v57 = vsel %vm127_vm5, %v412_v50, 0.0  ;;  %v304_v58 = vsel %vm127_vm5, %v262_v51, 0.0  ;;  %v397_v59 = vsel %vm365_vm14, %v349_v43, %v381_v53  ;;  %v414_v60 = vmul.f32 %v2899_v41, %v398_v55 }
 0x142   :  { %299 = vadd.xlane.f32.xlu1 %v298_v13  ;;  %v385_v61 = vsel %vm353_vm15, %v337_v46, %v369_v54  ;;  %v338_v62 = vadd.f32 %v321_v33, %v2910_v52  ;;  %v314_v31 = vrot.slane %v2910_v52, 1  ;;  %v383_v63 = vmul.f32 0.2, %v351_v56 }
 0x143   :  { %v413_v1 = vmul.f32 %v2899_v41, %v397_v59  ;;  %vm367_vm0 = vcmp.gt.f32.partialorder %v351_v56, 0.0  ;;  %v401_v2 = vmul.f32 %v2899_v41, %v385_v61  ;;  %v456_v3 = vsel %vm127_vm5, %v414_v60, 0.0 }
 0x144   :  { %433 = vadd.xlane.f32.xlu0 %v432_v17  ;;  %v370_v4 = vmul.f32 0.2, %v338_v62  ;;  %v322_v5 = vperm.slane %v314_v31, 0  ;;  %v399_v6 = vsel %vm367_vm0, %v351_v56, %v383_v63  ;;  %vm354_vm1 = vcmp.gt.f32.partialorder %v338_v62, 0.0 }
 0x145   :  { %269 = vadd.xlane.f32.xlu2 %v268_v18  ;;  %v453_v7 = vsel %vm127_vm5, %v413_v1, 0.0  ;;  %v417_v9 = vsel %vm127_vm5, %v401_v2, 0.0  ;;  %v415_v10 = vmul.f32 %v2899_v41, %v399_v6  ;;  %v341_v23 = vadd.f32 %v2939_v36, %v2884_v30 }
 0x146   :  { %v386_v11 = vsel %vm354_vm1, %v338_v62, %v370_v4  ;;  %v339_v13 = vadd.f32 %v322_v5, %v2884_v30  ;;  %v340_v18 = vadd.f32 %v322_v5, %v2910_v52  ;;  %v346_v28 = vadd.f32 %v2965_v8, %v2910_v52 }
 0x147   :  { %v402_v14 = vmul.f32 %v2899_v41, %v386_v11  ;;  %v459_v15 = vsel %vm127_vm5, %v415_v10, 0.0  ;;  %v373_v25 = vmul.f32 0.2, %v341_v23  ;;  %vm357_vm6 = vcmp.gt.f32.partialorder %v341_v23, 0.0 }
 0x148   :  { %v371_v40 = vmul.f32 0.2, %v339_v13  ;;  %vm355_vm2 = vcmp.gt.f32.partialorder %v339_v13, 0.0  ;;  %v372_v20 = vmul.f32 0.2, %v340_v18  ;;  %vm356_vm4 = vcmp.gt.f32.partialorder %v340_v18, 0.0 }
 0x149   :  { %v420_v16 = vsel %vm127_vm5, %v402_v14, 0.0  ;;  %v389_v27 = vsel %vm357_vm6, %v341_v23, %v373_v25  ;;  %v378_v32 = vmul.f32 0.2, %v346_v28  ;;  %vm362_vm7 = vcmp.gt.f32.partialorder %v346_v28, 0.0 }
 0x14a   :  { %439 = vadd.xlane.f32.xlu1 %v438_v29  ;;  %v387_v17 = vsel %vm355_vm2, %v339_v13, %v371_v40  ;;  %v388_v22 = vsel %vm356_vm4, %v340_v18, %v372_v20  ;;  %v405_v29 = vmul.f32 %v2899_v41, %v389_v27  ;;  %v347_v36 = vadd.f32 %v2969_v12, %v2884_v30 }
 0x14b   :  { %v403_v19 = vmul.f32 %v2899_v41, %v387_v17  ;;  %v404_v24 = vmul.f32 %v2899_v41, %v388_v22  ;;  %v394_v34 = vsel %vm362_vm7, %v346_v28, %v378_v32  ;;  %v352_v8 = vadd.f32 %v2993_v48, %v2910_v52 }
 0x14c   :  { %436 = vadd.xlane.f32.xlu0 %v435_v37  ;;  %v429_v33 = vsel %vm127_vm5, %v405_v29, 0.0  ;;  %v410_v35 = vmul.f32 %v2899_v41, %v394_v34  ;;  %v379_v49 = vmul.f32 0.2, %v347_v36  ;;  %vm363_vm8 = vcmp.gt.f32.partialorder %v347_v36, 0.0 }
 0x14d   :  { %287 = vadd.xlane.f32.xlu2 %v286_v39  ;;  %v423_v21 = vsel %vm127_vm5, %v403_v19, 0.0  ;;  %v426_v26 = vsel %vm127_vm5, %v404_v24, 0.0  ;;  %v384_v43 = vmul.f32 0.2, %v352_v8  ;;  %vm368_vm9 = vcmp.gt.f32.partialorder %v352_v8, 0.0 }
 0x14e   :  { %v444_v37 = vsel %vm127_vm5, %v410_v35, 0.0  ;;  %v395_v39 = vsel %vm363_vm8, %v347_v36, %v379_v49 }
 0x14f   :  { %v411_v42 = vmul.f32 %v2899_v41, %v395_v39  ;;  %v400_v45 = vsel %vm368_vm9, %v352_v8, %v384_v43 }
 0x150   :  { %v416_v52 = vmul.f32 %v2899_v41, %v400_v45 }
 0x151   :  { %v447_v44 = vsel %vm127_vm5, %v411_v42, 0.0 }
 0x152   :  { %442 = vadd.xlane.f32.xlu1 %v441_v38  ;;  %v462_v31 = vsel %vm127_vm5, %v416_v52, 0.0 }
 0x154   :  { %451 = vadd.xlane.f32.xlu0 %v450_v57 }
 0x155   :  { %305 = vadd.xlane.f32.xlu2 %v304_v58 }
 0x15a   :  { %457 = vadd.xlane.f32.xlu1 %v456_v3 }
 0x15c   :  { %454 = vadd.xlane.f32.xlu0 %v453_v7 }
 0x15d   :  { %418 = vadd.xlane.f32.xlu2 %v417_v9 }
 0x162   :  { %460 = vadd.xlane.f32.xlu1 %v459_v15 }
 0x165   :  { %421 = vadd.xlane.f32.xlu2 %v420_v16 }
 0x16d   :  { %424 = vadd.xlane.f32.xlu2 %v423_v21 }
 0x175   :  { %427 = vadd.xlane.f32.xlu2 %v426_v26 }
 0x17d   :  { %430 = vadd.xlane.f32.xlu2 %v429_v33 }
 0x185   :  { %445 = vadd.xlane.f32.xlu2 %v444_v37 }
 0x18d   :  { %448 = vadd.xlane.f32.xlu2 %v447_v44 }
 0x18e   :  { %v3034_v30 = vpop.f32.mrf.mxu1 }
 0x18f   :  { %v666_v12 = vperm.slane %v3034_v30, 0  ;;  %v662_v46 = vrot.slane %v3034_v30, 4  ;;  %v659_v47 = vrot.slane %v3034_v30, 1  ;;  %v661_v50 = vrot.slane %v3034_v30, 3 }
 0x190   :  { %v665_v48 = vrot.slane %v3034_v30, 7  ;;  %v660_v51 = vrot.slane %v3034_v30, 2  ;;  %v664_v53 = vrot.slane %v3034_v30, 6  ;;  %v663_v59 = vrot.slane %v3034_v30, 5 }
 0x191   :  { %v682_v38 = vadd.f32 %v666_v12, %v3034_v30  ;;  %v3045_v54 = vperm.slane %v662_v46, 0  ;;  %v667_v55 = vperm.slane %v659_v47, 0  ;;  %v3047_v56 = vperm.slane %v661_v50, 0 }
 0x192   :  { %v3049_v57 = vperm.slane %v665_v48, 0  ;;  %v3051_v58 = vperm.slane %v660_v51, 0  ;;  %v3062_v2 = vperm.slane %v664_v53, 0  ;;  %v3071_v14 = vperm.slane %v663_v59, 0 }
 0x193   :  { %vm698_vm10 = vcmp.gt.f32.partialorder %v682_v38, 0.0  ;;  %v714_v60 = vmul.f32 0.2, %v682_v38  ;;  %v690_v61 = vadd.f32 %v3045_v54, %v3034_v30  ;;  %v684_v62 = vadd.f32 %v667_v55, %v3034_v30 }
 0x194   :  { %v688_v63 = vadd.f32 %v3047_v56, %v3034_v30  ;;  %v696_v1 = vadd.f32 %v3049_v57, %v3034_v30  ;;  %v686_v9 = vadd.f32 %v3051_v58, %v3034_v30  ;;  %v694_v21 = vadd.f32 %v3062_v2, %v3034_v30 }
 0x195   :  { %463 = vadd.xlane.f32.xlu2 %v462_v31  ;;  %v730_v3 = vsel %vm698_vm10, %v682_v38, %v714_v60  ;;  %vm706_vm11 = vcmp.gt.f32.partialorder %v690_v61, 0.0  ;;  %v722_v4 = vmul.f32 0.2, %v690_v61  ;;  %vm700_vm12 = vcmp.gt.f32.partialorder %v684_v62, 0.0 }
 0x196   :  { %v3064_v5 = vpop.f32.mrf.mxu1  ;;  %v746_v6 = vmul.f32 %v2899_v41, %v730_v3  ;;  %v716_v7 = vmul.f32 0.2, %v684_v62  ;;  %vm704_vm13 = vcmp.gt.f32.partialorder %v688_v63, 0.0  ;;  %v720_v13 = vmul.f32 0.2, %v688_v63 }
 0x197   :  { %v1081_v10 = vpack.c.bf16 %v3064_v5, %v3034_v30  ;;  %v738_v11 = vsel %vm706_vm11, %v690_v61, %v722_v4  ;;  %vm712_vm14 = vcmp.gt.f32.partialorder %v696_v1, 0.0  ;;  %v728_v20 = vmul.f32 0.2, %v696_v1 }
 0x198   :  { %v3073_v15 = vpop.xlane.xlu2 %272  ;;  %v762_v40 = vsel %vm127_vm5, %v746_v6, 0.0  ;;  %v754_v16 = vmul.f32 %v2899_v41, %v738_v11  ;;  %v732_v17 = vsel %vm700_vm12, %v684_v62, %v716_v7  ;;  %v736_v19 = vsel %vm704_vm13, %v688_v63, %v720_v13 }
 0x199   :  { %763 = vadd.xlane.f32.xlu0 %v762_v40  ;;  %1092 = vmatpush.bf16.msra.mxu3 %v1081_v10  ;;  %v748_v18 = vmul.f32 %v2899_v41, %v732_v17  ;;  %vm702_vm15 = vcmp.gt.f32.partialorder %v686_v9, 0.0  ;;  %v718_v23 = vmul.f32 0.2, %v686_v9  ;;  %v744_v25 = vsel %vm712_vm14, %v696_v1, %v728_v20 }
 0x19a   :  { %v786_v22 = vsel %vm127_vm5, %v754_v16, 0.0  ;;  %v752_v26 = vmul.f32 %v2899_v41, %v736_v19  ;;  %v683_v27 = vadd.f32 %v666_v12, %v3064_v5  ;;  %v726_v29 = vmul.f32 0.2, %v694_v21 }
 0x19b   :  { %787 = vadd.xlane.f32.xlu1 %v786_v22  ;;  %v768_v24 = vsel %vm127_vm5, %v748_v18, 0.0  ;;  %v734_v28 = vsel %vm702_vm15, %v686_v9, %v718_v23  ;;  %v692_v32 = vadd.f32 %v3071_v14, %v3034_v30  ;;  %v760_v33 = vmul.f32 %v2899_v41, %v744_v25 }
 0x19c   :  { %vm710_vm0 = vcmp.gt.f32.partialorder %v694_v21, 0.0  ;;  %v715_v34 = vmul.f32 0.2, %v683_v27  ;;  %v780_v35 = vsel %vm127_vm5, %v752_v26, 0.0  ;;  %v750_v49 = vmul.f32 %v2899_v41, %v734_v28 }
 0x19d   :  { %769 = vadd.xlane.f32.xlu2 %v768_v24  ;;  %vm699_vm1 = vcmp.gt.f32.partialorder %v683_v27, 0.0  ;;  %v742_v37 = vsel %vm710_vm0, %v694_v21, %v726_v29  ;;  %v724_v39 = vmul.f32 0.2, %v692_v32  ;;  %v685_v8 = vadd.f32 %v667_v55, %v3064_v5  ;;  %v3126_v24 = vpop.xlane.xlu1 %266 }
 0x19e   :  { %v804_v42 = vsel %vm127_vm5, %v760_v33, 0.0  ;;  %vm708_vm2 = vcmp.gt.f32.partialorder %v692_v32, 0.0  ;;  %v731_v43 = vsel %vm699_vm1, %v683_v27, %v715_v34  ;;  %v689_v44 = vadd.f32 %v3047_v56, %v3064_v5 }
 0x19f   :  { %v774_v45 = vsel %vm127_vm5, %v750_v49, 0.0  ;;  %v758_v12 = vmul.f32 %v2899_v41, %v742_v37  ;;  %v740_v46 = vsel %vm708_vm2, %v692_v32, %v724_v39  ;;  %v717_v47 = vmul.f32 0.2, %v685_v8 }
 0x1a0   :  { %v3087_v36 = vpop.xlane.xlu2 %278  ;;  %v691_v50 = vadd.f32 %v3045_v54, %v3064_v5  ;;  %v747_v52 = vmul.f32 %v2899_v41, %v731_v43  ;;  %vm701_vm4 = vcmp.gt.f32.partialorder %v685_v8, 0.0  ;;  %v721_v48 = vmul.f32 0.2, %v689_v44 }
 0x1a1   :  { %781 = vadd.xlane.f32.xlu0 %v780_v35  ;;  %v798_v53 = vsel %vm127_vm5, %v758_v12, 0.0  ;;  %v756_v38 = vmul.f32 %v2899_v41, %v740_v46  ;;  %vm705_vm6 = vcmp.gt.f32.partialorder %v689_v44, 0.0  ;;  %v733_v55 = vsel %vm701_vm4, %v685_v8, %v717_v47  ;;  %v3140_v12 = vpop.xlane.xlu0 %296 }
 0x1a2   :  { %v723_v56 = vmul.f32 0.2, %v691_v50  ;;  %v687_v59 = vadd.f32 %v3051_v58, %v3064_v5  ;;  %v818_v60 = vperm.slane %v3064_v5, 0  ;;  %v765_v54 = vsel %vm127_vm5, %v747_v52, 0.0 }
 0x1a3   :  { %805 = vadd.xlane.f32.xlu1 %v804_v42  ;;  %vm707_vm7 = vcmp.gt.f32.partialorder %v691_v50, 0.0  ;;  %v737_v61 = vsel %vm705_vm6, %v689_v44, %v721_v48  ;;  %v695_v62 = vadd.f32 %v3062_v2, %v3064_v5  ;;  %v792_v31 = vsel %vm127_vm5, %v756_v38, 0.0 }
 0x1a4   :  { %v749_v63 = vmul.f32 %v2899_v41, %v733_v55  ;;  %v739_v1 = vsel %vm707_vm7, %v691_v50, %v723_v56  ;;  %v719_v3 = vmul.f32 0.2, %v687_v59  ;;  %v835_v4 = vadd.f32 %v818_v60, %v3064_v5 }
 0x1a5   :  { %775 = vadd.xlane.f32.xlu2 %v774_v45  ;;  %v812_v58 = vrot.slane %v3064_v5, 2  ;;  %v753_v6 = vmul.f32 %v2899_v41, %v737_v61  ;;  %vm703_vm8 = vcmp.gt.f32.partialorder %v687_v59, 0.0  ;;  %v727_v7 = vmul.f32 0.2, %v695_v62 }
 0x1a6   :  { %v771_v10 = vsel %vm127_vm5, %v749_v63, 0.0  ;;  %v755_v2 = vmul.f32 %v2899_v41, %v739_v1  ;;  %vm711_vm9 = vcmp.gt.f32.partialorder %v695_v62, 0.0  ;;  %v693_v11 = vadd.f32 %v3071_v14, %v3064_v5 }
 0x1a7   :  { %v735_v13 = vsel %vm703_vm8, %v687_v59, %v719_v3  ;;  %v867_v40 = vmul.f32 0.2, %v835_v4  ;;  %v820_v16 = vperm.slane %v812_v58, 0  ;;  %v811_v17 = vrot.slane %v3064_v5, 1 }
 0x1a8   :  { %v3100_v51 = vpop.xlane.xlu2 %290  ;;  %v783_v18 = vsel %vm127_vm5, %v753_v6, 0.0  ;;  %vm851_vm10 = vcmp.gt.f32.partialorder %v835_v4, 0.0  ;;  %v743_v19 = vsel %vm711_vm9, %v695_v62, %v727_v7  ;;  %v834_v20 = vadd.f32 %v818_v60, %v3034_v30 }
 0x1a9   :  { %799 = vadd.xlane.f32.xlu0 %v798_v53  ;;  %v789_v21 = vsel %vm127_vm5, %v755_v2, 0.0  ;;  %v751_v22 = vmul.f32 %v2899_v41, %v735_v13  ;;  %v725_v23 = vmul.f32 0.2, %v693_v11  ;;  %v883_v14 = vsel %vm851_vm10, %v835_v4, %v867_v40  ;;  %v3145_v53 = vpop.xlane.xlu1 %284  ;;  %v3163_v40 = vpop.xlane.xlu0 %275 }
 0x1aa   :  { %v839_v25 = vadd.f32 %v820_v16, %v3064_v5  ;;  %v819_v26 = vperm.slane %v811_v17, 0  ;;  %v813_v27 = vrot.slane %v3064_v5, 3  ;;  %v759_v28 = vmul.f32 %v2899_v41, %v743_v19 }
 0x1ab   :  { %766 = vadd.xlane.f32.xlu1 %v765_v54  ;;  %vm709_vm11 = vcmp.gt.f32.partialorder %v693_v11, 0.0  ;;  %v866_v29 = vmul.f32 0.2, %v834_v20  ;;  %v777_v33 = vsel %vm127_vm5, %v751_v22, 0.0  ;;  %v899_v34 = vmul.f32 %v2899_v41, %v883_v14 }
 0x1ac   :  { %vm850_vm12 = vcmp.gt.f32.partialorder %v834_v20, 0.0  ;;  %v741_v35 = vsel %vm709_vm11, %v693_v11, %v725_v23  ;;  %v871_v49 = vmul.f32 0.2, %v839_v25  ;;  %v836_v37 = vadd.f32 %v819_v26, %v3034_v30 }
 0x1ad   :  { %793 = vadd.xlane.f32.xlu2 %v792_v31  ;;  %v821_v39 = vperm.slane %v813_v27, 0  ;;  %v801_v8 = vsel %vm127_vm5, %v759_v28, 0.0  ;;  %vm855_vm13 = vcmp.gt.f32.partialorder %v839_v25, 0.0  ;;  %v882_v42 = vsel %vm850_vm12, %v834_v20, %v866_v29 }
 0x1ae   :  { %v837_v43 = vadd.f32 %v819_v26, %v3064_v5  ;;  %v917_v44 = vsel %vm127_vm5, %v899_v34, 0.0  ;;  %v757_v45 = vmul.f32 %v2899_v41, %v741_v35  ;;  %v887_v46 = vsel %vm855_vm13, %v839_v25, %v871_v49 }
 0x1af   :  { %v868_v47 = vmul.f32 0.2, %v836_v37  ;;  %v840_v50 = vadd.f32 %v821_v39, %v3034_v30  ;;  %v815_v52 = vrot.slane %v3064_v5, 5  ;;  %v898_v48 = vmul.f32 %v2899_v41, %v882_v42 }
 0x1b0   :  { %v3115_v9 = vpop.xlane.xlu2 %308  ;;  %vm852_vm14 = vcmp.gt.f32.partialorder %v836_v37, 0.0  ;;  %v869_v38 = vmul.f32 0.2, %v837_v43  ;;  %v795_v56 = vsel %vm127_vm5, %v757_v45, 0.0  ;;  %v903_v59 = vmul.f32 %v2899_v41, %v887_v46 }
 0x1b1   :  { %772 = vadd.xlane.f32.xlu0 %v771_v10  ;;  %vm853_vm15 = vcmp.gt.f32.partialorder %v837_v43, 0.0  ;;  %v841_v60 = vadd.f32 %v821_v39, %v3064_v5  ;;  %v884_v54 = vsel %vm852_vm14, %v836_v37, %v868_v47  ;;  %v872_v61 = vmul.f32 0.2, %v840_v50  ;;  %v3169_v20 = vpop.xlane.xlu1 %302  ;;  %v3187_v46 = vpop.xlane.xlu0 %293 }
 0x1b2   :  { %v3152_v62 = vperm.slane %v815_v52, 0  ;;  %v814_v31 = vrot.slane %v3064_v5, 4  ;;  %v914_v63 = vsel %vm127_vm5, %v898_v48, 0.0  ;;  %vm856_vm0 = vcmp.gt.f32.partialorder %v840_v50, 0.0 }
 0x1b3   :  { %784 = vadd.xlane.f32.xlu1 %v783_v18  ;;  %v885_v1 = vsel %vm853_vm15, %v837_v43, %v869_v38  ;;  %v838_v3 = vadd.f32 %v820_v16, %v3034_v30  ;;  %v929_v4 = vsel %vm127_vm5, %v903_v59, 0.0  ;;  %v900_v58 = vmul.f32 %v2899_v41, %v884_v54 }
 0x1b4   :  { %v873_v6 = vmul.f32 0.2, %v841_v60  ;;  %v888_v7 = vsel %vm856_vm0, %v840_v50, %v872_v61  ;;  %v845_v10 = vadd.f32 %v3152_v62, %v3064_v5  ;;  %v822_v2 = vperm.slane %v814_v31, 0 }
 0x1b5   :  { %790 = vadd.xlane.f32.xlu2 %v789_v21  ;;  %v816_v11 = vrot.slane %v3064_v5, 6  ;;  %v901_v13 = vmul.f32 %v2899_v41, %v885_v1  ;;  %vm857_vm1 = vcmp.gt.f32.partialorder %v841_v60, 0.0  ;;  %v870_v17 = vmul.f32 0.2, %v838_v3 }
 0x1b6   :  { %v920_v18 = vsel %vm127_vm5, %v900_v58, 0.0  ;;  %v904_v19 = vmul.f32 %v2899_v41, %v888_v7  ;;  %vm854_vm2 = vcmp.gt.f32.partialorder %v838_v3, 0.0  ;;  %v889_v21 = vsel %vm857_vm1, %v841_v60, %v873_v6 }
 0x1b7   :  { %v877_v22 = vmul.f32 0.2, %v845_v10  ;;  %v842_v23 = vadd.f32 %v822_v2, %v3034_v30  ;;  %v824_v14 = vperm.slane %v816_v11, 0  ;;  %v481_v25 = vlaneseq }
 0x1b8   :  { %v3131_v32 = vpop.xlane.xlu2 %269  ;;  %v923_v26 = vsel %vm127_vm5, %v901_v13, 0.0  ;;  %vm861_vm4 = vcmp.gt.f32.partialorder %v845_v10, 0.0  ;;  %v886_v27 = vsel %vm854_vm2, %v838_v3, %v870_v17  ;;  %v843_v28 = vadd.f32 %v822_v2, %v3064_v5 }
 0x1b9   :  { %778 = vadd.xlane.f32.xlu0 %v777_v33  ;;  %v932_v29 = vsel %vm127_vm5, %v904_v19, 0.0  ;;  %v905_v33 = vmul.f32 %v2899_v41, %v889_v21  ;;  %v893_v34 = vsel %vm861_vm4, %v845_v10, %v877_v22  ;;  %v874_v35 = vmul.f32 0.2, %v842_v23  ;;  %v312_v21 = vpop.xlane.xlu0 %311 }
 0x1ba   :  { %v846_v49 = vadd.f32 %v824_v14, %v3034_v30  ;;  %v3177_v37 = vand.u32 127, %v481_v25  ;;  %v902_v39 = vmul.f32 %v2899_v41, %v886_v27  ;;  %vm858_vm6 = vcmp.gt.f32.partialorder %v842_v23, 0.0  ;;  %v2781_v25 = vld [vmem:[#allocation2 + $0x10] ss:$0 sm:$0xff] }
 0x1bb   :  { %802 = vadd.xlane.f32.xlu1 %v801_v8  ;;  %v875_v8 = vmul.f32 0.2, %v843_v28  ;;  %v909_v45 = vmul.f32 %v2899_v41, %v893_v34  ;;  %vm859_vm7 = vcmp.gt.f32.partialorder %v843_v28, 0.0  ;;  %v890_v47 = vsel %vm858_vm6, %v842_v23, %v874_v35 }
 0x1bc   :  { %v3181_v42 = vadd.s32 4294967288, %v3177_v37  ;;  %v878_v50 = vmul.f32 0.2, %v846_v49  ;;  %v847_v52 = vadd.f32 %v824_v14, %v3064_v5  ;;  %v817_v48 = vrot.slane %v3064_v5, 7 }
 0x1bd   :  { %918 = vadd.xlane.f32.xlu2 %v917_v44  ;;  %v935_v44 = vsel %vm127_vm5, %v905_v33, 0.0  ;;  %v926_v38 = vsel %vm127_vm5, %v902_v39, 0.0  ;;  %vm862_vm8 = vcmp.gt.f32.partialorder %v846_v49, 0.0  ;;  %vm486_vm9 = vcmask 130112  }
 0x1be   :  { %v485_v59 = vperm.slane %v3131_v32, %v3181_v42  ;;  %v891_v60 = vsel %vm859_vm7, %v843_v28, %v875_v8  ;;  %v844_v54 = vadd.f32 %v3152_v62, %v3034_v30  ;;  %v483_v61 = vperm.slane %v3126_v24, %v3177_v37 }
 0x1bf   :  { %v488_v31 = vperm.slane %v3073_v15, %v3177_v37  ;;  %v906_v1 = vmul.f32 %v2899_v41, %v890_v47  ;;  %v894_v3 = vsel %vm862_vm8, %v846_v49, %v878_v50  ;;  %v697_v32 = vadd.f32 %v3049_v57, %v3064_v5 }
 0x1c0   :  { %v3147_v55 = vpop.xlane.xlu2 %287  ;;  %v825_v58 = vperm.slane %v817_v48, 0  ;;  %v494_v62 = vperm.slane %v3145_v53, %v3177_v37  ;;  %v489_v24 = vperm.slane %v3163_v40, %v3181_v42  ;;  %v907_v6 = vmul.f32 %v2899_v41, %v891_v60 }
 0x1c1   :  { %796 = vadd.xlane.f32.xlu0 %v795_v56  ;;  %v282_v56 = vpop.xlane.xlu1 %281  ;;  %vm863_vm10 = vcmp.gt.f32.partialorder %v847_v52, 0.0  ;;  %v491_v15 = vperm.slane %v3087_v36, %v3177_v37  ;;  %vm509_vm11 = vcmask 1041409   ;;  %v487_v7 = vsel %vm486_vm9, %v485_v59, %v483_v61 }
 0x1c2   :  { %v876_v10 = vmul.f32 0.2, %v844_v54  ;;  %v495_v57 = vperm.slane %v3147_v55, %v3181_v42  ;;  %v938_v53 = vsel %vm127_vm5, %v906_v1, 0.0  ;;  %v910_v11 = vmul.f32 %v2899_v41, %v894_v3 }
 0x1c3   :  { %915 = vadd.xlane.f32.xlu1 %v914_v63  ;;  %v947_v63 = vsel %vm127_vm5, %v909_v45, 0.0  ;;  %vm860_vm12 = vcmp.gt.f32.partialorder %v844_v54, 0.0  ;;  %v492_v13 = vperm.slane %v282_v56, %v3181_v42  ;;  %v729_v17 = vmul.f32 0.2, %v697_v32 }
 0x1c4   :  { %v848_v36 = vadd.f32 %v825_v58, %v3034_v30  ;;  %vm511_vm13 = vcmask 1042434   ;;  %v941_v19 = vsel %vm127_vm5, %v907_v6, 0.0  ;;  %vm713_vm14 = vcmp.gt.f32.partialorder %v697_v32, 0.0 }
 0x1c5   :  { %930 = vadd.xlane.f32.xlu2 %v929_v4  ;;  %v879_v4 = vmul.f32 0.2, %v847_v52  ;;  %v498_v55 = vperm.slane %v3187_v46, %v3181_v42  ;;  %v892_v22 = vsel %vm860_vm12, %v844_v54, %v876_v10  ;;  %v849_v23 = vadd.f32 %v825_v58, %v3064_v5 }
 0x1c6   :  { %vm513_vm15 = vcmask 1043459   ;;  %v496_v14 = vsel %vm486_vm9, %v495_v57, %v494_v62  ;;  %v950_v30 = vsel %vm127_vm5, %v910_v11, 0.0  ;;  %v497_v27 = vperm.slane %v3100_v51, %v3177_v37 }
 0x1c7   :  { %v895_v40 = vsel %vm863_vm10, %v847_v52, %v879_v4  ;;  %v493_v28 = vsel %vm486_vm9, %v492_v13, %v491_v15  ;;  %v745_v33 = vsel %vm713_vm14, %v697_v32, %v729_v17  ;;  %v880_v34 = vmul.f32 0.2, %v848_v36 }
 0x1c8   :  { %v3165_v16 = vpop.xlane.xlu2 %305  ;;  %v908_v5 = vmul.f32 %v2781_v25, %v892_v22  ;;  %vm864_vm0 = vcmp.gt.f32.partialorder %v848_v36, 0.0  ;;  %v881_v8 = vmul.f32 0.2, %v849_v23  ;;  %vm515_vm1 = vcmask 1044484  }
 0x1c9   :  { %921 = vadd.xlane.f32.xlu0 %v920_v18  ;;  %v490_v18 = vsel %vm486_vm9, %v489_v24, %v488_v31  ;;  %v504_v39 = vperm.slane %v3165_v16, %v3181_v42  ;;  %v761_v46 = vmul.f32 %v2781_v25, %v745_v33  ;;  %vm865_vm2 = vcmp.gt.f32.partialorder %v849_v23, 0.0  ;;  %v434_v31 = vpop.xlane.xlu0 %433 }
 0x1ca   :  { %v510_v41 = vsel %vm509_vm11, %v490_v18, %v487_v7  ;;  %v503_v47 = vperm.slane %v3169_v20, %v3177_v37  ;;  %v499_v50 = vsel %vm486_vm9, %v498_v55, %v497_v27  ;;  %v896_v52 = vsel %vm864_vm0, %v848_v36, %v880_v34 }
 0x1cb   :  { %924 = vadd.xlane.f32.xlu1 %v923_v26  ;;  %v911_v26 = vmul.f32 %v2781_v25, %v895_v40  ;;  %v512_v35 = vsel %vm511_vm13, %v493_v28, %v510_v41  ;;  %v500_v48 = vperm.slane %v3140_v12, %v3177_v37  ;;  %v944_v16 = vsel %vm127_vm5, %v908_v5, 0.0 }
 0x1cc   :  { %v514_v49 = vsel %vm513_vm15, %v496_v14, %v512_v35  ;;  %vm517_vm4 = vcmask 1045509   ;;  %v507_v56 = vperm.slane %v312_v21, %v3181_v42  ;;  %v505_v59 = vsel %vm486_vm9, %v504_v39, %v503_v47 }
 0x1cd   :  { %933 = vadd.xlane.f32.xlu2 %v932_v29  ;;  %v300_v29 = vpop.xlane.xlu1 %299  ;;  %v953_v45 = vsel %vm127_vm5, %v911_v26, 0.0  ;;  %v897_v60 = vsel %vm865_vm2, %v849_v23, %v881_v8  ;;  %vm519_vm6 = vcmask 1046534   ;;  %v506_v20 = vperm.slane %v3115_v9, %v3177_v37 }
 0x1ce   :  { %v501_v51 = vperm.slane %v300_v29, %v3181_v42  ;;  %v807_v61 = vsel %vm127_vm5, %v761_v46, 0.0  ;;  %v912_v12 = vmul.f32 %v2781_v25, %v896_v52  ;;  %v913_v1 = vmul.f32 %v2781_v25, %v897_v60 }
 0x1cf   :  { %vm521_vm7 = vcmask 1047559   ;;  %v508_v62 = vsel %vm486_vm9, %v507_v56, %v506_v20  ;;  %vm572_vm8 = vcmask 130048   ;;  %v547_v18 = vperm.slane %v434_v31, %v3181_v42 }
 0x1d0   :  { %v3183_v43 = vpop.xlane.xlu2 %418  ;;  %v502_v54 = vsel %vm486_vm9, %v501_v51, %v500_v48  ;;  %v956_v58 = vsel %vm127_vm5, %v912_v12, 0.0  ;;  %v959_v24 = vsel %vm127_vm5, %v913_v1, 0.0  ;;  %vm1146_vm12 = vcmask 1042432  }
 0x1d1   :  { %936 = vadd.xlane.f32.xlu0 %v935_v44  ;;  %v437_v15 = vpop.xlane.xlu0 %436 }
 0x1d2   :  { %v549_v23 = vperm.slane %v437_v15, %v3177_v37 }
 0x1d3   :  { %927 = vadd.xlane.f32.xlu1 %v926_v38  ;;  %v516_v38 = vsel %vm515_vm1, %v499_v50, %v514_v49 }
 0x1d5   :  { %948 = vadd.xlane.f32.xlu2 %v947_v63  ;;  %v518_v63 = vsel %vm517_vm4, %v502_v54, %v516_v38  ;;  %v440_v4 = vpop.xlane.xlu1 %439 }
 0x1d6   :  { %v520_v3 = vsel %vm519_vm6, %v505_v59, %v518_v63  ;;  %v550_v26 = vperm.slane %v440_v4, %v3181_v42 }
 0x1d7   :  { %v3256_v9 = vsel %vm521_vm7, %v508_v62, %v520_v3 }
 0x1d8   :  { %v3214_v2 = vpop.xlane.xlu2 %421  ;;  %v573_v6 = vsel %vm572_vm8, %v3256_v9, -inf  ;;  %v551_v33 = vsel %vm486_vm9, %v550_v26, %v549_v23 }
 0x1d9   :  { %939 = vadd.xlane.f32.xlu0 %v938_v53  ;;  %v452_v53 = vpop.xlane.xlu0 %451  ;;  %v541_v17 = vperm.slane %v3214_v2, %v3181_v42 }
 0x1db   :  { %942 = vadd.xlane.f32.xlu1 %v941_v19  ;;  %v540_v19 = vperm.slane %v3183_v43, %v3177_v37  ;;  %v556_v43 = vperm.slane %v452_v53, %v3181_v42 }
 0x1dd   :  { %951 = vadd.xlane.f32.xlu2 %v950_v30  ;;  %v443_v10 = vpop.xlane.xlu1 %442  ;;  %v542_v14 = vsel %vm486_vm9, %v541_v17, %v540_v19 }
 0x1de   :  { %v552_v30 = vperm.slane %v443_v10, %v3177_v37 }
 0x1e0   :  { %v425_v44 = vpop.xlane.xlu2 %424 }
 0x1e1   :  { %954 = vadd.xlane.f32.xlu0 %v953_v45  ;;  %v543_v36 = vperm.slane %v425_v44, %v3177_v37  ;;  %v455_v27 = vpop.xlane.xlu0 %454 }
 0x1e2   :  { %v558_v35 = vperm.slane %v455_v27, %v3177_v37 }
 0x1e3   :  { %945 = vadd.xlane.f32.xlu1 %v944_v16 }
 0x1e5   :  { %808 = vadd.xlane.f32.xlu2 %v807_v61  ;;  %v458_v13 = vpop.xlane.xlu1 %457 }
 0x1e6   :  { %v559_v8 = vperm.slane %v458_v13, %v3181_v42 }
 0x1e8   :  { %v428_v32 = vpop.xlane.xlu2 %427  ;;  %v560_v47 = vsel %vm486_vm9, %v559_v8, %v558_v35 }
 0x1e9   :  { %957 = vadd.xlane.f32.xlu0 %v956_v58  ;;  %v544_v11 = vperm.slane %v428_v32, %v3181_v42 }
 0x1eb   :  { %960 = vadd.xlane.f32.xlu1 %v959_v24  ;;  %v545_v55 = vsel %vm486_vm9, %v544_v11, %v543_v36 }
 0x1ec   :  { %v564_v25 = vsel %vm509_vm11, %v545_v55, %v542_v14 }
 0x1ed   :  { %574 = vmax.xlane.f32.xlu2 %v573_v6  ;;  %v461_v5 = vpop.xlane.xlu1 %460 }
 0x1ee   :  { %v561_v45 = vperm.slane %v461_v5, %v3177_v37 }
 0x1f0   :  { %v431_v7 = vpop.xlane.xlu2 %430 }
 0x1f1   :  { %v546_v40 = vperm.slane %v431_v7, %v3177_v37 }
 0x1f3   :  { %v548_v21 = vsel %vm486_vm9, %v547_v18, %v546_v40 }
 0x1f4   :  { %v565_v28 = vsel %vm511_vm13, %v548_v21, %v564_v25 }
 0x1f5   :  { %v566_v49 = vsel %vm513_vm15, %v551_v33, %v565_v28 }
 0x1f8   :  { %v446_v57 = vpop.xlane.xlu2 %445 }
 0x1f9   :  { %v553_v41 = vperm.slane %v446_v57, %v3181_v42 }
 0x1fb   :  { %v554_v29 = vsel %vm486_vm9, %v553_v41, %v552_v30 }
 0x1fc   :  { %v567_v39 = vsel %vm515_vm1, %v554_v29, %v566_v49 }
 0x200   :  { %v449_v22 = vpop.xlane.xlu2 %448 }
 0x201   :  { %v555_v2 = vperm.slane %v449_v22, %v3177_v37 }
 0x203   :  { %v557_v34 = vsel %vm486_vm9, %v556_v43, %v555_v2 }
 0x204   :  { %v568_v44 = vsel %vm517_vm4, %v557_v34, %v567_v39 }
 0x205   :  { %v569_v52 = vsel %vm519_vm6, %v560_v47, %v568_v44 }
 0x208   :  { %v464_v51 = vpop.xlane.xlu2 %463 }
 0x209   :  { %v562_v46 = vperm.slane %v464_v51, %v3181_v42 }
 0x20b   :  { %v563_v50 = vsel %vm486_vm9, %v562_v46, %v561_v45 }
 0x20c   :  { %v764_v48 = vpop.xlane.xlu0 %763  ;;  %v3294_v16 = vsel %vm521_vm7, %v563_v50, %v569_v52 }
 0x20d   :  { %v576_v38 = vsel %vm572_vm8, %v3294_v16, -inf  ;;  %v978_v10 = vperm.slane %v764_v48, %v3177_v37 }
 0x20e   :  { %577 = vmax.xlane.f32.xlu0 %v576_v38  ;;  %v788_v56 = vpop.xlane.xlu1 %787 }
 0x20f   :  { %v990_v22 = vperm.slane %v788_v56, %v3177_v37 }
 0x210   :  { %v770_v59 = vpop.xlane.xlu2 %769 }
 0x211   :  { %v981_v6 = vperm.slane %v770_v59, %v3177_v37 }
 0x214   :  { %v782_v60 = vpop.xlane.xlu0 %781 }
 0x215   :  { %v987_v18 = vperm.slane %v782_v60, %v3177_v37 }
 0x216   :  { %v3298_v20 = vpop.xlane.xlu1 %805 }
 0x217   :  { %v999_v59 = vperm.slane %v3298_v20, %v3177_v37 }
 0x218   :  { %v776_v54 = vpop.xlane.xlu2 %775 }
 0x219   :  { %v984_v7 = vperm.slane %v776_v54, %v3177_v37 }
 0x21c   :  { %v3300_v61 = vpop.xlane.xlu0 %799 }
 0x21e   :  { %v767_v12 = vpop.xlane.xlu1 %766 }
 0x21f   :  { %v979_v15 = vperm.slane %v767_v12, %v3181_v42 }
 0x220   :  { %v794_v31 = vpop.xlane.xlu2 %793 }
 0x221   :  { %v980_v13 = vsel %vm486_vm9, %v979_v15, %v978_v10  ;;  %v993_v39 = vperm.slane %v794_v31, %v3177_v37  ;;  %v996_v31 = vperm.slane %v3300_v61, %v3177_v37 }
 0x224   :  { %v773_v63 = vpop.xlane.xlu0 %772 }
 0x225   :  { %v982_v58 = vperm.slane %v773_v63, %v3181_v42 }
 0x226   :  { %v785_v1 = vpop.xlane.xlu1 %784 }
 0x227   :  { %v983_v57 = vsel %vm486_vm9, %v982_v58, %v981_v6  ;;  %v988_v40 = vperm.slane %v785_v1, %v3181_v42 }
 0x228   :  { %v791_v3 = vpop.xlane.xlu2 %790  ;;  %v1002_v17 = vsel %vm509_vm11, %v983_v57, %v980_v13 }
 0x229   :  { %v991_v55 = vperm.slane %v791_v3, %v3181_v42  ;;  %v989_v41 = vsel %vm486_vm9, %v988_v40, %v987_v18 }
 0x22b   :  { %v992_v14 = vsel %vm486_vm9, %v991_v55, %v990_v22 }
 0x22c   :  { %v779_v4 = vpop.xlane.xlu0 %778 }
 0x22d   :  { %v985_v62 = vperm.slane %v779_v4, %v3181_v42 }
 0x22e   :  { %v3302_v32 = vpop.xlane.xlu1 %802 }
 0x22f   :  { %v986_v53 = vsel %vm486_vm9, %v985_v62, %v984_v7  ;;  %v997_v52 = vperm.slane %v3302_v32, %v3181_v42 }
 0x230   :  { %v919_v24 = vpop.xlane.xlu2 %918  ;;  %v1003_v19 = vsel %vm511_vm13, %v986_v53, %v1002_v17 }
 0x231   :  { %v1004_v23 = vsel %vm513_vm15, %v989_v41, %v1003_v19  ;;  %v1027_v46 = vperm.slane %v919_v24, %v3181_v42  ;;  %v998_v24 = vsel %vm486_vm9, %v997_v52, %v996_v31 }
 0x232   :  { %v1005_v30 = vsel %vm515_vm1, %v992_v14, %v1004_v23 }
 0x234   :  { %v797_v11 = vpop.xlane.xlu0 %796 }
 0x235   :  { %v994_v35 = vperm.slane %v797_v11, %v3181_v42 }
 0x236   :  { %v916_v36 = vpop.xlane.xlu1 %915 }
 0x237   :  { %v1026_v8 = vperm.slane %v916_v36, %v3177_v37  ;;  %v995_v47 = vsel %vm486_vm9, %v994_v35, %v993_v39 }
 0x238   :  { %v931_v21 = vpop.xlane.xlu2 %930  ;;  %v1006_v4 = vsel %vm517_vm4, %v995_v47, %v1005_v30 }
 0x239   :  { %v1033_v44 = vperm.slane %v931_v21, %v3181_v42  ;;  %v1028_v60 = vsel %vm486_vm9, %v1027_v46, %v1026_v8  ;;  %v1007_v10 = vsel %vm519_vm6, %v998_v24, %v1006_v4 }
 0x23c   :  { %v922_v2 = vpop.xlane.xlu0 %921 }
 0x23d   :  { %v1029_v51 = vperm.slane %v922_v2, %v3177_v37 }
 0x23e   :  { %v925_v25 = vpop.xlane.xlu1 %924 }
 0x23f   :  { %v1030_v5 = vperm.slane %v925_v25, %v3181_v42 }
 0x240   :  { %v934_v26 = vpop.xlane.xlu2 %933 }
 0x241   :  { %v1031_v50 = vsel %vm486_vm9, %v1030_v5, %v1029_v51  ;;  %v1035_v32 = vperm.slane %v934_v26, %v3177_v37 }
 0x242   :  { %v1050_v63 = vsel %vm509_vm11, %v1031_v50, %v1028_v60 }
 0x244   :  { %v937_v43 = vpop.xlane.xlu0 %936 }
 0x245   :  { %v1036_v54 = vperm.slane %v937_v43, %v3181_v42 }
 0x246   :  { %v928_v27 = vpop.xlane.xlu1 %927 }
 0x247   :  { %v1032_v49 = vperm.slane %v928_v27, %v3177_v37  ;;  %v1037_v61 = vsel %vm486_vm9, %v1036_v54, %v1035_v32 }
 0x248   :  { %v949_v28 = vpop.xlane.xlu2 %948 }
 0x249   :  { %v1034_v48 = vsel %vm486_vm9, %v1033_v44, %v1032_v49  ;;  %v1042_v58 = vperm.slane %v949_v28, %v3181_v42 }
 0x24a   :  { %v1051_v20 = vsel %vm511_vm13, %v1034_v48, %v1050_v63 }
 0x24b   :  { %v1052_v57 = vsel %vm513_vm15, %v1037_v61, %v1051_v20 }
 0x24c   :  { %v940_v29 = vpop.xlane.xlu0 %939 }
 0x24d   :  { %v1038_v1 = vperm.slane %v940_v29, %v3177_v37 }
 0x24e   :  { %v943_v33 = vpop.xlane.xlu1 %942 }
 0x24f   :  { %v1039_v38 = vperm.slane %v943_v33, %v3181_v42 }
 0x250   :  { %v952_v34 = vpop.xlane.xlu2 %951 }
 0x251   :  { %v1040_v6 = vsel %vm486_vm9, %v1039_v38, %v1038_v1  ;;  %v1044_v36 = vperm.slane %v952_v34, %v3177_v37 }
 0x252   :  { %v1053_v40 = vsel %vm515_vm1, %v1040_v6, %v1052_v57  ;;  %v2639_v57 = vld [vmem:[#allocation2 + $0x12] ss:$0 sm:$0xff]  ;;  %vm1214_vm1 = vcmask 261120  }
 0x254   :  { %v955_v45 = vpop.xlane.xlu0 %954 }
 0x255   :  { %v1045_v53 = vperm.slane %v955_v45, %v3181_v42 }
 0x256   :  { %v946_v56 = vpop.xlane.xlu1 %945 }
 0x257   :  { %v1041_v12 = vperm.slane %v946_v56, %v3177_v37  ;;  %v1046_v41 = vsel %vm486_vm9, %v1045_v53, %v1044_v36  ;;  %v3388_v53 = vld [vmem:[%s3696_s1 + $0x20] sm:$0xff] }
 0x258   :  { %v809_v3 = vpop.xlane.xlu2 %808 }
 0x259   :  { %v1000_v62 = vperm.slane %v809_v3, %v3181_v42  ;;  %v1043_v15 = vsel %vm486_vm9, %v1042_v58, %v1041_v12 }
 0x25a   :  { %v1054_v19 = vsel %vm517_vm4, %v1043_v15, %v1053_v40 }
 0x25b   :  { %v1001_v7 = vsel %vm486_vm9, %v1000_v62, %v999_v59  ;;  %v1055_v2 = vsel %vm519_vm6, %v1046_v41, %v1054_v19 }
 0x25c   :  { %v958_v11 = vpop.xlane.xlu0 %957  ;;  %v1008_v13 = vsel %vm521_vm7, %v1001_v7, %v1007_v10  ;;  %v3382_v10 = vld [vmem:[%s3696_s1 + $0x28] sm:$0xff] }
 0x25d   :  { %v1058_v17 = vsel %vm572_vm8, %v1008_v13, -inf  ;;  %v1047_v55 = vperm.slane %v958_v11, %v3177_v37  ;;  %1224 = vmatpush.bf16.msrb.mxu2 %v3382_v10  ;;  %1294 = vmatpush.bf16.msrb.mxu3 %v3382_v10 }
 0x25e   :  { %1059 = vmax.xlane.f32.xlu1 %v1058_v17  ;;  %v961_v18 = vpop.xlane.xlu1 %960  ;;  %1489 = vmatpush.bf16.msrb.mxu1 %v3382_v10 }
 0x25f   :  { %v1048_v21 = vperm.slane %v961_v18, %v3181_v42 }
 0x260   :  { %v575_v22 = vpop.xlane.xlu2 %574 }
 0x261   :  { %v579_v23 = vsub.f32 %v3256_v9, %v575_v22  ;;  %v1049_v14 = vsel %vm486_vm9, %v1048_v21, %v1047_v55  ;;  %1225 = vmatpush.bf16.msrb.mxu2 %v3388_v53  ;;  %1295 = vmatpush.bf16.msrb.mxu3 %v3388_v53 }
 0x262   :  { %v1056_v30 = vsel %vm521_vm7, %v1049_v14, %v1055_v2  ;;  %1490 = vmatpush.bf16.msrb.mxu1 %v3388_v53 }
 0x263   :  { %v581_v25 = vmul.f32 1.442695, %v579_v23  ;;  %v1061_v26 = vsel %vm572_vm8, %v1056_v30, -inf  ;;  %v2614_v23 = vld [vmem:[%s3696_s1 + $0x18] sm:$0xff] }
 0x264   :  { %1062 = vmax.xlane.f32.xlu2 %v1061_v26  ;;  %1182 = vmatpush.bf16.msrb.mxu0 %v2614_v23 }
 0x265   :  { %2643 = vpow2.f32 %v581_v25 }
 0x266   :  { %1683 = vmatpush.bf16.msra.mxu1 %v3382_v10 }
 0x268   :  { %1746 = vmatpush.bf16.msra.mxu0 %v3382_v10 }
 0x26a   :  { %1684 = vmatpush.bf16.msra.mxu1 %v3388_v53 }
 0x26b   :  { %v2644_v43 = vpop.eup %2643 }
 0x26c   :  { %v585_v37 = vsel %vm572_vm8, %v2644_v43, 0.0  ;;  %1747 = vmatpush.bf16.msra.mxu0 %v3388_v53 }
 0x26d   :  { %586 = vadd.xlane.f32.xlu0 %v585_v37 }
 0x281   :  { %v578_v42 = vpop.xlane.xlu0 %577 }
 0x282   :  { %v580_v27 = vsub.f32 %v3294_v16, %v578_v42 }
 0x284   :  { %v583_v28 = vmul.f32 1.442695, %v580_v27 }
 0x286   :  { %2645 = vpow2.f32 %v583_v28 }
 0x28c   :  { %v2646_v9 = vpop.eup %2645 }
 0x28d   :  { %v588_v29 = vsel %vm572_vm8, %v2646_v9, 0.0 }
 0x28e   :  { %589 = vadd.xlane.f32.xlu1 %v588_v29 }
 0x2d1   :  { %v1060_v33 = vpop.xlane.xlu1 %1059 }
 0x2d2   :  { %v1064_v34 = vsub.f32 %v1008_v13, %v1060_v33 }
 0x2d4   :  { %v1066_v35 = vmul.f32 1.442695, %v1064_v34 }
 0x2d6   :  { %2647 = vpow2.f32 %v1066_v35 }
 0x2d7   :  { %v1063_v5 = vpop.xlane.xlu2 %1062 }
 0x2d8   :  { %v1065_v49 = vsub.f32 %v1056_v30, %v1063_v5 }
 0x2da   :  { %v1068_v39 = vmul.f32 1.442695, %v1065_v49 }
 0x2dc   :  { %v2648_v8 = vpop.eup %2647  ;;  %2649 = vpow2.f32 %v1068_v39 }
 0x2dd   :  { %v1070_v51 = vsel %vm572_vm8, %v2648_v8, 0.0 }
 0x2de   :  { %1071 = vadd.xlane.f32.xlu2 %v1070_v51 }
 0x2e0   :  { %v587_v45 = vpop.xlane.xlu0 %586 }
 0x2e1   :  { %2651 = vrcp.f32 %v587_v45 }
 0x2e2   :  { %v2650_v44 = vpop.eup %2649 }
 0x2e3   :  { %v1073_v16 = vsel %vm572_vm8, %v2650_v44, 0.0 }
 0x2e4   :  { %1074 = vadd.xlane.f32.xlu0 %v1073_v16  ;;  %v2640_v16 = vld [vmem:[#allocation2 + $0x11] ss:$0 sm:$0xff] }
 0x2e7   :  { %v2652_v47 = vpop.eup %2651 }
 0x2e8   :  { %v593_v52 = vmul.f32 %v2652_v47, %v2644_v43 }
 0x2f8   :  { %1252 = vrot.lane.b32.xlu0 %v2639_v57, %s2842_s30 }
 0x301   :  { %v590_v46 = vpop.xlane.xlu1 %589 }
 0x302   :  { %2653 = vrcp.f32 %v590_v46 }
 0x308   :  { %v2654_v50 = vpop.eup %2653 }
 0x309   :  { %v594_v48 = vmul.f32 %v2654_v50, %v2646_v9 }
 0x30b   :  { %v595_v38 = vpack.c.bf16 %v594_v48, %v593_v52 }
 0x30d   :  { %2536 = vmatmul.msk.bf16.vlgmr.msra.gmra.mxu2 %vm572_vm8, %v595_v38 }
 0x30e   :  { %1359 = vmatpush.bf16.msra.mxu2 %v3382_v10 }
 0x312   :  { %1360 = vmatpush.bf16.msra.mxu2 %v3388_v53 }
 0x31d   :  { %1226 = vmatmul.bf16.vlgmr.msrb.gmra.mxu2 %v2839_v0 }
 0x31e   :  { %1555 = vmatpush.bf16.msrb.mxu2 %v3382_v10 }
 0x322   :  { %1556 = vmatpush.bf16.msrb.mxu2 %v3388_v53 }
 0x351   :  { %v1072_v56 = vpop.xlane.xlu2 %1071 }
 0x352   :  { %2655 = vrcp.f32 %v1072_v56 }
 0x357   :  { %v1075_v59 = vpop.xlane.xlu0 %1074 }
 0x358   :  { %2657 = vrcp.f32 %v1075_v59  ;;  %v2656_v60 = vpop.eup %2655 }
 0x359   :  { %v1078_v12 = vmul.f32 %v2656_v60, %v2648_v8 }
 0x35e   :  { %v2658_v54 = vpop.eup %2657 }
 0x35f   :  { %v1079_v31 = vmul.f32 %v2658_v54, %v2650_v44 }
 0x361   :  { %v1080_v63 = vpack.c.bf16 %v1079_v31, %v1078_v12 }
 0x363   :  { %2539 = vmatmul.msk.bf16.vlgmr.msra.gmra.mxu3 %vm572_vm8, %v1080_v63 }
 0x364   :  { %1424 = vmatpush.bf16.msra.mxu3 %v3382_v10 }
 0x368   :  { %1425 = vmatpush.bf16.msra.mxu3 %v3388_v53 }
 0x36a   :  { %v3413_v26 = vpop.permute.xlu0 %1252 }
 0x390   :  { %v609_v1 = vpop.f32.mrf.mxu2 }
 0x391   :  { %v616_v3 = vmin.f32 %v609_v1, 0.0  ;;  %vm614_vm5 = vcmp.gt.f32.partialorder %v609_v1, 0.0 }
 0x393   :  { %v618_v4 = vmul.f32 1.442695, %v616_v3 }
 0x395   :  { %2659 = vpow2.f32 %v618_v4 }
 0x398   :  { %v611_v32 = vpop.f32.mrf.mxu2 }
 0x399   :  { %v617_v20 = vmin.f32 %v611_v32, 0.0  ;;  %vm615_vm9 = vcmp.gt.f32.partialorder %v611_v32, 0.0 }
 0x39b   :  { %v2660_v58 = vpop.eup %2659  ;;  %v620_v62 = vmul.f32 1.442695, %v617_v20 }
 0x39c   :  { %v2537_v24 = vadd.f32 -1.0, %v2660_v58 }
 0x39d   :  { %2661 = vpow2.f32 %v620_v62 }
 0x39e   :  { %v624_v6 = vsel %vm614_vm5, %v609_v1, %v2537_v24 }
 0x39f   :  { %626 = vxpose.xlu1.b32.start [1/2] (short) (narrow) %v624_v6, 24 }
 0x3a0   :  { %v1227_v25 = vpop.f32.mrf.mxu2 }
 0x3a1   :  { %v1255_v43 = vadd.f32 %v3413_v26, %v1227_v25 }
 0x3a3   :  { %v2662_v61 = vpop.eup %2661  ;;  %1257 = vrot.lane.b32.xlu0 %v1255_v43, %s2842_s30 }
 0x3a4   :  { %v2538_v15 = vadd.f32 -1.0, %v2662_v61 }
 0x3a6   :  { %v625_v7 = vsel %vm615_vm9, %v611_v32, %v2538_v15 }
 0x3a7   :  { %627 = vxpose.xlu1.b32.end [2/2] (short) (narrow) %v625_v7, 24 }
 0x3a8   :  { %v1229_v42 = vpop.f32.mrf.mxu2 }
 0x3e6   :  { %v1094_v11 = vpop.f32.mrf.mxu3 }
 0x3e7   :  { %v1101_v13 = vmin.f32 %v1094_v11, 0.0  ;;  %vm1099_vm10 = vcmp.gt.f32.partialorder %v1094_v11, 0.0 }
 0x3e9   :  { %v1103_v40 = vmul.f32 1.442695, %v1101_v13 }
 0x3eb   :  { %2663 = vpow2.f32 %v1103_v40 }
 0x3ee   :  { %v1096_v17 = vpop.f32.mrf.mxu3 }
 0x3ef   :  { %v1102_v36 = vmin.f32 %v1096_v17, 0.0  ;;  %vm1100_vm11 = vcmp.gt.f32.partialorder %v1096_v17, 0.0 }
 0x3f1   :  { %v2664_v18 = vpop.eup %2663  ;;  %v1105_v19 = vmul.f32 1.442695, %v1102_v36 }
 0x3f2   :  { %v2540_v0 = vadd.f32 -1.0, %v2664_v18 }
 0x3f3   :  { %2665 = vpow2.f32 %v1105_v19 }
 0x3f4   :  { %v1109_v55 = vsel %vm1099_vm10, %v1094_v11, %v2540_v0 }
 0x3f5   :  { %1111 = vxpose.xlu2.b32.start [1/2] (short) (narrow) %v1109_v55, 24 }
 0x3f9   :  { %v2666_v21 = vpop.eup %2665 }
 0x3fa   :  { %v2541_v41 = vadd.f32 -1.0, %v2666_v21 }
 0x3fc   :  { %v1110_v22 = vsel %vm1100_vm11, %v1096_v17, %v2541_v41 }
 0x3fd   :  { %1112 = vxpose.xlu2.b32.end [2/2] (short) (narrow) %v1110_v22, 24 }
 0x443   :  { %v642_v14 = vpop.trf.xlu1 }
 0x44b   :  { %v643_v2 = vpop.trf.xlu1 }
 0x44c   :  { %v1156_v30 = vpack.c.bf16 %v643_v2, %v642_v14 }
 0x44e   :  { %2546 = vmatmul.msk.bf16.vlgmr.msrb.gmra.mxu0 %vm572_vm8, %v1156_v30 }
 0x44f   :  { %2007 = vmatpush.bf16.msrb.mxu0 %v3382_v10 }
 0x453   :  { %2008 = vmatpush.bf16.msrb.mxu0 %v3388_v53  ;;  %v644_v28 = vpop.trf.xlu1 }
 0x48e   :  { %v1127_v37 = vpop.trf.xlu2 }
 0x48f   :  { %v1147_v27 = vrot.slane %v1127_v37, 5 }
 0x491   :  { %v1155_v33 = vsel %vm1146_vm12, %v644_v28, %v1147_v27 }
 0x496   :  { %v1128_v9 = vpop.trf.xlu2 }
 0x497   :  { %v1148_v29 = vrot.slane %v1128_v9, 5  ;;  %v1258_v9 = vpop.permute.xlu0 %1257 }
 0x499   :  { %v1149_v34 = vsel %vm1146_vm12, %v1147_v27, %v1148_v29 }
 0x49a   :  { %v1157_v35 = vpack.c.bf16 %v1149_v34, %v1155_v33 }
 0x49c   :  { %2547 = vmatmul.msk.bf16.gmra.mxu0 %vm572_vm8, %v1157_v35 }
 0x49e   :  { %v1129_v5 = vpop.trf.xlu2 }
 0x49f   :  { %v1150_v49 = vrot.slane %v1129_v5, 5 }
 0x4a1   :  { %v1151_v39 = vsel %vm1146_vm12, %v1148_v29, %v1150_v49 }
 0x4a2   :  { %v1158_v8 = vpack.c.bf16 %v1151_v39, %v1151_v39 }
 0x4ac   :  { %2548 = vmatmul.msk.bf16.gmra.mxu0 %vm572_vm8, %v1158_v8 }
 0x4cb   :  { %v1184_v51 = vpop.f32.mrf.mxu0 }
 0x4cc   :  { %v1185_v47 = vadd.f32 %v2640_v16, %v1184_v51 }
 0x4ce   :  { %v1276_v12 = vrot.slane %v1185_v47, 1  ;;  %v1341_v31 = vrot.slane %v1185_v47, 2  ;;  %v1406_v63 = vrot.slane %v1185_v47, 3  ;;  %v1471_v1 = vrot.slane %v1185_v47, 4 }
 0x4cf   :  { %v1536_v13 = vrot.slane %v1185_v47, 5  ;;  %v1602_v40 = vrot.slane %v1185_v47, 6  ;;  %v1665_v17 = vrot.slane %v1185_v47, 7 }
 0x4d3   :  { %v1186_v44 = vpop.f32.mrf.mxu0 }
 0x4d4   :  { %v3432_v58 = vadd.f32 %v2640_v16, %v1186_v44 }
 0x4d6   :  { %v1794_v18 = vrot.slane %v3432_v58, 1  ;;  %v1859_v19 = vrot.slane %v3432_v58, 2  ;;  %v1924_v0 = vrot.slane %v3432_v58, 3  ;;  %v1989_v41 = vrot.slane %v3432_v58, 4 }
 0x4d7   :  { %v2120_v44 = vrot.slane %v3432_v58, 6 }
 0x519   :  { %v1189_v45 = vpop.f32.mrf.mxu0 }
 0x51a   :  { %v3419_v46 = vadd.f32 %v2640_v16, %v1189_v45  ;;  %v2054_v45 = vrot.slane %v3432_v58, 5 }
 0x51c   :  { %v1199_v50 = vrot.slane %v3419_v46, 2  ;;  %v1278_v3 = vrot.slane %v3419_v46, 3  ;;  %v1343_v4 = vrot.slane %v3419_v46, 4  ;;  %v1408_v32 = vrot.slane %v3419_v46, 5 }
 0x51d   :  { %v1473_v20 = vrot.slane %v3419_v46, 6 }
 0x51e   :  { %v3425_v52 = vsel %vm134_vm3, %v1185_v47, %v1199_v50  ;;  %v3435_v24 = vsel %vm134_vm3, %v1276_v12, %v1278_v3  ;;  %v3438_v6 = vsel %vm134_vm3, %v1341_v31, %v1343_v4  ;;  %v3441_v61 = vsel %vm134_vm3, %v1406_v63, %v1408_v32 }
 0x51f   :  { %v1231_v48 = vadd.f32 %v1227_v25, %v3425_v52  ;;  %v3444_v15 = vsel %vm134_vm3, %v1471_v1, %v1473_v20  ;;  %v2183_v47 = vrot.slane %v3432_v58, 7 }
 0x521   :  { %v1191_v38 = vpop.f32.mrf.mxu0  ;;  %v2557_v56 = vmul.f32 -1.442695, %v1231_v48 }
 0x522   :  { %v3446_v57 = vadd.f32 %v2640_v16, %v1191_v38 }
 0x523   :  { %2667 = vpow2.f32 %v2557_v56 }
 0x524   :  { %v1539_v23 = vrot.slane %v3446_v57, 7  ;;  %v3455_v14 = vsel %vm134_vm3, %v1602_v40, %v3446_v57  ;;  %v1667_v2 = vrot.slane %v3446_v57, 1  ;;  %v1796_v30 = vrot.slane %v3446_v57, 3 }
 0x525   :  { %v1861_v25 = vrot.slane %v3446_v57, 4  ;;  %v1926_v43 = vrot.slane %v3446_v57, 5  ;;  %v1991_v28 = vrot.slane %v3446_v57, 6 }
 0x526   :  { %v3462_v42 = vsel %vm134_vm3, %v1536_v13, %v1539_v23  ;;  %v3465_v27 = vsel %vm134_vm3, %v1665_v17, %v1667_v2  ;;  %v3470_v33 = vsel %vm134_vm3, %v1794_v18, %v1796_v30 }
 0x527   :  { %v3473_v34 = vsel %vm134_vm3, %v1859_v19, %v1861_v25  ;;  %v3476_v35 = vsel %vm134_vm3, %v1924_v0, %v1926_v43  ;;  %v3479_v39 = vsel %vm134_vm3, %v1989_v41, %v1991_v28 }
 0x529   :  { %v2668_v59 = vpop.eup %2667  ;;  %v1194_v60 = vpop.f32.mrf.mxu0 }
 0x52a   :  { %v1235_v54 = vadd.f32 1.0, %v2668_v59  ;;  %v1195_v5 = vadd.f32 %v2640_v16, %v1194_v60  ;;  %v2311_v59 = vrot.slane %v3419_v46, 1 }
 0x52c   :  { %2669 = vrcp.f32 %v1235_v54  ;;  %v1245_v55 = vand.u32 2147483647, %v1235_v54  ;;  %v1247_v21 = vand.u32 2147483648, %v1235_v54  ;;  %vm1241_vm14 = vweird.f32 %v1235_v54 }
 0x52d   :  { %v2057_v48 = vrot.slane %v1195_v5, 7  ;;  %v3486_v38 = vsel %vm134_vm3, %v2120_v44, %v1195_v5  ;;  %v2185_v16 = vrot.slane %v1195_v5, 1  ;;  %v2248_v56 = vrot.slane %v1195_v5, 2 }
 0x52e   :  { %v1248_v29 = vor.u32 1.1754944e-38, %v1247_v21  ;;  %vm1246_vm0 = vcmp.eq.f32.partialorder %v1245_v55, 8.507059e+37  ;;  %v2313_v60 = vrot.slane %v1195_v5, 3 }
 0x52f   :  { %v3490_v12 = vsel %vm134_vm3, %v2054_v45, %v2057_v48  ;;  %v3493_v31 = vsel %vm134_vm3, %v2183_v47, %v2185_v16  ;;  %v3497_v63 = vsel %vm134_vm3, %v3419_v46, %v2248_v56 }
 0x530   :  { %v3500_v1 = vsel %vm134_vm3, %v2311_v59, %v2313_v60 }
 0x531   :  { %v1196_v62 = vpop.f32.mrf.mxu0 }
 0x532   :  { %v2670_v7 = vpop.eup %2669 }
 0x533   :  { %v1237_v11 = vmul.f32 %v2670_v7, %v1235_v54  ;;  %vm1242_vm13 = vweird.f32 %v2670_v7  ;;  %v2376_v54 = vrot.slane %v1195_v5, 4 }
 0x534   :  { %vm1243_vm15 = vmor %vm1241_vm14, %vm1242_vm13 }
 0x535   :  { %v1238_v36 = vsub.f32 1.0, %v1237_v11  ;;  %v3505_v3 = vsel %vm134_vm3, %v1199_v50, %v2376_v54 }
 0x537   :  { %v1239_v22 = vmul.f32 %v2670_v7, %v1238_v36 }
 0x539   :  { %v1240_v37 = vadd.f32 %v2670_v7, %v1239_v22 }
 0x53b   :  { %v1244_v49 = vsel %vm1243_vm15, %v2670_v7, %v1240_v37 }
 0x53c   :  { %v1249_v8 = vsel %vm1246_vm0, %v1248_v29, %v1244_v49 }
 0x53d   :  { %v1260_v51 = vmul.f32 %v1258_v9, %v1249_v8  ;;  %v1267_v62 = vsub.f32 1.0, %v1249_v8  ;;  %v1273_v11 = vmul.f32 0.0, %v1249_v8 }
 0x53f   :  { %1262 = vrot.lane.b32.xlu0 %v1260_v51, %s2842_s30 }
 0x5b1   :  { %v1263_v4 = vpop.permute.xlu0 %1262 }
 0x5b2   :  { %v1265_v32 = vadd.f32 %v1263_v4, %v3425_v52 }
 0x5b4   :  { %2671 = vtanh.f32 %v1265_v32 }
 0x5ba   :  { %v2672_v20 = vpop.eup %2671 }
 0x5bb   :  { %1269 = vrot.lane.b32.xlu0 %v2672_v20, %s2843_s6 }
 0x62d   :  { %v1270_v7 = vpop.permute.xlu0 %1269 }
 0x62e   :  { %v1272_v13 = vmul.f32 %v1270_v7, %v1267_v62 }
 0x630   :  { %v1274_v40 = vadd.f32 %v1273_v11, %v1272_v13 }
 0x632   :  { %v1281_v17 = vpack.c.bf16 %v1274_v40, %v1274_v40 }
 0x634   :  { %1283 = vrot.lane.b32.xlu0 %v1281_v17, %s2843_s6 }
 0x6a6   :  { %v1284_v46 = vpop.permute.xlu0 %1283 }
 0x6a7   :  { %2558 = vmatmul.msk.bf16.vlgmr.msrb.gmra.mxu3 %vm1214_vm1, %v1284_v46 }
 0x6a8   :  { %1618 = vmatpush.bf16.msrb.mxu3 %v3382_v10 }
 0x6ac   :  { %1619 = vmatpush.bf16.msrb.mxu3 %v3388_v53 }
 0x72a   :  { %v1297_v50 = vpop.f32.mrf.mxu3 }
 0x72b   :  { %v1321_v52 = vadd.f32 %v1297_v50, %v3413_v26  ;;  %v1301_v18 = vadd.f32 %v1297_v50, %v3435_v24 }
 0x72d   :  { %1323 = vrot.lane.b32.xlu2 %v1321_v52, %s2842_s30  ;;  %v2559_v19 = vmul.f32 -1.442695, %v1301_v18 }
 0x72f   :  { %2673 = vpow2.f32 %v2559_v19 }
 0x732   :  { %v1299_v36 = vpop.f32.mrf.mxu3 }
 0x735   :  { %v2674_v0 = vpop.eup %2673 }
 0x736   :  { %v1305_v55 = vadd.f32 1.0, %v2674_v0 }
 0x738   :  { %2675 = vrcp.f32 %v1305_v55  ;;  %v1317_v30 = vand.u32 2147483648, %v1305_v55  ;;  %vm1311_vm4 = vweird.f32 %v1305_v55  ;;  %v1315_v25 = vand.u32 2147483647, %v1305_v55 }
 0x73a   :  { %v1318_v37 = vor.u32 1.1754944e-38, %v1317_v30  ;;  %vm1316_vm7 = vcmp.eq.f32.partialorder %v1315_v25, 8.507059e+37 }
 0x73e   :  { %v2676_v21 = vpop.eup %2675 }
 0x73f   :  { %v1307_v41 = vmul.f32 %v2676_v21, %v1305_v55  ;;  %vm1312_vm2 = vweird.f32 %v2676_v21 }
 0x740   :  { %vm1313_vm6 = vmor %vm1311_vm4, %vm1312_vm2 }
 0x741   :  { %v1308_v22 = vsub.f32 1.0, %v1307_v41 }
 0x743   :  { %v1309_v23 = vmul.f32 %v2676_v21, %v1308_v22 }
 0x745   :  { %v1310_v2 = vadd.f32 %v2676_v21, %v1309_v23 }
 0x747   :  { %v1314_v43 = vsel %vm1313_vm6, %v2676_v21, %v1310_v2 }
 0x748   :  { %v1319_v9 = vsel %vm1316_vm7, %v1318_v37, %v1314_v43 }
 0x749   :  { %v1333_v51 = vsub.f32 1.0, %v1319_v9  ;;  %v1339_v45 = vmul.f32 %v1319_v9, %v1274_v40 }
 0x787   :  { %v1324_v28 = vpop.permute.xlu2 %1323 }
 0x788   :  { %v1326_v29 = vmul.f32 %v1324_v28, %v1319_v9 }
 0x78a   :  { %1328 = vrot.lane.b32.xlu0 %v1326_v29, %s2842_s30 }
 0x7fc   :  { %v1329_v5 = vpop.permute.xlu0 %1328 }
 0x7fd   :  { %v1331_v49 = vadd.f32 %v1329_v5, %v3435_v24 }
 0x7ff   :  { %2677 = vtanh.f32 %v1331_v49 }
 0x805   :  { %v2678_v8 = vpop.eup %2677 }
 0x806   :  { %1335 = vrot.lane.b32.xlu1 %v2678_v8, %s2843_s6 }
 0x878   :  { %v1336_v44 = vpop.permute.xlu1 %1335 }
 0x879   :  { %v1338_v47 = vmul.f32 %v1336_v44, %v1333_v51 }
 0x87b   :  { %v1340_v48 = vadd.f32 %v1339_v45, %v1338_v47 }
 0x87d   :  { %v1346_v16 = vpack.c.bf16 %v1340_v48, %v1340_v48 }
 0x87f   :  { %1348 = vrot.lane.b32.xlu0 %v1346_v16, %s2843_s6 }
 0x8f1   :  { %v1349_v56 = vpop.permute.xlu0 %1348 }
 0x8f2   :  { %2560 = vmatmul.msk.bf16.vlgmr.msra.gmra.mxu2 %vm1214_vm1, %v1349_v56 }
 0x8f3   :  { %1812 = vmatpush.bf16.msra.mxu2 %v3382_v10 }
 0x8f7   :  { %1813 = vmatpush.bf16.msra.mxu2 %v3388_v53 }
 0x975   :  { %v1362_v24 = vpop.f32.mrf.mxu2 }
 0x976   :  { %v1386_v59 = vadd.f32 %v1362_v24, %v3413_v26  ;;  %v1366_v54 = vadd.f32 %v1362_v24, %v3438_v6 }
 0x978   :  { %1388 = vrot.lane.b32.xlu0 %v1386_v59, %s2842_s30  ;;  %v2561_v4 = vmul.f32 -1.442695, %v1366_v54 }
 0x97a   :  { %2679 = vpow2.f32 %v2561_v4 }
 0x97d   :  { %v1364_v60 = vpop.f32.mrf.mxu2 }
 0x980   :  { %v2680_v32 = vpop.eup %2679 }
 0x981   :  { %v1370_v20 = vadd.f32 1.0, %v2680_v32 }
 0x983   :  { %2681 = vrcp.f32 %v1370_v20  ;;  %v1382_v17 = vand.u32 2147483648, %v1370_v20  ;;  %vm1376_vm5 = vweird.f32 %v1370_v20  ;;  %v1380_v46 = vand.u32 2147483647, %v1370_v20 }
 0x985   :  { %v1383_v52 = vor.u32 1.1754944e-38, %v1382_v17  ;;  %vm1381_vm10 = vcmp.eq.f32.partialorder %v1380_v46, 8.507059e+37 }
 0x989   :  { %v2682_v62 = vpop.eup %2681 }
 0x98a   :  { %v1372_v7 = vmul.f32 %v2682_v62, %v1370_v20  ;;  %vm1377_vm8 = vweird.f32 %v2682_v62 }
 0x98b   :  { %vm1378_vm9 = vmor %vm1376_vm5, %vm1377_vm8 }
 0x98c   :  { %v1373_v11 = vsub.f32 1.0, %v1372_v7 }
 0x98e   :  { %v1374_v13 = vmul.f32 %v2682_v62, %v1373_v11 }
 0x990   :  { %v1375_v40 = vadd.f32 %v2682_v62, %v1374_v13 }
 0x992   :  { %v1379_v50 = vsel %vm1378_vm9, %v2682_v62, %v1375_v40 }
 0x993   :  { %v1384_v18 = vsel %vm1381_vm10, %v1383_v52, %v1379_v50 }
 0x994   :  { %v1398_v41 = vsub.f32 1.0, %v1384_v18  ;;  %v1404_v23 = vmul.f32 %v1384_v18, %v1340_v48 }
 0x9ea   :  { %v1389_v36 = vpop.permute.xlu0 %1388 }
 0x9eb   :  { %v1391_v19 = vmul.f32 %v1389_v36, %v1384_v18 }
 0x9ed   :  { %1393 = vrot.lane.b32.xlu0 %v1391_v19, %s2842_s30 }
 0xa5f   :  { %v1394_v0 = vpop.permute.xlu0 %1393 }
 0xa60   :  { %v1396_v55 = vadd.f32 %v1394_v0, %v3438_v6 }
 0xa62   :  { %2683 = vtanh.f32 %v1396_v55 }
 0xa68   :  { %v2684_v21 = vpop.eup %2683 }
 0xa69   :  { %1400 = vrot.lane.b32.xlu0 %v2684_v21, %s2843_s6 }
 0xadb   :  { %v1401_v22 = vpop.permute.xlu0 %1400 }
 0xadc   :  { %v1403_v2 = vmul.f32 %v1401_v22, %v1398_v41 }
 0xade   :  { %v1405_v30 = vadd.f32 %v1404_v23, %v1403_v2 }
 0xae0   :  { %v1411_v25 = vpack.c.bf16 %v1405_v30, %v1405_v30 }
 0xae2   :  { %1413 = vrot.lane.b32.xlu0 %v1411_v25, %s2843_s6 }
 0xb54   :  { %v1414_v43 = vpop.permute.xlu0 %1413 }
 0xb55   :  { %2562 = vmatmul.msk.bf16.vlgmr.msra.gmra.mxu3 %vm1214_vm1, %v1414_v43 }
 0xb56   :  { %1877 = vmatpush.bf16.msra.mxu3 %v3382_v10 }
 0xb5a   :  { %1878 = vmatpush.bf16.msra.mxu3 %v3388_v53 }
 0xbd8   :  { %v1427_v6 = vpop.f32.mrf.mxu3 }
 0xbd9   :  { %v1451_v37 = vadd.f32 %v1427_v6, %v3413_v26  ;;  %v1431_v9 = vadd.f32 %v1427_v6, %v3441_v61 }
 0xbdb   :  { %1453 = vrot.lane.b32.xlu0 %v1451_v37, %s2842_s30  ;;  %v2563_v29 = vmul.f32 -1.442695, %v1431_v9 }
 0xbdd   :  { %2685 = vpow2.f32 %v2563_v29 }
 0xbe0   :  { %v1429_v28 = vpop.f32.mrf.mxu3 }
 0xbe3   :  { %v2686_v5 = vpop.eup %2685 }
 0xbe4   :  { %v1435_v49 = vadd.f32 1.0, %v2686_v5 }
 0xbe6   :  { %2687 = vrcp.f32 %v1435_v49  ;;  %v1447_v48 = vand.u32 2147483648, %v1435_v49  ;;  %vm1441_vm12 = vweird.f32 %v1435_v49  ;;  %v1445_v16 = vand.u32 2147483647, %v1435_v49 }
 0xbe8   :  { %v1448_v24 = vor.u32 1.1754944e-38, %v1447_v48  ;;  %vm1446_vm14 = vcmp.eq.f32.partialorder %v1445_v16, 8.507059e+37 }
 0xbec   :  { %v2688_v8 = vpop.eup %2687 }
 0xbed   :  { %v1437_v51 = vmul.f32 %v2688_v8, %v1435_v49  ;;  %vm1442_vm11 = vweird.f32 %v2688_v8 }
 0xbee   :  { %vm1443_vm13 = vmor %vm1441_vm12, %vm1442_vm11 }
 0xbef   :  { %v1438_v44 = vsub.f32 1.0, %v1437_v51 }
 0xbf1   :  { %v1439_v45 = vmul.f32 %v2688_v8, %v1438_v44 }
 0xbf3   :  { %v1440_v47 = vadd.f32 %v2688_v8, %v1439_v45 }
 0xbf5   :  { %v1444_v56 = vsel %vm1443_vm13, %v2688_v8, %v1440_v47 }
 0xbf6   :  { %v1449_v60 = vsel %vm1446_vm14, %v1448_v24, %v1444_v56 }
 0xbf7   :  { %v1463_v62 = vsub.f32 1.0, %v1449_v60  ;;  %v1469_v11 = vmul.f32 %v1449_v60, %v1405_v30 }
 0xc4d   :  { %v1454_v59 = vpop.permute.xlu0 %1453 }
 0xc4e   :  { %v1456_v54 = vmul.f32 %v1454_v59, %v1449_v60 }
 0xc50   :  { %1458 = vrot.lane.b32.xlu0 %v1456_v54, %s2842_s30 }
 0xcc2   :  { %v1459_v4 = vpop.permute.xlu0 %1458 }
 0xcc3   :  { %v1461_v32 = vadd.f32 %v1459_v4, %v3441_v61 }
 0xcc5   :  { %2689 = vtanh.f32 %v1461_v32 }
 0xccb   :  { %v2690_v20 = vpop.eup %2689 }
 0xccc   :  { %1465 = vrot.lane.b32.xlu0 %v2690_v20, %s2843_s6 }
 0xd3e   :  { %v1466_v7 = vpop.permute.xlu0 %1465 }
 0xd3f   :  { %v1468_v13 = vmul.f32 %v1466_v7, %v1463_v62 }
 0xd41   :  { %v1470_v40 = vadd.f32 %v1469_v11, %v1468_v13 }
 0xd43   :  { %v1476_v17 = vpack.c.bf16 %v1470_v40, %v1470_v40 }
 0xd45   :  { %1478 = vrot.lane.b32.xlu0 %v1476_v17, %s2843_s6 }
 0xdb7   :  { %v1479_v46 = vpop.permute.xlu0 %1478 }
 0xdb8   :  { %2564 = vmatmul.msk.bf16.vlgmr.msrb.gmra.mxu1 %vm1214_vm1, %v1479_v46 }
 0xdb9   :  { %1942 = vmatpush.bf16.msrb.mxu1 %v3382_v10 }
 0xdbd   :  { %1943 = vmatpush.bf16.msrb.mxu1 %v3388_v53 }
 0xe35   :  { %v1492_v61 = vpop.f32.mrf.mxu1 }
 0xe36   :  { %v1516_v50 = vadd.f32 %v1492_v61, %v3413_v26  ;;  %v1496_v36 = vadd.f32 %v1492_v61, %v3444_v15 }
 0xe38   :  { %1518 = vrot.lane.b32.xlu0 %v1516_v50, %s2842_s30  ;;  %v2565_v18 = vmul.f32 -1.442695, %v1496_v36 }
 0xe3a   :  { %2691 = vpow2.f32 %v2565_v18 }
 0xe3d   :  { %v1494_v52 = vpop.f32.mrf.mxu1 }
 0xe40   :  { %v2692_v19 = vpop.eup %2691 }
 0xe41   :  { %v1500_v0 = vadd.f32 1.0, %v2692_v19 }
 0xe43   :  { %2693 = vrcp.f32 %v1500_v0  ;;  %v1512_v2 = vand.u32 2147483648, %v1500_v0  ;;  %vm1506_vm0 = vweird.f32 %v1500_v0  ;;  %v1510_v30 = vand.u32 2147483647, %v1500_v0 }
 0xe45   :  { %v1513_v43 = vor.u32 1.1754944e-38, %v1512_v2  ;;  %vm1511_vm4 = vcmp.eq.f32.partialorder %v1510_v30, 8.507059e+37 }
 0xe49   :  { %v2694_v55 = vpop.eup %2693 }
 0xe4a   :  { %v1502_v21 = vmul.f32 %v2694_v55, %v1500_v0  ;;  %vm1507_vm15 = vweird.f32 %v2694_v55 }
 0xe4b   :  { %vm1508_vm2 = vmor %vm1506_vm0, %vm1507_vm15 }
 0xe4c   :  { %v1503_v41 = vsub.f32 1.0, %v1502_v21 }
 0xe4e   :  { %v1504_v22 = vmul.f32 %v2694_v55, %v1503_v41 }
 0xe50   :  { %v1505_v23 = vadd.f32 %v2694_v55, %v1504_v22 }
 0xe52   :  { %v1509_v25 = vsel %vm1508_vm2, %v2694_v55, %v1505_v23 }
 0xe53   :  { %v1514_v37 = vsel %vm1511_vm4, %v1513_v43, %v1509_v25 }
 0xe54   :  { %v1528_v49 = vsub.f32 1.0, %v1514_v37  ;;  %v1534_v51 = vmul.f32 %v1514_v37, %v1470_v40 }
 0xeaa   :  { %v1519_v6 = vpop.permute.xlu0 %1518 }
 0xeab   :  { %v1521_v28 = vmul.f32 %v1519_v6, %v1514_v37 }
 0xead   :  { %1523 = vrot.lane.b32.xlu0 %v1521_v28, %s2842_s30 }
 0xf1f   :  { %v1524_v9 = vpop.permute.xlu0 %1523 }
 0xf20   :  { %v1526_v29 = vadd.f32 %v1524_v9, %v3444_v15 }
 0xf22   :  { %2695 = vtanh.f32 %v1526_v29 }
 0xf28   :  { %v2696_v5 = vpop.eup %2695 }
 0xf29   :  { %1530 = vrot.lane.b32.xlu0 %v2696_v5, %s2843_s6 }
 0xf9b   :  { %v1531_v8 = vpop.permute.xlu0 %1530 }
 0xf9c   :  { %v1533_v44 = vmul.f32 %v1531_v8, %v1528_v49 }
 0xf9e   :  { %v1535_v45 = vadd.f32 %v1534_v51, %v1533_v44 }
 0xfa0   :  { %v1542_v47 = vpack.c.bf16 %v1535_v45, %v1535_v45 }
 0xfa2   :  { %1544 = vrot.lane.b32.xlu0 %v1542_v47, %s2843_s6 }
0x1014   :  { %v1545_v48 = vpop.permute.xlu0 %1544 }
0x1015   :  { %2566 = vmatmul.msk.bf16.vlgmr.msrb.gmra.mxu2 %vm1214_vm1, %v1545_v48 }
0x1016   :  { %2073 = vmatpush.bf16.msrb.mxu2 %v3382_v10 }
0x101a   :  { %2074 = vmatpush.bf16.msrb.mxu2 %v3388_v53 }
0x1098   :  { %v1558_v15 = vpop.f32.mrf.mxu2 }
0x1099   :  { %v1582_v16 = vadd.f32 %v1558_v15, %v3413_v26  ;;  %v1562_v24 = vadd.f32 %v1558_v15, %v3462_v42 }
0x109b   :  { %1584 = vrot.lane.b32.xlu1 %v1582_v16, %s2842_s30  ;;  %v2567_v59 = vmul.f32 -1.442695, %v1562_v24 }
0x109d   :  { %2697 = vpow2.f32 %v2567_v59 }
0x10a0   :  { %v1560_v56 = vpop.f32.mrf.mxu2 }
0x10a3   :  { %v2698_v60 = vpop.eup %2697 }
0x10a4   :  { %v1566_v54 = vadd.f32 1.0, %v2698_v60 }
0x10a6   :  { %2699 = vrcp.f32 %v1566_v54  ;;  %v1578_v11 = vand.u32 2147483648, %v1566_v54  ;;  %vm1572_vm7 = vweird.f32 %v1566_v54  ;;  %v1576_v13 = vand.u32 2147483647, %v1566_v54 }
0x10a8   :  { %v1579_v17 = vor.u32 1.1754944e-38, %v1578_v11  ;;  %vm1577_vm5 = vcmp.eq.f32.partialorder %v1576_v13, 8.507059e+37 }
0x10ac   :  { %v2700_v4 = vpop.eup %2699 }
0x10ad   :  { %v1568_v32 = vmul.f32 %v2700_v4, %v1566_v54  ;;  %vm1573_vm6 = vweird.f32 %v2700_v4 }
0x10ae   :  { %vm1574_vm8 = vmor %vm1572_vm7, %vm1573_vm6 }
0x10af   :  { %v1569_v20 = vsub.f32 1.0, %v1568_v32 }
0x10b1   :  { %v1570_v62 = vmul.f32 %v2700_v4, %v1569_v20 }
0x10b3   :  { %v1571_v7 = vadd.f32 %v2700_v4, %v1570_v62 }
0x10b5   :  { %v1575_v40 = vsel %vm1574_vm8, %v2700_v4, %v1571_v7 }
0x10b6   :  { %v1580_v61 = vsel %vm1577_vm5, %v1579_v17, %v1575_v40 }
0x10b7   :  { %v1594_v19 = vsub.f32 1.0, %v1580_v61  ;;  %v1600_v55 = vmul.f32 %v1580_v61, %v1535_v45 }
0x110d   :  { %v1585_v46 = vpop.permute.xlu1 %1584 }
0x110e   :  { %v1587_v50 = vmul.f32 %v1585_v46, %v1580_v61 }
0x1110   :  { %1589 = vrot.lane.b32.xlu2 %v1587_v50, %s2842_s30 }
0x116a   :  { %v1590_v52 = vpop.permute.xlu2 %1589 }
0x116b   :  { %v1592_v36 = vadd.f32 %v1590_v52, %v3462_v42 }
0x116d   :  { %2701 = vtanh.f32 %v1592_v36 }
0x1173   :  { %v2702_v18 = vpop.eup %2701 }
0x1174   :  { %1596 = vrot.lane.b32.xlu0 %v2702_v18, %s2843_s6 }
0x11e6   :  { %v1597_v0 = vpop.permute.xlu0 %1596 }
0x11e7   :  { %v1599_v21 = vmul.f32 %v1597_v0, %v1594_v19 }
0x11e9   :  { %v1601_v41 = vadd.f32 %v1600_v55, %v1599_v21 }
0x11eb   :  { %v1605_v22 = vpack.c.bf16 %v1601_v41, %v1601_v41 }
0x11ed   :  { %1607 = vrot.lane.b32.xlu1 %v1605_v22, %s2843_s6 }
0x125f   :  { %v1608_v23 = vpop.permute.xlu1 %1607 }
0x1260   :  { %2568 = vmatmul.msk.bf16.vlgmr.msrb.gmra.mxu3 %vm1214_vm1, %v1608_v23 }
0x1261   :  { %2136 = vmatpush.bf16.msrb.mxu3 %v3382_v10 }
0x1265   :  { %2137 = vmatpush.bf16.msrb.mxu3 %v3388_v53 }
0x12e3   :  { %v1621_v42 = vpop.f32.mrf.mxu3 }
0x12e4   :  { %v1645_v2 = vadd.f32 %v1621_v42, %v3413_v26  ;;  %v1625_v25 = vadd.f32 %v1621_v42, %v3455_v14 }
0x12e6   :  { %1647 = vrot.lane.b32.xlu2 %v1645_v2, %s2842_s30  ;;  %v2569_v43 = vmul.f32 -1.442695, %v1625_v25 }
0x12e8   :  { %2703 = vpow2.f32 %v2569_v43 }
0x12eb   :  { %v1623_v30 = vpop.f32.mrf.mxu3 }
0x12ee   :  { %v2704_v6 = vpop.eup %2703 }
0x12ef   :  { %v1629_v37 = vadd.f32 1.0, %v2704_v6 }
0x12f1   :  { %2705 = vrcp.f32 %v1629_v37  ;;  %v1641_v8 = vand.u32 2147483648, %v1629_v37  ;;  %vm1635_vm10 = vweird.f32 %v1629_v37  ;;  %v1639_v51 = vand.u32 2147483647, %v1629_v37 }
0x12f3   :  { %v1642_v45 = vor.u32 1.1754944e-38, %v1641_v8  ;;  %vm1640_vm12 = vcmp.eq.f32.partialorder %v1639_v51, 8.507059e+37  ;;  %v1730_v8 = vrot.slane %v3446_v57, 2 }
0x12f5   :  { %v1732_v51 = vsel %vm134_vm3, %v3432_v58, %v1730_v8 }
0x12f7   :  { %v2706_v28 = vpop.eup %2705 }
0x12f8   :  { %v1631_v9 = vmul.f32 %v2706_v28, %v1629_v37  ;;  %vm1636_vm9 = vweird.f32 %v2706_v28 }
0x12f9   :  { %vm1637_vm11 = vmor %vm1635_vm10, %vm1636_vm9 }
0x12fa   :  { %v1632_v29 = vsub.f32 1.0, %v1631_v9 }
0x12fc   :  { %v1633_v5 = vmul.f32 %v2706_v28, %v1632_v29 }
0x12fe   :  { %v1634_v49 = vadd.f32 %v2706_v28, %v1633_v5 }
0x1300   :  { %v1638_v44 = vsel %vm1637_vm11, %v2706_v28, %v1634_v49 }
0x1301   :  { %v1643_v48 = vsel %vm1640_vm12, %v1642_v45, %v1638_v44 }
0x1302   :  { %v1657_v59 = vsub.f32 1.0, %v1643_v48  ;;  %v1663_v54 = vmul.f32 %v1643_v48, %v1601_v41 }
0x1340   :  { %v1648_v47 = vpop.permute.xlu2 %1647 }
0x1341   :  { %v1650_v15 = vmul.f32 %v1648_v47, %v1643_v48 }
0x1343   :  { %1652 = vrot.lane.b32.xlu0 %v1650_v15, %s2842_s30 }
0x13b5   :  { %v1653_v16 = vpop.permute.xlu0 %1652 }
0x13b6   :  { %v1655_v56 = vadd.f32 %v1653_v16, %v3455_v14 }
0x13b8   :  { %2707 = vtanh.f32 %v1655_v56 }
0x13be   :  { %v2708_v24 = vpop.eup %2707 }
0x13bf   :  { %1659 = vrot.lane.b32.xlu1 %v2708_v24, %s2843_s6 }
0x1431   :  { %v1660_v60 = vpop.permute.xlu1 %1659 }
0x1432   :  { %v1662_v4 = vmul.f32 %v1660_v60, %v1657_v59 }
0x1434   :  { %v1664_v32 = vadd.f32 %v1663_v54, %v1662_v4 }
0x1436   :  { %v1670_v20 = vpack.c.bf16 %v1664_v32, %v1664_v32 }
0x1438   :  { %1672 = vrot.lane.b32.xlu2 %v1670_v20, %s2843_s6 }
0x1492   :  { %v1673_v62 = vpop.permute.xlu2 %1672 }
0x1493   :  { %2570 = vmatmul.msk.bf16.vlgmr.msra.gmra.mxu1 %vm1214_vm1, %v1673_v62 }
0x1494   :  { %2201 = vmatpush.bf16.msra.mxu1 %v3382_v10 }
0x1498   :  { %2202 = vmatpush.bf16.msra.mxu1 %v3388_v53 }
0x1510   :  { %v1686_v14 = vpop.f32.mrf.mxu1 }
0x1511   :  { %v1710_v7 = vadd.f32 %v1686_v14, %v3413_v26  ;;  %v1690_v13 = vadd.f32 %v1686_v14, %v3465_v27 }
0x1513   :  { %1712 = vrot.lane.b32.xlu0 %v1710_v7, %s2842_s30  ;;  %v2571_v40 = vmul.f32 -1.442695, %v1690_v13 }
0x1515   :  { %2709 = vpow2.f32 %v2571_v40 }
0x1518   :  { %v1688_v11 = vpop.f32.mrf.mxu1 }
0x151b   :  { %v2710_v17 = vpop.eup %2709 }
0x151c   :  { %v1694_v46 = vadd.f32 1.0, %v2710_v17 }
0x151e   :  { %2711 = vrcp.f32 %v1694_v46  ;;  %v1706_v19 = vand.u32 2147483648, %v1694_v46  ;;  %vm1700_vm14 = vweird.f32 %v1694_v46  ;;  %v1704_v0 = vand.u32 2147483647, %v1694_v46 }
0x1520   :  { %v1707_v21 = vor.u32 1.1754944e-38, %v1706_v19  ;;  %vm1705_vm0 = vcmp.eq.f32.partialorder %v1704_v0, 8.507059e+37 }
0x1524   :  { %v2712_v61 = vpop.eup %2711 }
0x1525   :  { %v1696_v50 = vmul.f32 %v2712_v61, %v1694_v46  ;;  %vm1701_vm13 = vweird.f32 %v2712_v61 }
0x1526   :  { %vm1702_vm15 = vmor %vm1700_vm14, %vm1701_vm13 }
0x1527   :  { %v1697_v52 = vsub.f32 1.0, %v1696_v50  ;;  %v2782_v50 = vld [vmem:[%s3696_s1 + $0x28] sm:$0xff] }
0x1529   :  { %v1698_v36 = vmul.f32 %v2712_v61, %v1697_v52 }
0x152b   :  { %v1699_v18 = vadd.f32 %v2712_v61, %v1698_v36 }
0x152d   :  { %v1703_v55 = vsel %vm1702_vm15, %v2712_v61, %v1699_v18 }
0x152e   :  { %v1708_v22 = vsel %vm1705_vm0, %v1707_v21, %v1703_v55 }
0x152f   :  { %v1722_v25 = vsub.f32 1.0, %v1708_v22  ;;  %v1728_v6 = vmul.f32 %v1708_v22, %v1664_v32 }
0x1585   :  { %v1713_v41 = vpop.permute.xlu0 %1712 }
0x1586   :  { %v1715_v23 = vmul.f32 %v1713_v41, %v1708_v22 }
0x1588   :  { %1717 = vrot.lane.b32.xlu1 %v1715_v23, %s2842_s30 }
0x15fa   :  { %v1718_v42 = vpop.permute.xlu1 %1717 }
0x15fb   :  { %v1720_v2 = vadd.f32 %v1718_v42, %v3465_v27 }
0x15fd   :  { %2713 = vtanh.f32 %v1720_v2 }
0x1603   :  { %v2714_v30 = vpop.eup %2713 }
0x1604   :  { %1724 = vrot.lane.b32.xlu2 %v2714_v30, %s2843_s6 }
0x165e   :  { %v1725_v43 = vpop.permute.xlu2 %1724 }
0x165f   :  { %v1727_v37 = vmul.f32 %v1725_v43, %v1722_v25 }
0x1661   :  { %v1729_v28 = vadd.f32 %v1728_v6, %v1727_v37 }
0x1663   :  { %v1733_v9 = vpack.c.bf16 %v1729_v28, %v1729_v28 }
0x1665   :  { %1735 = vrot.lane.b32.xlu0 %v1733_v9, %s2843_s6 }
0x16d7   :  { %v1736_v29 = vpop.permute.xlu0 %1735 }
0x16d8   :  { %2572 = vmatmul.msk.bf16.vlgmr.msra.gmra.mxu0 %vm1214_vm1, %v1736_v29 }
0x16d9   :  { %2264 = vmatpush.bf16.msra.mxu0 %v3382_v10 }
0x16dd   :  { %2265 = vmatpush.bf16.msra.mxu0 %v3388_v53 }
0x1755   :  { %v1749_v27 = vpop.f32.mrf.mxu0 }
0x1756   :  { %v1773_v5 = vadd.f32 %v1749_v27, %v3413_v26  ;;  %v1753_v44 = vadd.f32 %v1749_v27, %v1732_v51 }
0x1758   :  { %1775 = vrot.lane.b32.xlu1 %v1773_v5, %s2842_s30  ;;  %v2573_v45 = vmul.f32 -1.442695, %v1753_v44 }
0x175a   :  { %2715 = vpow2.f32 %v2573_v45 }
0x175d   :  { %v1751_v49 = vpop.f32.mrf.mxu0 }
0x1760   :  { %v2716_v47 = vpop.eup %2715 }
0x1761   :  { %v1757_v48 = vadd.f32 1.0, %v2716_v47 }
0x1763   :  { %2717 = vrcp.f32 %v1757_v48  ;;  %v1769_v59 = vand.u32 2147483648, %v1757_v48  ;;  %vm1763_vm4 = vweird.f32 %v1757_v48  ;;  %v1767_v60 = vand.u32 2147483647, %v1757_v48 }
0x1765   :  { %v1770_v54 = vor.u32 1.1754944e-38, %v1769_v59  ;;  %vm1768_vm7 = vcmp.eq.f32.partialorder %v1767_v60, 8.507059e+37 }
0x1769   :  { %v2718_v10 = vpop.eup %2717 }
0x176a   :  { %v1759_v15 = vmul.f32 %v2718_v10, %v1757_v48  ;;  %vm1764_vm2 = vweird.f32 %v2718_v10 }
0x176b   :  { %vm1765_vm6 = vmor %vm1763_vm4, %vm1764_vm2 }
0x176c   :  { %v1760_v16 = vsub.f32 1.0, %v1759_v15 }
0x176e   :  { %v1761_v56 = vmul.f32 %v2718_v10, %v1760_v16 }
0x1770   :  { %v1762_v24 = vadd.f32 %v2718_v10, %v1761_v56 }
0x1772   :  { %v1766_v57 = vsel %vm1765_vm6, %v2718_v10, %v1762_v24 }
0x1773   :  { %v1771_v4 = vsel %vm1768_vm7, %v1770_v54, %v1766_v57 }
0x1774   :  { %v1785_v7 = vsub.f32 1.0, %v1771_v4  ;;  %v1791_v13 = vmul.f32 %v1771_v4, %v1729_v28 }
0x17ca   :  { %v1776_v58 = vpop.permute.xlu1 %1775 }
0x17cb   :  { %v1778_v32 = vmul.f32 %v1776_v58, %v1771_v4 }
0x17cd   :  { %1780 = vrot.lane.b32.xlu2 %v1778_v32, %s2842_s30 }
0x1827   :  { %v1781_v20 = vpop.permute.xlu2 %1780 }
0x1828   :  { %v1783_v62 = vadd.f32 %v1781_v20, %v1732_v51 }
0x182a   :  { %2719 = vtanh.f32 %v1783_v62 }
0x1830   :  { %v2720_v14 = vpop.eup %2719 }
0x1831   :  { %1787 = vrot.lane.b32.xlu0 %v2720_v14, %s2843_s6 }
0x18a3   :  { %v1788_v11 = vpop.permute.xlu0 %1787 }
0x18a4   :  { %v1790_v40 = vmul.f32 %v1788_v11, %v1785_v7 }
0x18a6   :  { %v1792_v17 = vadd.f32 %v1791_v13, %v1790_v40 }
0x18a8   :  { %v1799_v46 = vpack.c.bf16 %v1792_v17, %v1792_v17 }
0x18aa   :  { %1801 = vrot.lane.b32.xlu1 %v1799_v46, %s2843_s6 }
0x191c   :  { %v1802_v61 = vpop.permute.xlu1 %1801 }
0x191d   :  { %2574 = vmatmul.msk.bf16.vlgmr.msra.gmra.mxu2 %vm1214_vm1, %v1802_v61 }
0x191e   :  { %2329 = vmatpush.bf16.msra.mxu2 %v2782_v50 }
0x1922   :  { %2330 = vmatpush.bf16.msra.mxu2 %v3388_v53 }
0x19a0   :  { %v1815_v52 = vpop.f32.mrf.mxu2 }
0x19a1   :  { %v1839_v36 = vadd.f32 %v1815_v52, %v3413_v26  ;;  %v1819_v19 = vadd.f32 %v1815_v52, %v3470_v33 }
0x19a3   :  { %1841 = vrot.lane.b32.xlu2 %v1839_v36, %s2842_s30  ;;  %v2575_v0 = vmul.f32 -1.442695, %v1819_v19 }
0x19a5   :  { %2721 = vpow2.f32 %v2575_v0 }
0x19a8   :  { %v1817_v18 = vpop.f32.mrf.mxu2 }
0x19ab   :  { %v2722_v55 = vpop.eup %2721 }
0x19ac   :  { %v1823_v21 = vadd.f32 1.0, %v2722_v55 }
0x19ae   :  { %2723 = vrcp.f32 %v1823_v21  ;;  %v1835_v53 = vand.u32 2147483648, %v1823_v21  ;;  %vm1829_vm8 = vweird.f32 %v1823_v21  ;;  %v1833_v30 = vand.u32 2147483647, %v1823_v21 }
0x19b0   :  { %v1836_v43 = vor.u32 1.1754944e-38, %v1835_v53  ;;  %vm1834_vm9 = vcmp.eq.f32.partialorder %v1833_v30, 8.507059e+37 }
0x19b4   :  { %v2724_v41 = vpop.eup %2723 }
0x19b5   :  { %v1825_v22 = vmul.f32 %v2724_v41, %v1823_v21  ;;  %vm1830_vm3 = vweird.f32 %v2724_v41 }
0x19b6   :  { %vm1831_vm5 = vmor %vm1829_vm8, %vm1830_vm3 }
0x19b7   :  { %v1826_v23 = vsub.f32 1.0, %v1825_v22 }
0x19b9   :  { %v1827_v42 = vmul.f32 %v2724_v41, %v1826_v23 }
0x19bb   :  { %v1828_v2 = vadd.f32 %v2724_v41, %v1827_v42 }
0x19bd   :  { %v1832_v25 = vsel %vm1831_vm5, %v2724_v41, %v1828_v2 }
0x19be   :  { %v1837_v37 = vsel %vm1834_vm9, %v1836_v43, %v1832_v25 }
0x19bf   :  { %v1851_v5 = vsub.f32 1.0, %v1837_v37  ;;  %v1857_v8 = vmul.f32 %v1837_v37, %v1792_v17 }
0x19fd   :  { %v1842_v6 = vpop.permute.xlu2 %1841 }
0x19fe   :  { %v1844_v28 = vmul.f32 %v1842_v6, %v1837_v37 }
0x1a00   :  { %1846 = vrot.lane.b32.xlu0 %v1844_v28, %s2842_s30 }
0x1a72   :  { %v1847_v9 = vpop.permute.xlu0 %1846 }
0x1a73   :  { %v1849_v29 = vadd.f32 %v1847_v9, %v3470_v33  ;;  %v2783_v33 = vld [vmem:[%s3696_s1 + $0x20] sm:$0xff] }
0x1a75   :  { %2725 = vtanh.f32 %v1849_v29 }
0x1a7b   :  { %v2726_v27 = vpop.eup %2725 }
0x1a7c   :  { %1853 = vrot.lane.b32.xlu1 %v2726_v27, %s2843_s6 }
0x1aee   :  { %v1854_v49 = vpop.permute.xlu1 %1853 }
0x1aef   :  { %v1856_v51 = vmul.f32 %v1854_v49, %v1851_v5 }
0x1af1   :  { %v1858_v44 = vadd.f32 %v1857_v8, %v1856_v51 }
0x1af3   :  { %v1864_v45 = vpack.c.bf16 %v1858_v44, %v1858_v44 }
0x1af5   :  { %1866 = vrot.lane.b32.xlu2 %v1864_v45, %s2843_s6 }
0x1b4f   :  { %v1867_v47 = vpop.permute.xlu2 %1866 }
0x1b50   :  { %2576 = vmatmul.msk.bf16.vlgmr.msra.gmra.mxu3 %vm1214_vm1, %v1867_v47 }
0x1b51   :  { %2392 = vmatpush.bf16.msra.mxu3 %v2782_v50 }
0x1b55   :  { %2393 = vmatpush.bf16.msra.mxu3 %v2783_v33 }
0x1bd3   :  { %v1880_v48 = vpop.f32.mrf.mxu3 }
0x1bd4   :  { %v1904_v10 = vadd.f32 %v1880_v48, %v3413_v26  ;;  %v1884_v16 = vadd.f32 %v1880_v48, %v3473_v34 }
0x1bd6   :  { %1906 = vrot.lane.b32.xlu0 %v1904_v10, %s2842_s30  ;;  %v2577_v56 = vmul.f32 -1.442695, %v1884_v16 }
0x1bd8   :  { %2727 = vpow2.f32 %v2577_v56 }
0x1bdb   :  { %v1882_v15 = vpop.f32.mrf.mxu3 }
0x1bde   :  { %v2728_v24 = vpop.eup %2727 }
0x1bdf   :  { %v1888_v59 = vadd.f32 1.0, %v2728_v24 }
0x1be1   :  { %2729 = vrcp.f32 %v1888_v59  ;;  %v1900_v32 = vand.u32 2147483648, %v1888_v59  ;;  %vm1894_vm11 = vweird.f32 %v1888_v59  ;;  %v1898_v20 = vand.u32 2147483647, %v1888_v59 }
0x1be3   :  { %v1901_v14 = vor.u32 1.1754944e-38, %v1900_v32  ;;  %vm1899_vm13 = vcmp.eq.f32.partialorder %v1898_v20, 8.507059e+37 }
0x1be7   :  { %v2730_v60 = vpop.eup %2729 }
0x1be8   :  { %v1890_v57 = vmul.f32 %v2730_v60, %v1888_v59  ;;  %vm1895_vm10 = vweird.f32 %v2730_v60 }
0x1be9   :  { %vm1896_vm12 = vmor %vm1894_vm11, %vm1895_vm10 }
0x1bea   :  { %v1891_v54 = vsub.f32 1.0, %v1890_v57 }
0x1bec   :  { %v1892_v58 = vmul.f32 %v2730_v60, %v1891_v54 }
0x1bee   :  { %v1893_v4 = vadd.f32 %v2730_v60, %v1892_v58 }
0x1bf0   :  { %v1897_v62 = vsel %vm1896_vm12, %v2730_v60, %v1893_v4 }
0x1bf1   :  { %v1902_v11 = vsel %vm1899_vm13, %v1901_v14, %v1897_v62 }
0x1bf2   :  { %v1916_v61 = vsub.f32 1.0, %v1902_v11  ;;  %v1922_v52 = vmul.f32 %v1902_v11, %v1858_v44 }
0x1c48   :  { %v1907_v7 = vpop.permute.xlu0 %1906 }
0x1c49   :  { %v1909_v13 = vmul.f32 %v1907_v7, %v1902_v11 }
0x1c4b   :  { %1911 = vrot.lane.b32.xlu1 %v1909_v13, %s2842_s30 }
0x1cbd   :  { %v1912_v40 = vpop.permute.xlu1 %1911 }
0x1cbe   :  { %v1914_v17 = vadd.f32 %v1912_v40, %v3473_v34 }
0x1cc0   :  { %2731 = vtanh.f32 %v1914_v17 }
0x1cc6   :  { %v2732_v46 = vpop.eup %2731 }
0x1cc7   :  { %1918 = vrot.lane.b32.xlu2 %v2732_v46, %s2843_s6 }
0x1d21   :  { %v1919_v50 = vpop.permute.xlu2 %1918 }
0x1d22   :  { %v1921_v36 = vmul.f32 %v1919_v50, %v1916_v61 }
0x1d24   :  { %v1923_v18 = vadd.f32 %v1922_v52, %v1921_v36 }
0x1d26   :  { %v1929_v19 = vpack.c.bf16 %v1923_v18, %v1923_v18 }
0x1d28   :  { %1931 = vrot.lane.b32.xlu0 %v1929_v19, %s2843_s6 }
0x1d9a   :  { %v1932_v0 = vpop.permute.xlu0 %1931 }
0x1d9b   :  { %2578 = vmatmul.msk.bf16.vlgmr.msrb.gmra.mxu1 %vm1214_vm1, %v1932_v0 }
0x1e18   :  { %v1945_v55 = vpop.f32.mrf.mxu1 }
0x1e19   :  { %v1969_v21 = vadd.f32 %v1945_v55, %v3413_v26  ;;  %v1949_v41 = vadd.f32 %v1945_v55, %v3476_v35 }
0x1e1b   :  { %1971 = vrot.lane.b32.xlu1 %v1969_v21, %s2842_s30  ;;  %v2579_v22 = vmul.f32 -1.442695, %v1949_v41 }
0x1e1d   :  { %2733 = vpow2.f32 %v2579_v22 }
0x1e20   :  { %v1947_v34 = vpop.f32.mrf.mxu1 }
0x1e23   :  { %v2734_v23 = vpop.eup %2733 }
0x1e24   :  { %v1953_v42 = vadd.f32 1.0, %v2734_v23 }
0x1e26   :  { %2735 = vrcp.f32 %v1953_v42  ;;  %v1965_v6 = vand.u32 2147483648, %v1953_v42  ;;  %vm1959_vm15 = vweird.f32 %v1953_v42  ;;  %v1963_v37 = vand.u32 2147483647, %v1953_v42 }
0x1e28   :  { %v1966_v9 = vor.u32 1.1754944e-38, %v1965_v6  ;;  %vm1964_vm2 = vcmp.eq.f32.partialorder %v1963_v37, 8.507059e+37 }
0x1e2c   :  { %v2736_v2 = vpop.eup %2735 }
0x1e2d   :  { %v1955_v53 = vmul.f32 %v2736_v2, %v1953_v42  ;;  %vm1960_vm14 = vweird.f32 %v2736_v2 }
0x1e2e   :  { %vm1961_vm0 = vmor %vm1959_vm15, %vm1960_vm14 }
0x1e2f   :  { %v1956_v30 = vsub.f32 1.0, %v1955_v53 }
0x1e31   :  { %v1957_v25 = vmul.f32 %v2736_v2, %v1956_v30 }
0x1e33   :  { %v1958_v43 = vadd.f32 %v2736_v2, %v1957_v25 }
0x1e35   :  { %v1962_v28 = vsel %vm1961_vm0, %v2736_v2, %v1958_v43 }
0x1e36   :  { %v1967_v27 = vsel %vm1964_vm2, %v1966_v9, %v1962_v28 }
0x1e37   :  { %v1981_v44 = vsub.f32 1.0, %v1967_v27  ;;  %v1987_v47 = vmul.f32 %v1967_v27, %v1923_v18 }
0x1e8d   :  { %v1972_v29 = vpop.permute.xlu1 %1971 }
0x1e8e   :  { %v1974_v5 = vmul.f32 %v1972_v29, %v1967_v27 }
0x1e90   :  { %1976 = vrot.lane.b32.xlu2 %v1974_v5, %s2842_s30 }
0x1eea   :  { %v1977_v49 = vpop.permute.xlu2 %1976 }
0x1eeb   :  { %v1979_v8 = vadd.f32 %v1977_v49, %v3476_v35 }
0x1eed   :  { %2737 = vtanh.f32 %v1979_v8 }
0x1ef3   :  { %v2738_v51 = vpop.eup %2737 }
0x1ef4   :  { %1983 = vrot.lane.b32.xlu0 %v2738_v51, %s2843_s6 }
0x1f66   :  { %v1984_v45 = vpop.permute.xlu0 %1983 }
0x1f67   :  { %v1986_v33 = vmul.f32 %v1984_v45, %v1981_v44 }
0x1f69   :  { %v1988_v48 = vadd.f32 %v1987_v47, %v1986_v33 }
0x1f6b   :  { %v1994_v10 = vpack.c.bf16 %v1988_v48, %v1988_v48 }
0x1f6d   :  { %1996 = vrot.lane.b32.xlu1 %v1994_v10, %s2843_s6 }
0x1fdf   :  { %v1997_v15 = vpop.permute.xlu1 %1996 }
0x1fe0   :  { %2580 = vmatmul.msk.bf16.vlgmr.msrb.gmra.mxu0 %vm1214_vm1, %v1997_v15 }
0x205d   :  { %v2010_v16 = vpop.f32.mrf.mxu0 }
0x205e   :  { %v2034_v56 = vadd.f32 %v2010_v16, %v3413_v26  ;;  %v2014_v24 = vadd.f32 %v2010_v16, %v3479_v39 }
0x2060   :  { %2036 = vrot.lane.b32.xlu2 %v2034_v56, %s2842_s30  ;;  %v2581_v59 = vmul.f32 -1.442695, %v2014_v24 }
0x2062   :  { %2739 = vpow2.f32 %v2581_v59 }
0x2065   :  { %v2012_v35 = vpop.f32.mrf.mxu0 }
0x2068   :  { %v2740_v60 = vpop.eup %2739 }
0x2069   :  { %v2018_v57 = vadd.f32 1.0, %v2740_v60 }
0x206b   :  { %2741 = vrcp.f32 %v2018_v57  ;;  %v2030_v62 = vand.u32 2147483648, %v2018_v57  ;;  %vm2024_vm6 = vweird.f32 %v2018_v57  ;;  %v2028_v14 = vand.u32 2147483647, %v2018_v57 }
0x206d   :  { %v2031_v11 = vor.u32 1.1754944e-38, %v2030_v62  ;;  %vm2029_vm3 = vcmp.eq.f32.partialorder %v2028_v14, 8.507059e+37 }
0x2071   :  { %v2742_v54 = vpop.eup %2741 }
0x2072   :  { %v2020_v58 = vmul.f32 %v2742_v54, %v2018_v57  ;;  %vm2025_vm4 = vweird.f32 %v2742_v54 }
0x2073   :  { %vm2026_vm7 = vmor %vm2024_vm6, %vm2025_vm4 }
0x2074   :  { %v2021_v4 = vsub.f32 1.0, %v2020_v58 }
0x2076   :  { %v2022_v32 = vmul.f32 %v2742_v54, %v2021_v4 }
0x2078   :  { %v2023_v20 = vadd.f32 %v2742_v54, %v2022_v32 }
0x207a   :  { %v2027_v7 = vsel %vm2026_vm7, %v2742_v54, %v2023_v20 }
0x207b   :  { %v2032_v40 = vsel %vm2029_vm3, %v2031_v11, %v2027_v7 }
0x207c   :  { %v2046_v52 = vsub.f32 1.0, %v2032_v40  ;;  %v2052_v18 = vmul.f32 %v2032_v40, %v1988_v48 }
0x20ba   :  { %v2037_v13 = vpop.permute.xlu2 %2036 }
0x20bb   :  { %v2039_v17 = vmul.f32 %v2037_v13, %v2032_v40 }
0x20bd   :  { %2041 = vrot.lane.b32.xlu0 %v2039_v17, %s2842_s30 }
0x212f   :  { %v2042_v46 = vpop.permute.xlu0 %2041 }
0x2130   :  { %v2044_v61 = vadd.f32 %v2042_v46, %v3479_v39 }
0x2132   :  { %2743 = vtanh.f32 %v2044_v61 }
0x2138   :  { %v2744_v50 = vpop.eup %2743 }
0x2139   :  { %2048 = vrot.lane.b32.xlu1 %v2744_v50, %s2843_s6 }
0x21ab   :  { %v2049_v36 = vpop.permute.xlu1 %2048 }
0x21ac   :  { %v2051_v19 = vmul.f32 %v2049_v36, %v2046_v52 }
0x21ae   :  { %v2053_v0 = vadd.f32 %v2052_v18, %v2051_v19 }
0x21b0   :  { %v2060_v55 = vpack.c.bf16 %v2053_v0, %v2053_v0 }
0x21b2   :  { %2062 = vrot.lane.b32.xlu2 %v2060_v55, %s2843_s6 }
0x220c   :  { %v2063_v21 = vpop.permute.xlu2 %2062 }
0x220d   :  { %2582 = vmatmul.msk.bf16.vlgmr.msrb.gmra.mxu2 %vm1214_vm1, %v2063_v21 }
0x2290   :  { %v2076_v34 = vpop.f32.mrf.mxu2 }
0x2291   :  { %v2100_v41 = vadd.f32 %v2076_v34, %v3413_v26  ;;  %v2080_v22 = vadd.f32 %v2076_v34, %v3490_v12 }
0x2293   :  { %2102 = vrot.lane.b32.xlu0 %v2100_v41, %s2842_s30  ;;  %v2583_v23 = vmul.f32 -1.442695, %v2080_v22 }
0x2295   :  { %2745 = vpow2.f32 %v2583_v23 }
0x2298   :  { %v2078_v39 = vpop.f32.mrf.mxu2 }
0x229b   :  { %v2746_v42 = vpop.eup %2745 }
0x229c   :  { %v2084_v2 = vadd.f32 1.0, %v2746_v42 }
0x229e   :  { %2747 = vrcp.f32 %v2084_v2  ;;  %v2096_v37 = vand.u32 2147483648, %v2084_v2  ;;  %vm2090_vm5 = vweird.f32 %v2084_v2  ;;  %v2094_v28 = vand.u32 2147483647, %v2084_v2 }
0x22a0   :  { %v2097_v29 = vor.u32 1.1754944e-38, %v2096_v37  ;;  %vm2095_vm10 = vcmp.eq.f32.partialorder %v2094_v28, 8.507059e+37 }
0x22a4   :  { %v2748_v53 = vpop.eup %2747 }
0x22a5   :  { %v2086_v30 = vmul.f32 %v2748_v53, %v2084_v2  ;;  %vm2091_vm8 = vweird.f32 %v2748_v53 }
0x22a6   :  { %vm2092_vm9 = vmor %vm2090_vm5, %vm2091_vm8 }
0x22a7   :  { %v2087_v25 = vsub.f32 1.0, %v2086_v30 }
0x22a9   :  { %v2088_v43 = vmul.f32 %v2748_v53, %v2087_v25 }
0x22ab   :  { %v2089_v6 = vadd.f32 %v2748_v53, %v2088_v43 }
0x22ad   :  { %v2093_v9 = vsel %vm2092_vm9, %v2748_v53, %v2089_v6 }
0x22ae   :  { %v2098_v5 = vsel %vm2095_vm10, %v2097_v29, %v2093_v9 }
0x22af   :  { %v2112_v45 = vsub.f32 1.0, %v2098_v5  ;;  %v2118_v33 = vmul.f32 %v2098_v5, %v2053_v0 }
0x2305   :  { %v2103_v27 = vpop.permute.xlu0 %2102 }
0x2306   :  { %v2105_v49 = vmul.f32 %v2103_v27, %v2098_v5 }
0x2308   :  { %2107 = vrot.lane.b32.xlu1 %v2105_v49, %s2842_s30 }
0x237a   :  { %v2108_v8 = vpop.permute.xlu1 %2107 }
0x237b   :  { %v2110_v51 = vadd.f32 %v2108_v8, %v3490_v12 }
0x237d   :  { %2749 = vtanh.f32 %v2110_v51 }
0x2383   :  { %v2750_v44 = vpop.eup %2749 }
0x2384   :  { %2114 = vrot.lane.b32.xlu2 %v2750_v44, %s2843_s6 }
0x23de   :  { %v2115_v47 = vpop.permute.xlu2 %2114 }
0x23df   :  { %v2117_v48 = vmul.f32 %v2115_v47, %v2112_v45 }
0x23e1   :  { %v2119_v10 = vadd.f32 %v2118_v33, %v2117_v48 }
0x23e3   :  { %v2123_v15 = vpack.c.bf16 %v2119_v10, %v2119_v10 }
0x23e5   :  { %2125 = vrot.lane.b32.xlu0 %v2123_v15, %s2843_s6 }
0x2457   :  { %v2126_v16 = vpop.permute.xlu0 %2125 }
0x2458   :  { %2584 = vmatmul.msk.bf16.vlgmr.msrb.gmra.mxu3 %vm1214_vm1, %v2126_v16 }
0x24db   :  { %v2139_v56 = vpop.f32.mrf.mxu3 }
0x24dc   :  { %v2163_v35 = vadd.f32 %v2139_v56, %v3413_v26  ;;  %v2143_v24 = vadd.f32 %v2139_v56, %v3486_v38 }
0x24de   :  { %2165 = vrot.lane.b32.xlu1 %v2163_v35, %s2842_s30  ;;  %v2585_v59 = vmul.f32 -1.442695, %v2143_v24 }
0x24e0   :  { %2751 = vpow2.f32 %v2585_v59 }
0x24e3   :  { %v2141_v12 = vpop.f32.mrf.mxu3 }
0x24e6   :  { %v2752_v60 = vpop.eup %2751 }
0x24e7   :  { %v2147_v57 = vadd.f32 1.0, %v2752_v60 }
0x24e9   :  { %2753 = vrcp.f32 %v2147_v57  ;;  %v2159_v62 = vand.u32 2147483648, %v2147_v57  ;;  %vm2153_vm12 = vweird.f32 %v2147_v57  ;;  %v2157_v14 = vand.u32 2147483647, %v2147_v57 }
0x24eb   :  { %v2160_v11 = vor.u32 1.1754944e-38, %v2159_v62  ;;  %vm2158_vm14 = vcmp.eq.f32.partialorder %v2157_v14, 8.507059e+37 }
0x24ef   :  { %v2754_v54 = vpop.eup %2753 }
0x24f0   :  { %v2149_v58 = vmul.f32 %v2754_v54, %v2147_v57  ;;  %vm2154_vm11 = vweird.f32 %v2754_v54 }
0x24f1   :  { %vm2155_vm13 = vmor %vm2153_vm12, %vm2154_vm11 }
0x24f2   :  { %v2150_v4 = vsub.f32 1.0, %v2149_v58 }
0x24f4   :  { %v2151_v32 = vmul.f32 %v2754_v54, %v2150_v4 }
0x24f6   :  { %v2152_v20 = vadd.f32 %v2754_v54, %v2151_v32 }
0x24f8   :  { %v2156_v7 = vsel %vm2155_vm13, %v2754_v54, %v2152_v20 }
0x24f9   :  { %v2161_v40 = vsel %vm2158_vm14, %v2160_v11, %v2156_v7 }
0x24fa   :  { %v2175_v52 = vsub.f32 1.0, %v2161_v40  ;;  %v2181_v18 = vmul.f32 %v2161_v40, %v2119_v10 }
0x2550   :  { %v2166_v13 = vpop.permute.xlu1 %2165 }
0x2551   :  { %v2168_v17 = vmul.f32 %v2166_v13, %v2161_v40 }
0x2553   :  { %2170 = vrot.lane.b32.xlu2 %v2168_v17, %s2842_s30 }
0x25ad   :  { %v2171_v46 = vpop.permute.xlu2 %2170 }
0x25ae   :  { %v2173_v61 = vadd.f32 %v2171_v46, %v3486_v38 }
0x25b0   :  { %2755 = vtanh.f32 %v2173_v61 }
0x25b6   :  { %v2756_v50 = vpop.eup %2755 }
0x25b7   :  { %2177 = vrot.lane.b32.xlu0 %v2756_v50, %s2843_s6 }
0x2629   :  { %v2178_v36 = vpop.permute.xlu0 %2177 }
0x262a   :  { %v2180_v19 = vmul.f32 %v2178_v36, %v2175_v52 }
0x262c   :  { %v2182_v0 = vadd.f32 %v2181_v18, %v2180_v19 }
0x262e   :  { %v2188_v55 = vpack.c.bf16 %v2182_v0, %v2182_v0 }
0x2630   :  { %2190 = vrot.lane.b32.xlu1 %v2188_v55, %s2843_s6 }
0x26a2   :  { %v2191_v21 = vpop.permute.xlu1 %2190 }
0x26a3   :  { %2586 = vmatmul.msk.bf16.vlgmr.msra.gmra.mxu1 %vm1214_vm1, %v2191_v21 }
0x2720   :  { %v2204_v34 = vpop.f32.mrf.mxu1 }
0x2721   :  { %v2228_v41 = vadd.f32 %v2204_v34, %v3413_v26  ;;  %v2208_v39 = vadd.f32 %v2204_v34, %v3493_v31 }
0x2723   :  { %2230 = vrot.lane.b32.xlu2 %v2228_v41, %s2842_s30  ;;  %v2587_v22 = vmul.f32 -1.442695, %v2208_v39 }
0x2725   :  { %2757 = vpow2.f32 %v2587_v22 }
0x2728   :  { %v2206_v38 = vpop.f32.mrf.mxu1 }
0x272b   :  { %v2758_v23 = vpop.eup %2757 }
0x272c   :  { %v2212_v42 = vadd.f32 1.0, %v2758_v23 }
0x272e   :  { %2759 = vrcp.f32 %v2212_v42  ;;  %v2224_v6 = vand.u32 2147483648, %v2212_v42  ;;  %vm2218_vm0 = vweird.f32 %v2212_v42  ;;  %v2222_v37 = vand.u32 2147483647, %v2212_v42 }
0x2730   :  { %v2225_v9 = vor.u32 1.1754944e-38, %v2224_v6  ;;  %vm2223_vm4 = vcmp.eq.f32.partialorder %v2222_v37, 8.507059e+37 }
0x2734   :  { %v2760_v2 = vpop.eup %2759 }
0x2735   :  { %v2214_v53 = vmul.f32 %v2760_v2, %v2212_v42  ;;  %vm2219_vm15 = vweird.f32 %v2760_v2 }
0x2736   :  { %vm2220_vm2 = vmor %vm2218_vm0, %vm2219_vm15  ;;  %vm2502_vm0 = vcmask 25600  }
0x2737   :  { %v2215_v30 = vsub.f32 1.0, %v2214_v53 }
0x2739   :  { %v2216_v25 = vmul.f32 %v2760_v2, %v2215_v30 }
0x273b   :  { %v2217_v43 = vadd.f32 %v2760_v2, %v2216_v25 }
0x273d   :  { %v2221_v28 = vsel %vm2220_vm2, %v2760_v2, %v2217_v43 }
0x273e   :  { %v2226_v27 = vsel %vm2223_vm4, %v2225_v9, %v2221_v28 }
0x273f   :  { %v2240_v44 = vsub.f32 1.0, %v2226_v27  ;;  %v2246_v47 = vmul.f32 %v2226_v27, %v2182_v0 }
0x277d   :  { %v2231_v29 = vpop.permute.xlu2 %2230 }
0x277e   :  { %v2233_v5 = vmul.f32 %v2231_v29, %v2226_v27 }
0x2780   :  { %2235 = vrot.lane.b32.xlu0 %v2233_v5, %s2842_s30 }
0x27f2   :  { %v2236_v49 = vpop.permute.xlu0 %2235 }
0x27f3   :  { %v2238_v8 = vadd.f32 %v2236_v49, %v3493_v31 }
0x27f5   :  { %2761 = vtanh.f32 %v2238_v8 }
0x27fb   :  { %v2762_v51 = vpop.eup %2761 }
0x27fc   :  { %2242 = vrot.lane.b32.xlu1 %v2762_v51, %s2843_s6 }
0x286e   :  { %v2243_v45 = vpop.permute.xlu1 %2242 }
0x286f   :  { %v2245_v33 = vmul.f32 %v2243_v45, %v2240_v44 }
0x2871   :  { %v2247_v48 = vadd.f32 %v2246_v47, %v2245_v33 }
0x2873   :  { %v2251_v10 = vpack.c.bf16 %v2247_v48, %v2247_v48 }
0x2875   :  { %2253 = vrot.lane.b32.xlu2 %v2251_v10, %s2843_s6 }
0x28cf   :  { %v2254_v15 = vpop.permute.xlu2 %2253 }
0x28d0   :  { %2588 = vmatmul.msk.bf16.vlgmr.msra.gmra.mxu0 %vm1214_vm1, %v2254_v15 }
0x294d   :  { %v2267_v16 = vpop.f32.mrf.mxu0 }
0x294e   :  { %v2291_v56 = vadd.f32 %v2267_v16, %v3413_v26  ;;  %v2271_v35 = vadd.f32 %v2267_v16, %v3497_v63 }
0x2950   :  { %2293 = vrot.lane.b32.xlu0 %v2291_v56, %s2842_s30  ;;  %v2589_v12 = vmul.f32 -1.442695, %v2271_v35 }
0x2952   :  { %2763 = vpow2.f32 %v2589_v12 }
0x2955   :  { %v2269_v31 = vpop.f32.mrf.mxu0 }
0x2958   :  { %v2764_v24 = vpop.eup %2763 }
0x2959   :  { %v2275_v59 = vadd.f32 1.0, %v2764_v24 }
0x295b   :  { %2765 = vrcp.f32 %v2275_v59  ;;  %v2287_v32 = vand.u32 2147483648, %v2275_v59  ;;  %vm2281_vm7 = vweird.f32 %v2275_v59  ;;  %v2285_v20 = vand.u32 2147483647, %v2275_v59 }
0x295d   :  { %v2288_v14 = vor.u32 1.1754944e-38, %v2287_v32  ;;  %vm2286_vm8 = vcmp.eq.f32.partialorder %v2285_v20, 8.507059e+37 }
0x2961   :  { %v2766_v60 = vpop.eup %2765 }
0x2962   :  { %v2277_v57 = vmul.f32 %v2766_v60, %v2275_v59  ;;  %vm2282_vm6 = vweird.f32 %v2766_v60 }
0x2963   :  { %vm2283_vm3 = vmor %vm2281_vm7, %vm2282_vm6 }
0x2964   :  { %v2278_v54 = vsub.f32 1.0, %v2277_v57 }
0x2966   :  { %v2279_v58 = vmul.f32 %v2766_v60, %v2278_v54 }
0x2968   :  { %v2280_v4 = vadd.f32 %v2766_v60, %v2279_v58 }
0x296a   :  { %v2284_v62 = vsel %vm2283_vm3, %v2766_v60, %v2280_v4 }
0x296b   :  { %v2289_v11 = vsel %vm2286_vm8, %v2288_v14, %v2284_v62 }
0x296c   :  { %v2303_v61 = vsub.f32 1.0, %v2289_v11  ;;  %v2309_v52 = vmul.f32 %v2289_v11, %v2247_v48 }
0x29c2   :  { %v2294_v7 = vpop.permute.xlu0 %2293 }
0x29c3   :  { %v2296_v13 = vmul.f32 %v2294_v7, %v2289_v11  ;;  %v2618_v11 = vld [vmem:[%s3696_s1 + $0x38] sm:$0xff] }
0x29c4   :  { %2465 = vmatpush.bf16.msrb.mxu1 %v2618_v11 }
0x29c5   :  { %2298 = vrot.lane.b32.xlu1 %v2296_v13, %s2842_s30  ;;  %v2617_v13 = vld [vmem:[%s3696_s1 + $0x30] sm:$0xff] }
0x29c8   :  { %2466 = vmatpush.bf16.msrb.mxu1 %v2617_v13 }
0x2a37   :  { %v2299_v40 = vpop.permute.xlu1 %2298 }
0x2a38   :  { %v2301_v17 = vadd.f32 %v2299_v40, %v3497_v63 }
0x2a3a   :  { %2767 = vtanh.f32 %v2301_v17 }
0x2a40   :  { %v2768_v46 = vpop.eup %2767 }
0x2a41   :  { %2305 = vrot.lane.b32.xlu2 %v2768_v46, %s2843_s6 }
0x2a9b   :  { %v2306_v50 = vpop.permute.xlu2 %2305 }
0x2a9c   :  { %v2308_v36 = vmul.f32 %v2306_v50, %v2303_v61 }
0x2a9e   :  { %v2310_v18 = vadd.f32 %v2309_v52, %v2308_v36  ;;  %v2620_v52 = vld [vmem:[%s3696_s1 + $0x48] sm:$0xff]  ;;  %v2619_v36 = vld [vmem:[%s3696_s1 + $0x40] sm:$0xff] }
0x2a9f   :  { %2495 = vmatpush.bf16.msrb.mxu0 %v2620_v52 }
0x2aa0   :  { %v2316_v19 = vpack.c.bf16 %v2310_v18, %v2310_v18 }
0x2aa2   :  { %2318 = vrot.lane.b32.xlu0 %v2316_v19, %s2843_s6  ;;  %v2641_v19 = vld [vmem:[#allocation2 + $0x13] ss:$0 sm:$0xff] }
0x2aa3   :  { %2496 = vmatpush.bf16.msrb.mxu0 %v2619_v36 }
0x2b14   :  { %v2319_v0 = vpop.permute.xlu0 %2318 }
0x2b15   :  { %2590 = vmatmul.msk.bf16.vlgmr.msra.gmra.mxu2 %vm1214_vm1, %v2319_v0 }
0x2b98   :  { %v2332_v55 = vpop.f32.mrf.mxu2 }
0x2b99   :  { %v2356_v21 = vadd.f32 %v2332_v55, %v3413_v26  ;;  %v2336_v34 = vadd.f32 %v2332_v55, %v3500_v1 }
0x2b9b   :  { %2358 = vrot.lane.b32.xlu1 %v2356_v21, %s2842_s30  ;;  %v2591_v41 = vmul.f32 -1.442695, %v2336_v34  ;;  %v2642_v34 = vld [vmem:[#allocation2 + $0x14] ss:$0 sm:$0xff] }
0x2b9d   :  { %2769 = vpow2.f32 %v2591_v41 }
0x2ba0   :  { %v2334_v63 = vpop.f32.mrf.mxu2 }
0x2ba3   :  { %v2770_v38 = vpop.eup %2769 }
0x2ba4   :  { %v2340_v39 = vadd.f32 1.0, %v2770_v38 }
0x2ba6   :  { %2771 = vrcp.f32 %v2340_v39  ;;  %v2352_v30 = vand.u32 2147483648, %v2340_v39  ;;  %vm2346_vm9 = vweird.f32 %v2340_v39  ;;  %v2350_v25 = vand.u32 2147483647, %v2340_v39 }
0x2ba8   :  { %v2353_v6 = vor.u32 1.1754944e-38, %v2352_v30  ;;  %vm2351_vm11 = vcmp.eq.f32.partialorder %v2350_v25, 8.507059e+37 }
0x2bac   :  { %v2772_v22 = vpop.eup %2771 }
0x2bad   :  { %v2342_v23 = vmul.f32 %v2772_v22, %v2340_v39  ;;  %vm2347_vm5 = vweird.f32 %v2772_v22 }
0x2bae   :  { %vm2348_vm10 = vmor %vm2346_vm9, %vm2347_vm5 }
0x2baf   :  { %v2343_v42 = vsub.f32 1.0, %v2342_v23 }
0x2bb1   :  { %v2344_v2 = vmul.f32 %v2772_v22, %v2343_v42 }
0x2bb3   :  { %v2345_v53 = vadd.f32 %v2772_v22, %v2344_v2 }
0x2bb5   :  { %v2349_v43 = vsel %vm2348_vm10, %v2772_v22, %v2345_v53 }
0x2bb6   :  { %v2354_v28 = vsel %vm2351_vm11, %v2353_v6, %v2349_v43 }
0x2bb7   :  { %v2368_v49 = vsub.f32 1.0, %v2354_v28  ;;  %v2374_v51 = vmul.f32 %v2354_v28, %v2310_v18 }
0x2c0d   :  { %v2359_v37 = vpop.permute.xlu1 %2358 }
0x2c0e   :  { %v2361_v9 = vmul.f32 %v2359_v37, %v2354_v28 }
0x2c10   :  { %2363 = vrot.lane.b32.xlu2 %v2361_v9, %s2842_s30 }
0x2c6a   :  { %v2364_v29 = vpop.permute.xlu2 %2363 }
0x2c6b   :  { %v2366_v27 = vadd.f32 %v2364_v29, %v3500_v1 }
0x2c6d   :  { %2773 = vtanh.f32 %v2366_v27 }
0x2c73   :  { %v2774_v5 = vpop.eup %2773 }
0x2c74   :  { %2370 = vrot.lane.b32.xlu0 %v2774_v5, %s2843_s6 }
0x2ce6   :  { %v2371_v8 = vpop.permute.xlu0 %2370 }
0x2ce7   :  { %v2373_v44 = vmul.f32 %v2371_v8, %v2368_v49 }
0x2ce9   :  { %v2375_v45 = vadd.f32 %v2374_v51, %v2373_v44 }
0x2ceb   :  { %v2379_v47 = vpack.c.bf16 %v2375_v45, %v2375_v45 }
0x2ced   :  { %2381 = vrot.lane.b32.xlu1 %v2379_v47, %s2843_s6 }
0x2d5f   :  { %v2382_v33 = vpop.permute.xlu1 %2381 }
0x2d60   :  { %2592 = vmatmul.msk.bf16.vlgmr.msra.gmra.mxu3 %vm1214_vm1, %v2382_v33 }
0x2de3   :  { %v2395_v48 = vpop.f32.mrf.mxu3 }
0x2de4   :  { %v2419_v10 = vadd.f32 %v2395_v48, %v3413_v26  ;;  %v2399_v15 = vadd.f32 %v2395_v48, %v3505_v3 }
0x2de6   :  { %2421 = vrot.lane.b32.xlu2 %v2419_v10, %s2842_s30  ;;  %v2593_v16 = vmul.f32 -1.442695, %v2399_v15 }
0x2de8   :  { %2775 = vpow2.f32 %v2593_v16 }
0x2deb   :  { %v2397_v1 = vpop.f32.mrf.mxu3 }
0x2dee   :  { %v2776_v56 = vpop.eup %2775 }
0x2def   :  { %v2403_v31 = vadd.f32 1.0, %v2776_v56 }
0x2df1   :  { %2777 = vrcp.f32 %v2403_v31  ;;  %v2415_v57 = vand.u32 2147483648, %v2403_v31  ;;  %vm2409_vm13 = vweird.f32 %v2403_v31  ;;  %v2413_v54 = vand.u32 2147483647, %v2403_v31 }
0x2df3   :  { %v2416_v58 = vor.u32 1.1754944e-38, %v2415_v57  ;;  %vm2414_vm15 = vcmp.eq.f32.partialorder %v2413_v54, 8.507059e+37 }
0x2df7   :  { %v2778_v35 = vpop.eup %2777 }
0x2df8   :  { %v2405_v12 = vmul.f32 %v2778_v35, %v2403_v31  ;;  %vm2410_vm12 = vweird.f32 %v2778_v35 }
0x2df9   :  { %vm2411_vm14 = vmor %vm2409_vm13, %vm2410_vm12 }
0x2dfa   :  { %v2406_v24 = vsub.f32 1.0, %v2405_v12 }
0x2dfc   :  { %v2407_v59 = vmul.f32 %v2778_v35, %v2406_v24 }
0x2dfe   :  { %v2408_v60 = vadd.f32 %v2778_v35, %v2407_v59 }
0x2e00   :  { %v2412_v26 = vsel %vm2411_vm14, %v2778_v35, %v2408_v60 }
0x2e01   :  { %v2417_v32 = vsel %vm2414_vm15, %v2416_v58, %v2412_v26 }
0x2e02   :  { %v2431_v40 = vsub.f32 1.0, %v2417_v32  ;;  %v2437_v46 = vmul.f32 %v2417_v32, %v2375_v45 }
0x2e40   :  { %v2422_v4 = vpop.permute.xlu2 %2421 }
0x2e41   :  { %v2424_v20 = vmul.f32 %v2422_v4, %v2417_v32 }
0x2e43   :  { %2426 = vrot.lane.b32.xlu0 %v2424_v20, %s2842_s30 }
0x2eb5   :  { %v2427_v62 = vpop.permute.xlu0 %2426 }
0x2eb6   :  { %v2429_v14 = vadd.f32 %v2427_v62, %v3505_v3 }
0x2eb8   :  { %2779 = vtanh.f32 %v2429_v14 }
0x2ebe   :  { %v2780_v7 = vpop.eup %2779 }
0x2ebf   :  { %2433 = vrot.lane.b32.xlu1 %v2780_v7, %s2843_s6 }
0x2f31   :  { %v2434_v17 = vpop.permute.xlu1 %2433 }
0x2f32   :  { %v2436_v61 = vmul.f32 %v2434_v17, %v2431_v40 }
0x2f34   :  { %v2438_v50 = vadd.f32 %v2437_v46, %v2436_v61 }
0x2f36   :  { %v2439_v3 = vpack.c.bf16 %v2438_v50, %v2438_v50 }
0x2f38   :  { %2442 = vrot.lane.b32.xlu2 %v2439_v3, %s2843_s6 }
0x2f92   :  { %v2443_v18 = vpop.permute.xlu2 %2442 }
0x2f93   :  { %2602 = vmatmul.msk.bf16.vlgmr.msrb.gmra.mxu1 %vm1214_vm1, %v2443_v18 }
0x3010   :  { %v2468_v0 = vpop.f32.mrf.mxu1 }
0x3011   :  { %v2469_v55 = vadd.f32 %v2641_v19, %v2468_v0 }
0x3013   :  { %v2472_v21 = vpack.c.bf16 %v2469_v55, %v2469_v55 }
0x3015   :  { %2611 = vmatmul.msk.bf16.vlgmr.msrb.gmra.mxu0 %vm1214_vm1, %v2472_v21 }
0x3018   :  { %v2470_v63 = vpop.f32.mrf.mxu1 }
0x3092   :  { %v2498_v41 = vpop.f32.mrf.mxu0 }
0x3093   :  { %v2499_v38 = vadd.f32 %v2642_v34, %v2498_v41 }
0x3095   :  { %2503 = vst.msk [vmem:[#allocation5] sm:$0x3] %vm2502_vm0, %v2499_v38 }
0x3096   :  { %2514 = dma.vmem_to_hbm [thread:$0]  %s2510_s20, 32, %s2512_s22, [#allocation4]  }
0x309a   :  { %v2500_v39 = vpop.f32.mrf.mxu0 }
0x309b   :  { %2834 = dma.done.wait [#allocation4], 32  }
0x309c   :  { %2835 = vsyncadd [#allocation4], 4294967264 }
0x309d   :  { %2519 = vsyncpa [#allocation3], 1 }
0x309e   :  { %2520 = vsyncpa [#allocation4], 1 }

</bundles_post_ra>
